<compile_context>
chip_gen: v7x
topology: tpu7x:2x2x1
jax: 0.10.0
libtpu: 0.0.40
codegen_flags: <defaults>
</compile_context>

<pallas_src>
import functools
import math

import jax
import jax.numpy as jnp
from jax import lax
from jax.experimental import pallas as pl
from jax.experimental.pallas import tpu as pltpu


def _gelu_tanh(x):
    c = math.sqrt(2.0 / math.pi)
    return 0.5 * x * (1.0 + jnp.tanh(c * (x + 0.044715 * x * x * x)))


# ----------------------------------------------------------------------------
# Fused kernel: im2col-conv + ReLU + transformer block + output projection.
# One grid step = one batch element; everything stays in VMEM.
# ----------------------------------------------------------------------------
def _fused_kernel(patch_ref, cw_ref, wqkv_ref, wo_ref, w1_ref, w2_ref, wl_ref,
                  bias_ref, o_ref, *, D, F, A, scale):
    # patch_ref: (1, S, 9*Cin) bf16   cw_ref: (9*Cin, D) bf16
    # wqkv_ref: (D, 3D) bf16          wo_ref: (D, D) bf16
    # w1_ref: (D, F) bf16             w2_ref: (F, D) bf16
    # wl_ref: (D, A) bf16             bias_ref: (8, 128) f32 (packed biases)
    # o_ref: (1, S, A) f32
    patches = patch_ref[0]                                   # (S, K) bf16

    # ---- image encoder: im2col conv as a single MXU matmul + bias + ReLU ----
    conv_b = bias_ref[0:1, 0:D]                              # (1, D) f32
    tokens = jnp.dot(patches, cw_ref[...],
                     preferred_element_type=jnp.float32)
    tokens = jnp.maximum(tokens + conv_b, 0.0)               # (S, D) f32
    t_bf = tokens.astype(jnp.bfloat16)

    # ---- fused QKV projection (one N=96 matmul) ----
    bqkv = bias_ref[1:2, 0:3 * D]                            # (1, 3D)
    qkv = jnp.dot(t_bf, wqkv_ref[...],
                  preferred_element_type=jnp.float32) + bqkv  # (S, 3D) f32
    q = qkv[:, 0:D].astype(jnp.bfloat16)
    k = qkv[:, D:2 * D].astype(jnp.bfloat16)
    v = qkv[:, 2 * D:3 * D].astype(jnp.bfloat16)

    # ---- attention: contract last dims directly (no explicit k.T) ----
    s = lax.dot_general(q, k, (((1,), (1,)), ((), ())),
                        preferred_element_type=jnp.float32) * scale  # (S, S)
    s_max = jnp.max(s, axis=-1, keepdims=True)
    p = jnp.exp(s - s_max)
    p = p * pl.reciprocal(jnp.sum(p, axis=-1, keepdims=True), approx=True)
    attn = jnp.dot(p.astype(jnp.bfloat16), v,
                   preferred_element_type=jnp.float32)               # (S, D)

    bo = bias_ref[2:3, 0:D]
    attn_out = jnp.dot(attn.astype(jnp.bfloat16), wo_ref[...],
                       preferred_element_type=jnp.float32) + bo
    h = tokens + attn_out                                    # residual 1 (f32)

    # ---- FFN ----
    b1 = bias_ref[3:4, 0:F]
    b2 = bias_ref[4:5, 0:D]
    h1 = jnp.dot(h.astype(jnp.bfloat16), w1_ref[...],
                 preferred_element_type=jnp.float32) + b1
    h1 = _gelu_tanh(h1)                                      # f32 elementwise
    h2 = jnp.dot(h1.astype(jnp.bfloat16), w2_ref[...],
                 preferred_element_type=jnp.float32) + b2
    h = h + h2                                               # residual 2 (f32)

    # ---- output projection to audio-token logits (lane-dense A=128) ----
    bl = bias_ref[5:6, 0:A]
    logits = jnp.dot(h.astype(jnp.bfloat16), wl_ref[...],
                     preferred_element_type=jnp.float32) + bl
    o_ref[0] = logits


# ----------------------------------------------------------------------------
# Full forward (= ImagetoAudio.forward)
# ----------------------------------------------------------------------------
def image_to_audio_forward(image_nchw, params):
    # image_nchw: [B, Cin, H, W] float32 (PyTorch NCHW at the boundary)
    B, Cin, H, W = image_nchw.shape
    S = H * W
    D = params["conv_w"].shape[-1]
    F = params["w1"].shape[-1]
    A = params["wl"].shape[-1]
    K = 9 * Cin
    scale = 1.0 / math.sqrt(D)

    # --- im2col in the wrapper: lane-dense (B, S, 9*Cin) patch matrix ---
    x = jnp.transpose(image_nchw, (0, 2, 3, 1))              # NHWC
    x_pad = jnp.pad(x, ((0, 0), (1, 1), (1, 1), (0, 0)))     # pad=1
    shifts = [x_pad[:, kh:kh + H, kw:kw + W, :]
              for kh in range(3) for kw in range(3)]
    patches = jnp.stack(shifts, axis=3).reshape(B, S, K).astype(jnp.bfloat16)

    # --- weights: bf16 for the MXU; QKV fused into a single (D, 3D) matrix ---
    conv_wf = params["conv_w"].reshape(K, D).astype(jnp.bfloat16)
    wqkv = jnp.concatenate([params["wq"], params["wk"], params["wv"]],
                           axis=1).astype(jnp.bfloat16)      # (D, 3D)
    wo = params["wo"].astype(jnp.bfloat16)
    w1 = params["w1"].astype(jnp.bfloat16)
    w2 = params["w2"].astype(jnp.bfloat16)
    wl = params["wl"].astype(jnp.bfloat16)

    # --- pack all biases (f32) into one lane-aligned (8, 128) buffer ---
    bqkv = jnp.concatenate([params["bq"], params["bk"], params["bv"]], axis=1)

    def row(b):
        b = b.reshape(1, -1).astype(jnp.float32)
        return jnp.pad(b, ((0, 0), (0, 128 - b.shape[1])))

    bias_pack = jnp.concatenate(
        [row(params["conv_b"]), row(bqkv), row(params["bo"]),
         row(params["b1"]), row(params["b2"]), row(params["bl"]),
         jnp.zeros((2, 128), jnp.float32)], axis=0)          # (8, 128)

    kernel = functools.partial(_fused_kernel, D=D, F=F, A=A, scale=scale)

    def wspec(arr):
        shp = arr.shape
        return pl.BlockSpec(shp, lambda b: (0,) * len(shp))

    return pl.pallas_call(
        kernel,
        out_shape=jax.ShapeDtypeStruct((B, S, A), jnp.float32),
        grid=(B,),
        in_specs=[pl.BlockSpec((1, S, K), lambda b: (b, 0, 0)),
                  wspec(conv_wf), wspec(wqkv), wspec(wo),
                  wspec(w1), wspec(w2), wspec(wl), wspec(bias_pack)],
        out_specs=pl.BlockSpec((1, S, A), lambda b: (b, 0, 0)),
        compiler_params=pltpu.CompilerParams(
            dimension_semantics=("parallel",)),
    )(patches, conv_wf, wqkv, wo, w1, w2, wl, bias_pack)


# ----------------------------------------------------------------------------
# Pure-JAX f32 reference (for correctness check)
# ----------------------------------------------------------------------------
def reference_forward(image_nchw, params):
    B, Cin, H, W = image_nchw.shape
    x = jnp.transpose(image_nchw, (0, 2, 3, 1))
    x_pad = jnp.pad(x, ((0, 0), (1, 1), (1, 1), (0, 0)))
    Cout = params["conv_w"].shape[-1]
    acc = jnp.zeros((B, H, W, Cout), jnp.float32)
    for kh in range(3):
        for kw in range(3):
            acc = acc + jnp.einsum("bhwc,cd->bhwd",
                                   x_pad[:, kh:kh + H, kw:kw + W, :],
                                   params["conv_w"][kh, kw])
    feats = jnp.maximum(acc + params["conv_b"][0], 0.0)
    t = feats.reshape(B, H * W, Cout)

    D = Cout
    q = t @ params["wq"] + params["bq"][0]
    k = t @ params["wk"] + params["bk"][0]
    v = t @ params["wv"] + params["bv"][0]
    s = jnp.einsum("bqd,bkd->bqk", q, k) / math.sqrt(D)
    p = jax.nn.softmax(s, axis=-1)
    attn = jnp.einsum("bqk,bkd->bqd", p, v) @ params["wo"] + params["bo"][0]
    h = t + attn
    h1 = _gelu_tanh(h @ params["w1"] + params["b1"][0])
    h = h + (h1 @ params["w2"] + params["b2"][0])
    return h @ params["wl"] + params["bl"][0]


# ----------------------------------------------------------------------------
# Deterministic parameter init
# ----------------------------------------------------------------------------
def init_params(key, *, Cin=4, D=32, F=64, A=128):
    ks = jax.random.split(key, 16)
    n = lambda k, shape: (0.02 * jax.random.normal(k, shape)).astype(jnp.float32)
    return {
        "conv_w": n(ks[0], (3, 3, Cin, D)),
        "conv_b": n(ks[1], (1, D)),
        "wq": n(ks[2], (D, D)), "bq": n(ks[3], (1, D)),
        "wk": n(ks[4], (D, D)), "bk": n(ks[5], (1, D)),
        "wv": n(ks[6], (D, D)), "bv": n(ks[7], (1, D)),
        "wo": n(ks[8], (D, D)), "bo": n(ks[9], (1, D)),
        "w1": n(ks[10], (D, F)), "b1": n(ks[11], (1, F)),
        "w2": n(ks[12], (F, D)), "b2": n(ks[13], (1, D)),
        "wl": n(ks[14], (D, A)), "bl": n(ks[15], (1, A)),
    }


if __name__ == "__main__":
    key = jax.random.PRNGKey(0)
    k_img, k_par = jax.random.split(key)

    B, Cin, H, W = 2, 4, 16, 16
    image = jax.random.normal(k_img, (B, Cin, H, W), dtype=jnp.float32)
    params = init_params(k_par, Cin=Cin, D=32, F=64, A=128)

    logits = image_to_audio_forward(image, params)
    logits = jax.block_until_ready(logits)

    ref = jax.block_until_ready(reference_forward(image, params))
    assert logits.shape == (B, H * W, 128), logits.shape
    # bf16 MXU operands (f32 accumulation) vs. f32 reference -> loose tolerance.
    max_err = float(jnp.max(jnp.abs(logits - ref)))
    assert jnp.allclose(logits, ref, rtol=2e-2, atol=2e-2), max_err

    print("KERNEL_OK")
</pallas_src>

<mosaic_0001>
module attributes {stable_mosaic.version = 11 : i64} {
  func.func @_fused_kernel(%arg0: i32, %arg1: memref<1x256x36xbf16, #tpu.memory_space<vmem>>, %arg2: memref<36x32xbf16, #tpu.memory_space<vmem>>, %arg3: memref<32x96xbf16, #tpu.memory_space<vmem>>, %arg4: memref<32x32xbf16, #tpu.memory_space<vmem>>, %arg5: memref<32x64xbf16, #tpu.memory_space<vmem>>, %arg6: memref<64x32xbf16, #tpu.memory_space<vmem>>, %arg7: memref<32x128xbf16, #tpu.memory_space<vmem>>, %arg8: memref<8x128xf32, #tpu.memory_space<vmem>>, %arg9: memref<1x256x128xf32, #tpu.memory_space<vmem>>) attributes {dimension_semantics = [#tpu.dimension_semantics<parallel>], iteration_bounds = array<i64: 2>, scalar_prefetch = 0 : i64, scratch_operands = 0 : i64, tpu.core_type = #tpu.core_type<tc>, window_params = [{transform_indices = @transform_0, window_bounds = array<i64: 1, 256, 36>}, {pipeline_mode = #tpu.pipeline_mode<synchronous>, transform_indices = @transform_1, window_bounds = array<i64: 36, 32>}, {pipeline_mode = #tpu.pipeline_mode<synchronous>, transform_indices = @transform_2, window_bounds = array<i64: 32, 96>}, {pipeline_mode = #tpu.pipeline_mode<synchronous>, transform_indices = @transform_3, window_bounds = array<i64: 32, 32>}, {pipeline_mode = #tpu.pipeline_mode<synchronous>, transform_indices = @transform_4, window_bounds = array<i64: 32, 64>}, {pipeline_mode = #tpu.pipeline_mode<synchronous>, transform_indices = @transform_5, window_bounds = array<i64: 64, 32>}, {pipeline_mode = #tpu.pipeline_mode<synchronous>, transform_indices = @transform_6, window_bounds = array<i64: 32, 128>}, {pipeline_mode = #tpu.pipeline_mode<synchronous>, transform_indices = @transform_7, window_bounds = array<i64: 8, 128>}, {transform_indices = @transform_8, window_bounds = array<i64: 1, 256, 128>}]} {
    %c0 = arith.constant 0 : index
    %c0_0 = arith.constant 0 : index
    %c0_1 = arith.constant 0 : index
    %0 = vector.load %arg1[%c0, %c0_0, %c0_1] : memref<1x256x36xbf16, #tpu.memory_space<vmem>>, vector<1x256x36xbf16>
    %1 = vector.shape_cast %0 : vector<1x256x36xbf16> to vector<256x36xbf16>
    %c0_2 = arith.constant 0 : index
    %c0_3 = arith.constant 0 : index
    %2 = vector.load %arg8[%c0_2, %c0_3] : memref<8x128xf32, #tpu.memory_space<vmem>>, vector<1x32xf32>
    %c0_4 = arith.constant 0 : index
    %c0_5 = arith.constant 0 : index
    %3 = vector.load %arg2[%c0_4, %c0_5] : memref<36x32xbf16, #tpu.memory_space<vmem>>, vector<36x32xbf16>
    %cst = arith.constant dense<0.000000e+00> : vector<256x32xf32>
    %4 = tpu.matmul %1, %3, %cst {dimension_numbers = #tpu.dot_dimension_numbers<[1], [0], [0], [1], [0, 0, 1, 1], [], []>} : vector<256x36xbf16>, vector<36x32xbf16>, vector<256x32xf32> -> vector<256x32xf32>
    %5 = vector.broadcast %2 : vector<1x32xf32> to vector<256x32xf32>
    %6 = arith.addf %4, %5 : vector<256x32xf32>
    %cst_6 = arith.constant 0.000000e+00 : f32
    %7 = vector.broadcast %cst_6 : f32 to vector<256x32xf32>
    %8 = arith.maximumf %6, %7 : vector<256x32xf32>
    %9 = arith.truncf %8 : vector<256x32xf32> to vector<256x32xbf16>
    %c1 = arith.constant 1 : index
    %c0_7 = arith.constant 0 : index
    %10 = vector.load %arg8[%c1, %c0_7] : memref<8x128xf32, #tpu.memory_space<vmem>>, vector<1x96xf32>
    %c0_8 = arith.constant 0 : index
    %c0_9 = arith.constant 0 : index
    %11 = vector.load %arg3[%c0_8, %c0_9] : memref<32x96xbf16, #tpu.memory_space<vmem>>, vector<32x96xbf16>
    %cst_10 = arith.constant dense<0.000000e+00> : vector<256x96xf32>
    %12 = tpu.matmul %9, %11, %cst_10 {dimension_numbers = #tpu.dot_dimension_numbers<[1], [0], [0], [1], [0, 0, 1, 1], [], []>} : vector<256x32xbf16>, vector<32x96xbf16>, vector<256x96xf32> -> vector<256x96xf32>
    %13 = vector.broadcast %10 : vector<1x96xf32> to vector<256x96xf32>
    %14 = arith.addf %12, %13 : vector<256x96xf32>
    %15 = vector.extract_strided_slice %14 {offsets = [0, 0], sizes = [256, 32], strides = [1, 1]} : vector<256x96xf32> to vector<256x32xf32>
    %16 = arith.truncf %15 : vector<256x32xf32> to vector<256x32xbf16>
    %17 = vector.extract_strided_slice %14 {offsets = [0, 32], sizes = [256, 32], strides = [1, 1]} : vector<256x96xf32> to vector<256x32xf32>
    %18 = arith.truncf %17 : vector<256x32xf32> to vector<256x32xbf16>
    %19 = vector.extract_strided_slice %14 {offsets = [0, 64], sizes = [256, 32], strides = [1, 1]} : vector<256x96xf32> to vector<256x32xf32>
    %20 = arith.truncf %19 : vector<256x32xf32> to vector<256x32xbf16>
    %cst_11 = arith.constant dense<0.000000e+00> : vector<256x256xf32>
    %21 = tpu.matmul %16, %18, %cst_11 {dimension_numbers = #tpu.dot_dimension_numbers<[1], [1], [0], [0], [0, 0, 1, 0], [], []>} : vector<256x32xbf16>, vector<256x32xbf16>, vector<256x256xf32> -> vector<256x256xf32>
    %cst_12 = arith.constant 0.176776692 : f32
    %22 = vector.broadcast %cst_12 : f32 to vector<256x256xf32>
    %23 = arith.mulf %21, %22 : vector<256x256xf32>
    %cst_13 = arith.constant dense<0xFF800000> : vector<256xf32>
    %24 = vector.multi_reduction <maximumf>, %23, %cst_13 [1] : vector<256x256xf32> to vector<256xf32>
    %25 = vector.shape_cast %24 : vector<256xf32> to vector<256x1xf32>
    %26 = vector.broadcast %25 : vector<256x1xf32> to vector<256x256xf32>
    %27 = arith.subf %23, %26 : vector<256x256xf32>
    %28 = math.exp %27 : vector<256x256xf32>
    %cst_14 = arith.constant dense<0.000000e+00> : vector<256xf32>
    %29 = vector.multi_reduction <add>, %28, %cst_14 [1] : vector<256x256xf32> to vector<256xf32>
    %30 = vector.shape_cast %29 : vector<256xf32> to vector<256x1xf32>
    %31 = tpu.reciprocal %30 {approx = true} : vector<256x1xf32> -> vector<256x1xf32>
    %32 = vector.broadcast %31 : vector<256x1xf32> to vector<256x256xf32>
    %33 = arith.mulf %28, %32 : vector<256x256xf32>
    %34 = arith.truncf %33 : vector<256x256xf32> to vector<256x256xbf16>
    %cst_15 = arith.constant dense<0.000000e+00> : vector<256x32xf32>
    %35 = tpu.matmul %34, %20, %cst_15 {dimension_numbers = #tpu.dot_dimension_numbers<[1], [0], [0], [1], [0, 0, 1, 1], [], []>} : vector<256x256xbf16>, vector<256x32xbf16>, vector<256x32xf32> -> vector<256x32xf32>
    %c2 = arith.constant 2 : index
    %c0_16 = arith.constant 0 : index
    %36 = vector.load %arg8[%c2, %c0_16] : memref<8x128xf32, #tpu.memory_space<vmem>>, vector<1x32xf32>
    %37 = arith.truncf %35 : vector<256x32xf32> to vector<256x32xbf16>
    %c0_17 = arith.constant 0 : index
    %c0_18 = arith.constant 0 : index
    %38 = vector.load %arg4[%c0_17, %c0_18] : memref<32x32xbf16, #tpu.memory_space<vmem>>, vector<32x32xbf16>
    %cst_19 = arith.constant dense<0.000000e+00> : vector<256x32xf32>
    %39 = tpu.matmul %37, %38, %cst_19 {dimension_numbers = #tpu.dot_dimension_numbers<[1], [0], [0], [1], [0, 0, 1, 1], [], []>} : vector<256x32xbf16>, vector<32x32xbf16>, vector<256x32xf32> -> vector<256x32xf32>
    %40 = vector.broadcast %36 : vector<1x32xf32> to vector<256x32xf32>
    %41 = arith.addf %39, %40 : vector<256x32xf32>
    %42 = arith.addf %8, %41 : vector<256x32xf32>
    %c3 = arith.constant 3 : index
    %c0_20 = arith.constant 0 : index
    %43 = vector.load %arg8[%c3, %c0_20] : memref<8x128xf32, #tpu.memory_space<vmem>>, vector<1x64xf32>
    %c4 = arith.constant 4 : index
    %c0_21 = arith.constant 0 : index
    %44 = vector.load %arg8[%c4, %c0_21] : memref<8x128xf32, #tpu.memory_space<vmem>>, vector<1x32xf32>
    %45 = arith.truncf %42 : vector<256x32xf32> to vector<256x32xbf16>
    %c0_22 = arith.constant 0 : index
    %c0_23 = arith.constant 0 : index
    %46 = vector.load %arg5[%c0_22, %c0_23] : memref<32x64xbf16, #tpu.memory_space<vmem>>, vector<32x64xbf16>
    %cst_24 = arith.constant dense<0.000000e+00> : vector<256x64xf32>
    %47 = tpu.matmul %45, %46, %cst_24 {dimension_numbers = #tpu.dot_dimension_numbers<[1], [0], [0], [1], [0, 0, 1, 1], [], []>} : vector<256x32xbf16>, vector<32x64xbf16>, vector<256x64xf32> -> vector<256x64xf32>
    %48 = vector.broadcast %43 : vector<1x64xf32> to vector<256x64xf32>
    %49 = arith.addf %47, %48 : vector<256x64xf32>
    %cst_25 = arith.constant 5.000000e-01 : f32
    %50 = vector.broadcast %cst_25 : f32 to vector<256x64xf32>
    %51 = arith.mulf %50, %49 : vector<256x64xf32>
    %cst_26 = arith.constant 4.471500e-02 : f32
    %52 = vector.broadcast %cst_26 : f32 to vector<256x64xf32>
    %53 = arith.mulf %52, %49 : vector<256x64xf32>
    %54 = arith.mulf %53, %49 : vector<256x64xf32>
    %55 = arith.mulf %54, %49 : vector<256x64xf32>
    %56 = arith.addf %49, %55 : vector<256x64xf32>
    %cst_27 = arith.constant 0.797884583 : f32
    %57 = vector.broadcast %cst_27 : f32 to vector<256x64xf32>
    %58 = arith.mulf %57, %56 : vector<256x64xf32>
    %59 = math.tanh %58 : vector<256x64xf32>
    %cst_28 = arith.constant 1.000000e+00 : f32
    %60 = vector.broadcast %cst_28 : f32 to vector<256x64xf32>
    %61 = arith.addf %60, %59 : vector<256x64xf32>
    %62 = arith.mulf %51, %61 : vector<256x64xf32>
    %63 = arith.truncf %62 : vector<256x64xf32> to vector<256x64xbf16>
    %c0_29 = arith.constant 0 : index
    %c0_30 = arith.constant 0 : index
    %64 = vector.load %arg6[%c0_29, %c0_30] : memref<64x32xbf16, #tpu.memory_space<vmem>>, vector<64x32xbf16>
    %cst_31 = arith.constant dense<0.000000e+00> : vector<256x32xf32>
    %65 = tpu.matmul %63, %64, %cst_31 {dimension_numbers = #tpu.dot_dimension_numbers<[1], [0], [0], [1], [0, 0, 1, 1], [], []>} : vector<256x64xbf16>, vector<64x32xbf16>, vector<256x32xf32> -> vector<256x32xf32>
    %66 = vector.broadcast %44 : vector<1x32xf32> to vector<256x32xf32>
    %67 = arith.addf %65, %66 : vector<256x32xf32>
    %68 = arith.addf %42, %67 : vector<256x32xf32>
    %c5 = arith.constant 5 : index
    %c0_32 = arith.constant 0 : index
    %69 = vector.load %arg8[%c5, %c0_32] : memref<8x128xf32, #tpu.memory_space<vmem>>, vector<1x128xf32>
    %70 = arith.truncf %68 : vector<256x32xf32> to vector<256x32xbf16>
    %c0_33 = arith.constant 0 : index
    %c0_34 = arith.constant 0 : index
    %71 = vector.load %arg7[%c0_33, %c0_34] : memref<32x128xbf16, #tpu.memory_space<vmem>>, vector<32x128xbf16>
    %cst_35 = arith.constant dense<0.000000e+00> : vector<256x128xf32>
    %72 = tpu.matmul %70, %71, %cst_35 {dimension_numbers = #tpu.dot_dimension_numbers<[1], [0], [0], [1], [0, 0, 1, 1], [], []>} : vector<256x32xbf16>, vector<32x128xbf16>, vector<256x128xf32> -> vector<256x128xf32>
    %73 = vector.broadcast %69 : vector<1x128xf32> to vector<256x128xf32>
    %74 = arith.addf %72, %73 : vector<256x128xf32>
    %c0_36 = arith.constant 0 : index
    %c0_37 = arith.constant 0 : index
    %c0_38 = arith.constant 0 : index
    %75 = vector.load %arg9[%c0_36, %c0_37, %c0_38] : memref<1x256x128xf32, #tpu.memory_space<vmem>>, vector<1x256x128xf32>
    %76 = vector.shape_cast %75 : vector<1x256x128xf32> to vector<256x128xf32>
    %77 = vector.shape_cast %74 : vector<256x128xf32> to vector<1x256x128xf32>
    tpu.vector_store %arg9[%c0_36, %c0_37, %c0_38], %77 {strides = array<i32>} : memref<1x256x128xf32, #tpu.memory_space<vmem>>, vector<1x256x128xf32>,
    return
  }
  func.func @transform_0(%arg0: i32) -> (i32, i32, i32) {
    %c0_i32 = arith.constant 0 : i32
    %c0_i32_0 = arith.constant 0 : i32
    %c0_i32_1 = arith.constant 0 : i32
    return %arg0, %c0_i32, %c0_i32_0 : i32, i32, i32
  }
  func.func @transform_1(%arg0: i32) -> (i32, i32) {
    %c0_i32 = arith.constant 0 : i32
    %c0_i32_0 = arith.constant 0 : i32
    %c0_i32_1 = arith.constant 0 : i32
    return %c0_i32, %c0_i32_0 : i32, i32
  }
  func.func @transform_2(%arg0: i32) -> (i32, i32) {
    %c0_i32 = arith.constant 0 : i32
    %c0_i32_0 = arith.constant 0 : i32
    %c0_i32_1 = arith.constant 0 : i32
    return %c0_i32, %c0_i32_0 : i32, i32
  }
  func.func @transform_3(%arg0: i32) -> (i32, i32) {
    %c0_i32 = arith.constant 0 : i32
    %c0_i32_0 = arith.constant 0 : i32
    %c0_i32_1 = arith.constant 0 : i32
    return %c0_i32, %c0_i32_0 : i32, i32
  }
  func.func @transform_4(%arg0: i32) -> (i32, i32) {
    %c0_i32 = arith.constant 0 : i32
    %c0_i32_0 = arith.constant 0 : i32
    %c0_i32_1 = arith.constant 0 : i32
    return %c0_i32, %c0_i32_0 : i32, i32
  }
  func.func @transform_5(%arg0: i32) -> (i32, i32) {
    %c0_i32 = arith.constant 0 : i32
    %c0_i32_0 = arith.constant 0 : i32
    %c0_i32_1 = arith.constant 0 : i32
    return %c0_i32, %c0_i32_0 : i32, i32
  }
  func.func @transform_6(%arg0: i32) -> (i32, i32) {
    %c0_i32 = arith.constant 0 : i32
    %c0_i32_0 = arith.constant 0 : i32
    %c0_i32_1 = arith.constant 0 : i32
    return %c0_i32, %c0_i32_0 : i32, i32
  }
  func.func @transform_7(%arg0: i32) -> (i32, i32) {
    %c0_i32 = arith.constant 0 : i32
    %c0_i32_0 = arith.constant 0 : i32
    %c0_i32_1 = arith.constant 0 : i32
    return %c0_i32, %c0_i32_0 : i32, i32
  }
  func.func @transform_8(%arg0: i32) -> (i32, i32, i32) {
    %c0_i32 = arith.constant 0 : i32
    %c0_i32_0 = arith.constant 0 : i32
    %c0_i32_1 = arith.constant 0 : i32
    return %arg0, %c0_i32, %c0_i32_0 : i32, i32, i32
  }
}

</mosaic_0001>

<bundles_post_ra>
// kernel: tpu_custom_call.1
= control target key start
LH: loop header
LB: loop body
LE: loop exit
PB: predicated region body
PF: predicated region fallthrough
CT: control target
= control target key end

     0   :  { %13 = vsyncpa [#allocation3], 0  ;;  %s6326_s0 = inlined_call_operand.vmem [shape: bf16[2,256,36], index: 0, kind: input, shape index: {}]   ;;  %s6327_s1 = inlined_call_operand.vmem [shape: bf16[36,32], index: 1, kind: input, shape index: {}]   ;;  %s6328_s2 = inlined_call_operand.vmem [shape: bf16[32,96], index: 2, kind: input, shape index: {}]   ;;  %s6329_s3 = inlined_call_operand.vmem [shape: bf16[32,32], index: 3, kind: input, shape index: {}]   ;;  %s6330_s4 = inlined_call_operand.vmem [shape: bf16[32,64], index: 4, kind: input, shape index: {}]   ;;  %s6331_s5 = inlined_call_operand.vmem [shape: bf16[64,32], index: 5, kind: input, shape index: {}]   ;;  %s6332_s6 = inlined_call_operand.vmem [shape: bf16[32,128], index: 6, kind: input, shape index: {}]   ;;  %s6333_s7 = inlined_call_operand.vmem [shape: f32[8,128], index: 7, kind: input, shape index: {}]   ;;  %s6334_s8 = inlined_call_operand.hbm [shape: f32[2,256,128], index: 8, kind: output, shape index: {}]  }
   0x1   :  { %15 = vsyncpa [#allocation3 + $0x1], 0  ;;  %s4643_s27 = smov 0   ;;  %s4645_s28 = smov 0  }
   0x2   :  { %s4647_s29 = smov 0   ;;  %s4649_s30 = smov 0  }
   0x3 LB: > { %s4664_s9 = sadd.s32 4294967295, %s4591_s30   ;;  %s3534_s10 = sadd.s32 4294967294, %s4591_s30   ;;  %s4591_s30 = sphi %s4649_s30, %s6598_s30   ;;  %s4587_s29 = sphi %s4647_s29, %s6597_s29   ;;  %s4583_s28 = sphi %s4645_s28, %s6596_s28   ;;  %s4579_s27 = sphi %s4643_s27, %s6595_s27  }
   0x4   : > { %s4668_s11 = sadd.s32 1, %s4591_s30   ;;  %s201_s12 = sadd.s32 1, %s4587_s29 }
   0x5   : > { %s198_s13 = ssub.s32 %s4591_s30, %s4668_s11  ;;  %p211_p0 = scmp.ne.s32.totalorder %s4587_s29, %s4583_s28 }
   0x6   : > { %p199_p1 = scmp.eq.s32.totalorder %s198_s13, 0  ;;  %p212_p2 = scmp.eq.s32.totalorder %s4664_s9, 1 }
   0x7   : > { %p217_p3 = scmp.ne.s32.totalorder %s4583_s28, %s4579_s27  ;;  %p218_p4 = scmp.eq.s32.totalorder %s3534_s10, 1 }
   0x8   : > { %s4679_s14 = scalar_select %p199_p1, %s4587_s29, %s201_s12  }
   0x9   : > { %p4681_p5 = por %p212_p2, %p211_p0  ;;  %p4685_p6 = por %p218_p4, %p217_p3 }
   0xa   : > { %p3537_p7 = scmp.ge.s32.totalorder %s4591_s30, 1  ;;  %p265_p8 = scmp.lt.s32.totalorder %s4591_s30, 3 }
   0xc   : > { %p266_p9 = pnand %p3537_p7, %p265_p8 }
   0xe   : > { %269 = sbr.rel (%p266_p9) target bundleno = 2641 (0xa51), region = 52 }
  0x15   : > { %v4242_v0 = vld [vmem:[%s6327_s1] sm:$0xff]   ;;  %v4243_v1 = vld [vmem:[%s6327_s1 + $0x8] sm:$0xff]   ;;  %p299_p10 = scmp.lt.s32.totalorder %s4664_s9, 1  ;;  %v4244_v2 = vld [vmem:[%s6327_s1 + $0x10] ss:$0 sps:$4 sm:$0x33]  }
  0x16   : > { %3968 = vmatprep.subr.bf16.mxu0 %v4242_v0  ;;  %vm491_vm0 = vcmask 1041408   ;;  %vm442_vm1 = vcmask 293888   ;;  %v4261_v20 = vld [vmem:[%s6328_s2] sm:$0xff]   ;;  %v4262_v21 = vld [vmem:[%s6328_s2 + $0x8] sm:$0xff]   ;;  %vm725_vm2 = vcmask 261120   ;;  %vm2938_vm3 = vcmask 523264  }
  0x17   : > { %3969 = vmatpush3.bf16.msra.mxu0 %v4242_v0  ;;  %s300_s23 = scalar_select %p299_p10, %s4664_s9, 1  ;;  %v493_v4 = vsel %vm491_vm0, %v4244_v2, 0  ;;  %4006 = vmatprep.subr.bf16.mxu1 %v4261_v20  ;;  %v4748_v22 = vld [vmem:[%s6333_s7] ss:$0 sm:$0xff] }
  0x18   : > { %3970 = vmatprep.subr.bf16.mxu0 %v4243_v1  ;;  %4007 = vmatpush3.bf16.msra.mxu1 %v4261_v20  ;;  %s296_s25 = sand.u32 1, %s4583_s28   ;;  %s3696_s17 = sshll.u32 %s4664_s9, 12 }
  0x19   : > { %s3695_s24 = sshll.u32 %s300_s23, 7  ;;  %4008 = vmatprep.subr.bf16.mxu1 %v4262_v21  ;;  %s4593_s23 = smov 96  }
  0x1a   : > { %s4705_s10 = scalar_lea.vmem %s6326_s0, %s3695_s24  ;;  %s4594_s24 = smov 64  }
  0x1b   : > { %3971 = vmatpush3.bf16.msra.mxu0 %v4243_v1  ;;  %v4245_v3 = vld [vmem:[%s4705_s10] sm:$0xff]   ;;  %v4246_v5 = vld [vmem:[%s4705_s10 + $0x8] sm:$0xff]   ;;  %v4247_v6 = vld [vmem:[%s4705_s10 + $0x10] sm:$0xff]   ;;  %s3538_s26 = sshll.u32 %s296_s25, 8  ;;  %s6275_s21 = scalar_lea.hbm %s6334_s8, %s3696_s17 }
  0x1c   : > { %4190 = vmatprep.subr.msk.bf16.mxu0 %vm491_vm0, %v4244_v2  ;;  %3974 = vmatprep.mubr.msk.bf16.mxu0 %vm442_vm1, %v4245_v3  ;;  %v4248_v7 = vld [vmem:[%s4705_s10 + $0x18] sm:$0xff]   ;;  %v4249_v8 = vld [vmem:[%s4705_s10 + $0x20] sm:$0xff]   ;;  %v4250_v9 = vld [vmem:[%s4705_s10 + $0x28] sm:$0xff]   ;;  %s6210_s13 = scalar_lea.vmem [#allocation2], %s3538_s26  ;;  %s6285_s9 = scalar_lea.sflag [#allocation3], %s296_s25 }
  0x1d   : > { %v4251_v10 = vld [vmem:[%s4705_s10 + $0x30] sm:$0xff]   ;;  %v4252_v11 = vld [vmem:[%s4705_s10 + $0x38] sm:$0xff]   ;;  %v4253_v12 = vld [vmem:[%s4705_s10 + $0x40] sm:$0xff]   ;;  %4009 = vmatpush3.bf16.msra.mxu1 %v4262_v21  ;;  %s3472_s18 = sshll.u32 %s6210_s13, 4  ;;  %s6277_s18 = int_to_ptr.vmem [resolvable:$true] %s3472_s18 }
  0x1e   : > { %v4254_v13 = vld [vmem:[%s4705_s10 + $0x48] sm:$0xff]   ;;  %v4255_v14 = vld [vmem:[%s4705_s10 + $0x50] sm:$0xff]   ;;  %v4256_v15 = vld [vmem:[%s4705_s10 + $0x58] sm:$0xff]   ;;  %s4529_s22 = scalar_lea.vmem %s6277_s18, 4096 }
  0x1f   : > { %3973 = vmatpush3.bf16.msra.mxu0 %v493_v4  ;;  %v4257_v16 = vld [vmem:[%s4705_s10 + $0x60] sm:$0xff]   ;;  %v4258_v17 = vld [vmem:[%s4705_s10 + $0x68] sm:$0xff]   ;;  %v4259_v18 = vld [vmem:[%s4705_s10 + $0x70] sm:$0xff]   ;;  %p4530_p11 = scmp.ne.s32.totalorder %s6277_s18, %s4529_s22 }
  0x20   : > { %v4260_v19 = vld [vmem:[%s4705_s10 + $0x78] sm:$0xff]  }
  0x21   : > { %p4531_p12 = pnand %p4530_p11, %p4681_p5 }
  0x22   : > { %3975 = vmatmul.mubr.msk.bf16.vlgmr.msra.gmra.mrb[0].mxu0 %vm442_vm1, %v4246_v5 }
  0x23   : > { %3978 = vmatprep.mubr.msk.bf16.mxu0 %vm442_vm1, %v4247_v6  ;;  %p4532_p13 = pneg %p4531_p12 }
  0x2a   : > { %3979 = vmatmul.mubr.msk.bf16.gmra.mrb[4].mxu0 %vm442_vm1, %v4248_v7 }
  0x2b   : > { %3982 = vmatprep.mubr.msk.bf16.mxu0 %vm442_vm1, %v4249_v8 }
  0x32   : > { %3983 = vmatmul.mubr.msk.bf16.gmra.mrb[8].mxu0 %vm442_vm1, %v4250_v9 }
  0x33   : > { %3986 = vmatprep.mubr.msk.bf16.mxu0 %vm442_vm1, %v4251_v10 }
  0x3a   : > { %3987 = vmatmul.mubr.msk.bf16.gmra.mrb[12].mxu0 %vm442_vm1, %v4252_v11 }
  0x3b   : > { %3990 = vmatprep.mubr.msk.bf16.mxu0 %vm442_vm1, %v4253_v12 }
  0x42   : > { %3991 = vmatmul.mubr.msk.bf16.gmra.mrb[16].mxu0 %vm442_vm1, %v4254_v13 }
  0x43   : > { %3994 = vmatprep.mubr.msk.bf16.mxu0 %vm442_vm1, %v4255_v14 }
  0x4a   : > { %3995 = vmatmul.mubr.msk.bf16.gmra.mrb[20].mxu0 %vm442_vm1, %v4256_v15 }
  0x4b   : > { %3998 = vmatprep.mubr.msk.bf16.mxu0 %vm442_vm1, %v4257_v16 }
  0x52   : > { %3999 = vmatmul.mubr.msk.bf16.gmra.mrb[24].mxu0 %vm442_vm1, %v4258_v17 }
  0x53   : > { %4002 = vmatprep.mubr.msk.bf16.mxu0 %vm442_vm1, %v4259_v18 }
  0x5a   : > { %4003 = vmatmul.mubr.msk.bf16.gmra.mrb[28].mxu0 %vm442_vm1, %v4260_v19 }
  0xf5   : > { %v3976_v23 = vpop.f32.mrb[0].mxu0 }
  0xf6   : > { %v529_v24 = vpop.f32.mrb[1].mxu0  ;;  %v4754_v27 = vadd.f32 %v3976_v23, %v4748_v22 }
  0xf7   : > { %v4751_v25 = vadd.f32 %v4748_v22, %v529_v24  ;;  %v3977_v26 = vpop.f32.mrb[2].mxu0 }
  0xf8   : > { %6434 = vst [vmem:[#allocation6_spill] sm:$0xff] %v4754_v27  ;;  %v4757_v28 = vadd.f32 %v3977_v26, %v4748_v22  ;;  %v532_v29 = vpop.f32.mrb[3].mxu0  ;;  %v6363_v34 = vmax.f32 %v4754_v27, 0.0 }
  0xf9   : > { %6433 = vst [vmem:[#allocation5_spill] sm:$0xff] %v4751_v25  ;;  %v4760_v30 = vadd.f32 %v4748_v22, %v532_v29  ;;  %v6365_v32 = vmax.f32 %v4751_v25, 0.0 }
  0xfa   : > { %6435 = vst [vmem:[#allocation7_spill] sm:$0xff] %v4757_v28  ;;  %v6366_v31 = vmax.f32 %v4757_v28, 0.0 }
  0xfb   : > { %6436 = vst [vmem:[#allocation8_spill] sm:$0xff] %v4760_v30  ;;  %v6364_v33 = vmax.f32 %v4760_v30, 0.0 }
  0xfc   : > { %v689_v37 = vpack.c.bf16 %v6366_v31, %v6363_v34 }
  0xfd   : > { %v3980_v35 = vpop.f32.mrb[4].mxu0  ;;  %v688_v36 = vpack.c.bf16 %v6364_v33, %v6365_v32 }
  0xfe   : > { %v545_v38 = vpop.f32.mrb[5].mxu0  ;;  %v4779_v41 = vadd.f32 %v3980_v35, %v4748_v22 }
  0xff   : > { %v4775_v39 = vadd.f32 %v4748_v22, %v545_v38  ;;  %v3981_v40 = vpop.f32.mrb[6].mxu0  ;;  %4010 = vmatprep.mubr.msk.bf16.mxu1 %vm725_vm2, %v688_v36 }
 0x100   : > { %6438 = vst [vmem:[#allocation10_spill] sm:$0xff] %v4779_v41  ;;  %v4782_v42 = vadd.f32 %v3981_v40, %v4748_v22  ;;  %v548_v43 = vpop.f32.mrb[7].mxu0  ;;  %4011 = vmatmul.mubr.msk.bf16.vlgmr.msra.gmra.mrb[0].mxu1 %vm725_vm2, %v689_v37  ;;  %v6359_v48 = vmax.f32 %v4779_v41, 0.0 }
 0x101   : > { %6437 = vst [vmem:[#allocation9_spill] sm:$0xff] %v4775_v39  ;;  %v4786_v44 = vadd.f32 %v4748_v22, %v548_v43  ;;  %v6361_v46 = vmax.f32 %v4775_v39, 0.0 }
 0x102   : > { %6439 = vst [vmem:[#allocation11_spill] sm:$0xff] %v4782_v42  ;;  %v6362_v45 = vmax.f32 %v4782_v42, 0.0 }
 0x103   : > { %6440 = vst [vmem:[#allocation12_spill] sm:$0xff] %v4786_v44  ;;  %v6360_v47 = vmax.f32 %v4786_v44, 0.0 }
 0x104   : > { %v691_v51 = vpack.c.bf16 %v6362_v45, %v6359_v48 }
 0x105   : > { %v690_v49 = vpack.c.bf16 %v6360_v47, %v6361_v46  ;;  %v3984_v50 = vpop.f32.mrb[8].mxu0 }
 0x106   : > { %v561_v52 = vpop.f32.mrb[9].mxu0  ;;  %v4805_v55 = vadd.f32 %v3984_v50, %v4748_v22 }
 0x107   : > { %v4801_v53 = vadd.f32 %v4748_v22, %v561_v52  ;;  %v3985_v54 = vpop.f32.mrb[10].mxu0  ;;  %4014 = vmatprep.mubr.msk.bf16.mxu1 %vm725_vm2, %v690_v49 }
 0x108   : > { %6442 = vst [vmem:[#allocation14_spill] sm:$0xff] %v4805_v55  ;;  %v4808_v56 = vadd.f32 %v3985_v54, %v4748_v22  ;;  %v564_v57 = vpop.f32.mrb[11].mxu0  ;;  %4015 = vmatmul.mubr.msk.bf16.gmra.mrb[4].mxu1 %vm725_vm2, %v691_v51  ;;  %v6355_v62 = vmax.f32 %v4805_v55, 0.0 }
 0x109   : > { %6441 = vst [vmem:[#allocation13_spill] sm:$0xff] %v4801_v53  ;;  %v4812_v58 = vadd.f32 %v4748_v22, %v564_v57  ;;  %v6357_v60 = vmax.f32 %v4801_v53, 0.0 }
 0x10a   : > { %6443 = vst [vmem:[#allocation15_spill] sm:$0xff] %v4808_v56  ;;  %v6358_v59 = vmax.f32 %v4808_v56, 0.0 }
 0x10b   : > { %6444 = vst [vmem:[#allocation16_spill] sm:$0xff] %v4812_v58  ;;  %v6356_v61 = vmax.f32 %v4812_v58, 0.0 }
 0x10c   : > { %v693_v1 = vpack.c.bf16 %v6358_v59, %v6355_v62 }
 0x10d   : > { %v692_v63 = vpack.c.bf16 %v6356_v61, %v6357_v60  ;;  %v3988_v0 = vpop.f32.mrb[12].mxu0 }
 0x10e   : > { %v577_v2 = vpop.f32.mrb[13].mxu0  ;;  %v4831_v5 = vadd.f32 %v3988_v0, %v4748_v22 }
 0x10f   : > { %v4827_v3 = vadd.f32 %v4748_v22, %v577_v2  ;;  %v3989_v4 = vpop.f32.mrb[14].mxu0  ;;  %4018 = vmatprep.mubr.msk.bf16.mxu1 %vm725_vm2, %v692_v63 }
 0x110   : > { %6446 = vst [vmem:[#allocation18_spill] sm:$0xff] %v4831_v5  ;;  %v4834_v6 = vadd.f32 %v3989_v4, %v4748_v22  ;;  %v580_v7 = vpop.f32.mrb[15].mxu0  ;;  %4019 = vmatmul.mubr.msk.bf16.gmra.mrb[8].mxu1 %vm725_vm2, %v693_v1  ;;  %v6351_v12 = vmax.f32 %v4831_v5, 0.0 }
 0x111   : > { %6445 = vst [vmem:[#allocation17_spill] sm:$0xff] %v4827_v3  ;;  %v4838_v8 = vadd.f32 %v4748_v22, %v580_v7  ;;  %v6353_v10 = vmax.f32 %v4827_v3, 0.0 }
 0x112   : > { %6447 = vst [vmem:[#allocation19_spill] sm:$0xff] %v4834_v6  ;;  %v6354_v9 = vmax.f32 %v4834_v6, 0.0 }
 0x113   : > { %6448 = vst [vmem:[#allocation20_spill] sm:$0xff] %v4838_v8  ;;  %v6352_v11 = vmax.f32 %v4838_v8, 0.0 }
 0x114   : > { %v695_v15 = vpack.c.bf16 %v6354_v9, %v6351_v12 }
 0x115   : > { %v694_v13 = vpack.c.bf16 %v6352_v11, %v6353_v10  ;;  %v3992_v14 = vpop.f32.mrb[16].mxu0 }
 0x116   : > { %v593_v16 = vpop.f32.mrb[17].mxu0  ;;  %v4857_v19 = vadd.f32 %v3992_v14, %v4748_v22 }
 0x117   : > { %v4853_v17 = vadd.f32 %v4748_v22, %v593_v16  ;;  %v3993_v18 = vpop.f32.mrb[18].mxu0  ;;  %4022 = vmatprep.mubr.msk.bf16.mxu1 %vm725_vm2, %v694_v13 }
 0x118   : > { %6450 = vst [vmem:[#allocation22_spill] sm:$0xff] %v4857_v19  ;;  %v4860_v20 = vadd.f32 %v3993_v18, %v4748_v22  ;;  %v596_v21 = vpop.f32.mrb[19].mxu0  ;;  %4023 = vmatmul.mubr.msk.bf16.gmra.mrb[12].mxu1 %vm725_vm2, %v695_v15  ;;  %v6347_v35 = vmax.f32 %v4857_v19, 0.0 }
 0x119   : > { %6449 = vst [vmem:[#allocation21_spill] sm:$0xff] %v4853_v17  ;;  %v4864_v23 = vadd.f32 %v4748_v22, %v596_v21  ;;  %v6349_v26 = vmax.f32 %v4853_v17, 0.0 }
 0x11a   : > { %6451 = vst [vmem:[#allocation23_spill] sm:$0xff] %v4860_v20  ;;  %v6350_v24 = vmax.f32 %v4860_v20, 0.0 }
 0x11b   : > { %6452 = vst [vmem:[#allocation24_spill] sm:$0xff] %v4864_v23  ;;  %v6348_v29 = vmax.f32 %v4864_v23, 0.0 }
 0x11c   : > { %v697_v38 = vpack.c.bf16 %v6350_v24, %v6347_v35 }
 0x11d   : > { %v696_v36 = vpack.c.bf16 %v6348_v29, %v6349_v26  ;;  %v3996_v37 = vpop.f32.mrb[20].mxu0 }
 0x11e   : > { %v4879_v40 = vadd.f32 %v3996_v37, %v4748_v22  ;;  %v609_v43 = vpop.f32.mrb[21].mxu0 }
 0x11f   : > { %v4882_v49 = vadd.f32 %v4748_v22, %v609_v43  ;;  %v3997_v50 = vpop.f32.mrb[22].mxu0  ;;  %4026 = vmatprep.mubr.msk.bf16.mxu1 %vm725_vm2, %v696_v36 }
 0x120   : > { %6453 = vst [vmem:[#allocation25_spill] sm:$0xff] %v4879_v40  ;;  %v6335_v51 = vmax.f32 %v4879_v40, 0.0  ;;  %v4887_v52 = vadd.f32 %v3997_v50, %v4748_v22  ;;  %v612_v54 = vpop.f32.mrb[23].mxu0  ;;  %4027 = vmatmul.mubr.msk.bf16.gmra.mrb[16].mxu1 %vm725_vm2, %v697_v38 }
 0x121   : > { %6454 = vst [vmem:[#allocation26_spill] sm:$0xff] %v4882_v49  ;;  %v6341_v57 = vmax.f32 %v4882_v49, 0.0  ;;  %v4892_v63 = vadd.f32 %v4748_v22, %v612_v54 }
 0x122   : > { %6455 = vst [vmem:[#allocation27_spill] sm:$0xff] %v4887_v52  ;;  %v6344_v0 = vmax.f32 %v4887_v52, 0.0 }
 0x123   : > { %6456 = vst [vmem:[#allocation28_spill] sm:$0xff] %v4892_v63  ;;  %v6340_v1 = vmax.f32 %v4892_v63, 0.0 }
 0x124   : > { %v699_v2 = vpack.c.bf16 %v6344_v0, %v6335_v51 }
 0x125   : > { %v698_v4 = vpack.c.bf16 %v6340_v1, %v6341_v57  ;;  %v4000_v7 = vpop.f32.mrb[24].mxu0 }
 0x126   : > { %v4905_v13 = vadd.f32 %v4000_v7, %v4748_v22  ;;  %v625_v14 = vpop.f32.mrb[25].mxu0 }
 0x127   : > { %v4908_v15 = vadd.f32 %v4748_v22, %v625_v14  ;;  %v4001_v16 = vpop.f32.mrb[26].mxu0  ;;  %4030 = vmatprep.mubr.msk.bf16.mxu1 %vm725_vm2, %v698_v4 }
 0x128   : > { %6457 = vst [vmem:[#allocation29_spill] sm:$0xff] %v4905_v13  ;;  %v6336_v18 = vmax.f32 %v4905_v13, 0.0  ;;  %v4913_v21 = vadd.f32 %v4001_v16, %v4748_v22  ;;  %v628_v36 = vpop.f32.mrb[27].mxu0  ;;  %4031 = vmatmul.mubr.msk.bf16.gmra.mrb[20].mxu1 %vm725_vm2, %v699_v2 }
 0x129   : > { %6458 = vst [vmem:[#allocation30_spill] sm:$0xff] %v4908_v15  ;;  %v6339_v37 = vmax.f32 %v4908_v15, 0.0  ;;  %v4918_v38 = vadd.f32 %v4748_v22, %v628_v36 }
 0x12a   : > { %6459 = vst [vmem:[#allocation31_spill] sm:$0xff] %v4913_v21  ;;  %v6337_v43 = vmax.f32 %v4913_v21, 0.0 }
 0x12b   : > { %6460 = vst [vmem:[#allocation32_spill] sm:$0xff] %v4918_v38  ;;  %v6338_v50 = vmax.f32 %v4918_v38, 0.0 }
 0x12c   : > { %v701_v54 = vpack.c.bf16 %v6337_v43, %v6336_v18 }
 0x12d   : > { %v700_v4 = vpack.c.bf16 %v6338_v50, %v6339_v37  ;;  %v4004_v2 = vpop.f32.mrb[28].mxu0 }
 0x12e   : > { %v4931_v7 = vadd.f32 %v4004_v2, %v4748_v22  ;;  %v641_v14 = vpop.f32.mrb[29].mxu0 }
 0x12f   : > { %v4934_v16 = vadd.f32 %v4748_v22, %v641_v14  ;;  %v4005_v36 = vpop.f32.mrb[30].mxu0  ;;  %4034 = vmatprep.mubr.msk.bf16.mxu1 %vm725_vm2, %v700_v4 }
 0x130   : > { %6461 = vst [vmem:[#allocation33_spill] sm:$0xff] %v4931_v7  ;;  %v6342_v51 = vmax.f32 %v4931_v7, 0.0  ;;  %v4939_v18 = vadd.f32 %v4005_v36, %v4748_v22  ;;  %v644_v43 = vpop.f32.mrb[31].mxu0  ;;  %4035 = vmatmul.mubr.msk.bf16.gmra.mrb[24].mxu1 %vm725_vm2, %v701_v54 }
 0x131   : > { %6462 = vst [vmem:[#allocation34_spill] sm:$0xff] %v4934_v16  ;;  %v6346_v50 = vmax.f32 %v4934_v16, 0.0  ;;  %v4944_v2 = vadd.f32 %v4748_v22, %v644_v43  ;;  %v4961_v43 = vld [vmem:[%s6333_s7 + $0x1] ss:$0 sm:$0xff] }
 0x132   : > { %6463 = vst [vmem:[#allocation35_spill] sm:$0xff] %v4939_v18  ;;  %v6343_v37 = vmax.f32 %v4939_v18, 0.0 }
 0x133   : > { %6464 = vst [vmem:[#allocation36_spill] sm:$0xff] %v4944_v2  ;;  %v6345_v14 = vmax.f32 %v4944_v2, 0.0 }
 0x134   : > { %v703_v4 = vpack.c.bf16 %v6343_v37, %v6342_v51 }
 0x135   : > { %v702_v36 = vpack.c.bf16 %v6345_v14, %v6346_v50 }
 0x137   : > { %4038 = vmatprep.mubr.msk.bf16.mxu1 %vm725_vm2, %v702_v36 }
 0x138   : > { %4039 = vmatmul.mubr.msk.bf16.gmra.mrb[28].mxu1 %vm725_vm2, %v703_v4 }
 0x1d3   : > { %v4012_v22 = vpop.f32.mrb[0].mxu1 }
 0x1d4   : > { %v808_v54 = vpop.f32.mrb[1].mxu1  ;;  %v817_v57 = vadd.f32 %v4012_v22, %v4961_v43 }
 0x1d5   : > { %v4013_v1 = vpop.f32.mrb[2].mxu1  ;;  %v809_v0 = vadd.f32 %v4961_v43, %v808_v54 }
 0x1d6   : > { %v820_v51 = vadd.f32 %v4013_v1, %v4961_v43  ;;  %v811_v37 = vpop.f32.mrb[3].mxu1 }
 0x1d7   : > { %v812_v14 = vadd.f32 %v4961_v43, %v811_v37 }
 0x1d8   : > { %v4967_v36 = vpack.c.bf16 %v820_v51, %v817_v57 }
 0x1d9   : > { %v4969_v4 = vpack.c.bf16 %v812_v14, %v809_v0 }
 0x1da   : > { %969 = vrot.lane.b32.xlu1 %v4967_v36, %s4593_s23 }
 0x1db   : > { %v4016_v50 = vpop.f32.mrb[4].mxu1  ;;  %967 = vrot.lane.b32.xlu0 %v4969_v4, %s4593_s23  ;;  %3750 = vmatprep.mubr.msk.bf16.mxu1 %vm725_vm2, %v4969_v4 }
 0x1dc   : > { %v824_v1 = vpop.f32.mrb[5].mxu1  ;;  %v833_v54 = vadd.f32 %v4016_v50, %v4961_v43 }
 0x1dd   : > { %v4017_v22 = vpop.f32.mrb[6].mxu1  ;;  %v825_v0 = vadd.f32 %v4961_v43, %v824_v1 }
 0x1de   : > { %v836_v51 = vadd.f32 %v4017_v22, %v4961_v43  ;;  %v827_v57 = vpop.f32.mrb[7].mxu1 }
 0x1df   : > { %v828_v37 = vadd.f32 %v4961_v43, %v827_v57 }
 0x1e0   : > { %v4981_v14 = vpack.c.bf16 %v836_v51, %v833_v54 }
 0x1e1   : > { %v4983_v35 = vpack.c.bf16 %v828_v37, %v825_v0 }
 0x1e3   : > { %v4020_v29 = vpop.f32.mrb[8].mxu1 }
 0x1e4   : > { %v840_v26 = vpop.f32.mrb[9].mxu1  ;;  %v849_v12 = vadd.f32 %v4020_v29, %v4961_v43 }
 0x1e5   : > { %v4021_v24 = vpop.f32.mrb[10].mxu1  ;;  %v841_v50 = vadd.f32 %v4961_v43, %v840_v26 }
 0x1e6   : > { %v852_v11 = vadd.f32 %v4021_v24, %v4961_v43  ;;  %v843_v10 = vpop.f32.mrb[11].mxu1 }
 0x1e7   : > { %v844_v22 = vadd.f32 %v4961_v43, %v843_v10 }
 0x1e8   : > { %v4989_v9 = vpack.c.bf16 %v852_v11, %v849_v12 }
 0x1e9   : > { %v4991_v1 = vpack.c.bf16 %v844_v22, %v841_v50 }
 0x1eb   : > { %v4024_v54 = vpop.f32.mrb[12].mxu1 }
 0x1ec   : > { %v856_v51 = vpop.f32.mrb[13].mxu1  ;;  %v865_v0 = vadd.f32 %v4024_v54, %v4961_v43 }
 0x1ed   : > { %v4025_v57 = vpop.f32.mrb[14].mxu1  ;;  %v857_v29 = vadd.f32 %v4961_v43, %v856_v51 }
 0x1ee   : > { %v868_v37 = vadd.f32 %v4025_v57, %v4961_v43  ;;  %v859_v62 = vpop.f32.mrb[15].mxu1 }
 0x1ef   : > { %v860_v24 = vadd.f32 %v4961_v43, %v859_v62 }
 0x1f0   : > { %v4997_v61 = vpack.c.bf16 %v868_v37, %v865_v0 }
 0x1f1   : > { %v4999_v26 = vpack.c.bf16 %v860_v24, %v857_v29 }
 0x1f3   : > { %v4028_v10 = vpop.f32.mrb[16].mxu1 }
 0x1f4   : > { %v872_v11 = vpop.f32.mrb[17].mxu1  ;;  %v881_v50 = vadd.f32 %v4028_v10, %v4961_v43 }
 0x1f5   : > { %v4029_v12 = vpop.f32.mrb[18].mxu1  ;;  %v873_v54 = vadd.f32 %v4961_v43, %v872_v11 }
 0x1f6   : > { %v884_v22 = vadd.f32 %v4029_v12, %v4961_v43  ;;  %v875_v60 = vpop.f32.mrb[19].mxu1 }
 0x1f7   : > { %v876_v57 = vadd.f32 %v4961_v43, %v875_v60 }
 0x1f8   : > { %v5005_v59 = vpack.c.bf16 %v884_v22, %v881_v50 }
 0x1f9   : > { %v5007_v51 = vpack.c.bf16 %v876_v57, %v873_v54 }
 0x1fa   : > { %985 = vrot.lane.b32.xlu1 %v5005_v59, %s4593_s23 }
 0x1fb   : > { %v4032_v62 = vpop.f32.mrb[20].mxu1  ;;  %983 = vrot.lane.b32.xlu0 %v5007_v51, %s4593_s23 }
 0x1fc   : > { %v897_v0 = vadd.f32 %v4032_v62, %v4961_v43  ;;  %v888_v37 = vpop.f32.mrb[21].mxu1 }
 0x1fd   : > { %v889_v29 = vadd.f32 %v4961_v43, %v888_v37  ;;  %v4033_v24 = vpop.f32.mrb[22].mxu1 }
 0x1fe   : > { %v900_v10 = vadd.f32 %v4033_v24, %v4961_v43  ;;  %v891_v60 = vpop.f32.mrb[23].mxu1 }
 0x1ff   : > { %v892_v11 = vadd.f32 %v4961_v43, %v891_v60  ;;  %971 = vrot.lane.b32.xlu0 %v4983_v35, %s4593_s23 }
 0x200   : > { %v5019_v12 = vpack.c.bf16 %v900_v10, %v897_v0 }
 0x201   : > { %v5021_v50 = vpack.c.bf16 %v892_v11, %v889_v29 }
 0x203   : > { %v4036_v22 = vpop.f32.mrb[24].mxu1  ;;  %987 = vrot.lane.b32.xlu1 %v5021_v50, %s4593_s23  ;;  %973 = vrot.lane.b32.xlu0 %v4981_v14, %s4593_s23 }
 0x204   : > { %v913_v54 = vadd.f32 %v4036_v22, %v4961_v43  ;;  %v904_v57 = vpop.f32.mrb[25].mxu1 }
 0x205   : > { %v905_v62 = vadd.f32 %v4961_v43, %v904_v57  ;;  %v4037_v37 = vpop.f32.mrb[26].mxu1 }
 0x206   : > { %v916_v24 = vadd.f32 %v4037_v37, %v4961_v43  ;;  %v907_v60 = vpop.f32.mrb[27].mxu1 }
 0x207   : > { %v908_v0 = vadd.f32 %v4961_v43, %v907_v60  ;;  %989 = vrot.lane.b32.xlu1 %v5019_v12, %s4593_s23  ;;  %975 = vrot.lane.b32.xlu0 %v4991_v1, %s4593_s23 }
 0x208   : > { %v5035_v29 = vpack.c.bf16 %v916_v24, %v913_v54 }
 0x209   : > { %v5037_v10 = vpack.c.bf16 %v908_v0, %v905_v62 }
 0x20b   : > { %v4040_v11 = vpop.f32.mrb[28].mxu1  ;;  %991 = vrot.lane.b32.xlu1 %v5037_v10, %s4593_s23  ;;  %977 = vrot.lane.b32.xlu0 %v4989_v9, %s4593_s23 }
 0x20c   : > { %v929_v22 = vadd.f32 %v4040_v11, %v4961_v43  ;;  %v920_v57 = vpop.f32.mrb[29].mxu1 }
 0x20d   : > { %v921_v37 = vadd.f32 %v4961_v43, %v920_v57  ;;  %v4041_v60 = vpop.f32.mrb[30].mxu1 }
 0x20e   : > { %v932_v48 = vadd.f32 %v4041_v60, %v4961_v43  ;;  %v923_v47 = vpop.f32.mrb[31].mxu1 }
 0x20f   : > { %v924_v54 = vadd.f32 %v4961_v43, %v923_v47  ;;  %993 = vrot.lane.b32.xlu1 %v5035_v29, %s4593_s23  ;;  %979 = vrot.lane.b32.xlu0 %v4999_v26, %s4593_s23 }
 0x210   : > { %v5051_v62 = vpack.c.bf16 %v932_v48, %v929_v22 }
 0x211   : > { %v5053_v24 = vpack.c.bf16 %v924_v54, %v921_v37 }
 0x213   : > { %995 = vrot.lane.b32.xlu1 %v5053_v24, %s4593_s23  ;;  %981 = vrot.lane.b32.xlu0 %v4997_v61, %s4593_s23 }
 0x217   : > { %997 = vrot.lane.b32.xlu1 %v5051_v62, %s4593_s23  ;;  %1864 = vrot.lane.b32.xlu0 %v4969_v4, %s4594_s24  ;;  %s4595_s23 = smov [#allocation2]  }
 0x21b   : > { %1880 = vrot.lane.b32.xlu1 %v5007_v51, %s4594_s24  ;;  %1866 = vrot.lane.b32.xlu0 %v4967_v36, %s4594_s24 }
 0x21f   : > { %1882 = vrot.lane.b32.xlu1 %v5005_v59, %s4594_s24  ;;  %1886 = vrot.lane.b32.xlu0 %v5019_v12, %s4594_s24 }
 0x223   : > { %1884 = vrot.lane.b32.xlu1 %v5021_v50, %s4594_s24  ;;  %1890 = vrot.lane.b32.xlu0 %v5035_v29, %s4594_s24 }
 0x227   : > { %1868 = vrot.lane.b32.xlu1 %v4983_v35, %s4594_s24 }
 0x22b   : > { %1870 = vrot.lane.b32.xlu1 %v4981_v14, %s4594_s24 }
 0x22f   : > { %1888 = vrot.lane.b32.xlu1 %v5037_v10, %s4594_s24 }
 0x233   : > { %1872 = vrot.lane.b32.xlu1 %v4991_v1, %s4594_s24 }
 0x237   : > { %1874 = vrot.lane.b32.xlu1 %v4989_v9, %s4594_s24 }
 0x23b   : > { %1892 = vrot.lane.b32.xlu1 %v5053_v24, %s4594_s24 }
 0x24c   : > { %v970_v48 = vpop.permute.xlu1 %969 }
 0x24d   : > { %v968_v47 = vpop.permute.xlu0 %967  ;;  %v1051_v60 = vsel %vm725_vm2, %v970_v48, 0 }
 0x24e   : > { %v1048_v0 = vsel %vm725_vm2, %v968_v47, 0 }
 0x26c   : > { %v986_v11 = vpop.permute.xlu1 %985 }
 0x26d   : > { %v984_v43 = vpop.permute.xlu0 %983 }
 0x26e   : > { %4191 = vmatprep.subr.msk.bf16.mxu1 %vm725_vm2, %v984_v43 }
 0x26f   : > { %3735 = vmatpush3.bf16.xpose.msra.mxu1 %v1048_v0 }
 0x270   : > { %4192 = vmatprep.subr.msk.bf16.mxu1 %vm725_vm2, %v986_v11 }
 0x271   : > { %v972_v22 = vpop.permute.xlu0 %971 }
 0x272   : > { %v1054_v47 = vsel %vm725_vm2, %v972_v22, 0 }
 0x275   : > { %v988_v57 = vpop.permute.xlu1 %987  ;;  %v974_v37 = vpop.permute.xlu0 %973 }
 0x276   : > { %v1057_v33 = vsel %vm725_vm2, %v974_v37, 0 }
 0x277   : > { %3737 = vmatpush3.bf16.xpose.msra.mxu1 %v1051_v60 }
 0x278   : > { %4193 = vmatprep.subr.msk.bf16.mxu1 %vm725_vm2, %v988_v57 }
 0x279   : > { %v990_v54 = vpop.permute.xlu1 %989  ;;  %v976_v46 = vpop.permute.xlu0 %975 }
 0x27a   : > { %v1060_v31 = vsel %vm725_vm2, %v976_v46, 0 }
 0x27d   : > { %v992_v45 = vpop.permute.xlu1 %991  ;;  %v978_v34 = vpop.permute.xlu0 %977 }
 0x27e   : > { %v1063_v37 = vsel %vm725_vm2, %v978_v34, 0 }
 0x27f   : > { %3739 = vmatpush3.bf16.xpose.msra.mxu1 %v1054_v47 }
 0x280   : > { %4194 = vmatprep.subr.msk.bf16.mxu1 %vm725_vm2, %v990_v54 }
 0x281   : > { %v994_v43 = vpop.permute.xlu1 %993  ;;  %v980_v0 = vpop.permute.xlu0 %979 }
 0x285   : > { %v996_v11 = vpop.permute.xlu1 %995  ;;  %v982_v32 = vpop.permute.xlu0 %981 }
 0x286   : > { %v1069_v34 = vsel %vm725_vm2, %v982_v32, 0 }
 0x287   : > { %3741 = vmatpush3.bf16.xpose.msra.mxu1 %v1057_v33 }
 0x288   : > { %4195 = vmatprep.subr.msk.bf16.mxu1 %vm725_vm2, %v992_v45 }
 0x289   : > { %v998_v48 = vpop.permute.xlu1 %997  ;;  %v1865_v57 = vpop.permute.xlu0 %1864 }
 0x28d   : > { %v1881_v60 = vpop.permute.xlu1 %1880  ;;  %v1867_v54 = vpop.permute.xlu0 %1866 }
 0x28e   : > { %3782 = vmatprep.subr.bf16.mxu0 %v1881_v60 }
 0x28f   : > { %3743 = vmatpush3.bf16.xpose.msra.mxu1 %v1060_v31  ;;  %3783 = vmatpush3.bf16.msra.mxu0 %v1865_v57  ;;  %v1066_v31 = vsel %vm725_vm2, %v980_v0, 0 }
 0x290   : > { %4196 = vmatprep.subr.msk.bf16.mxu1 %vm725_vm2, %v994_v43 }
 0x291   : > { %v1883_v22 = vpop.permute.xlu1 %1882  ;;  %v1887_v45 = vpop.permute.xlu0 %1886 }
 0x292   : > { %3784 = vmatprep.subr.bf16.mxu0 %v1883_v22 }
 0x293   : > { %3785 = vmatpush3.bf16.msra.mxu0 %v1867_v54 }
 0x295   : > { %v1885_v47 = vpop.permute.xlu1 %1884  ;;  %v1891_v60 = vpop.permute.xlu0 %1890 }
 0x296   : > { %3786 = vmatprep.subr.bf16.mxu0 %v1885_v47 }
 0x297   : > { %3745 = vmatpush3.bf16.xpose.msra.mxu1 %v1063_v37 }
 0x298   : > { %4197 = vmatprep.subr.msk.bf16.mxu1 %vm725_vm2, %v996_v11 }
 0x299   : > { %v1869_v33 = vpop.permute.xlu1 %1868 }
 0x29a   : > { %3787 = vmatpush3.bf16.msra.mxu0 %v1869_v33 }
 0x29b   : > { %3788 = vmatprep.subr.bf16.mxu0 %v1887_v45 }
 0x29d   : > { %v1871_v46 = vpop.permute.xlu1 %1870 }
 0x29e   : > { %3789 = vmatpush3.bf16.msra.mxu0 %v1871_v46 }
 0x29f   : > { %3747 = vmatpush3.bf16.xpose.msra.mxu1 %v1066_v31 }
 0x2a0   : > { %4198 = vmatprep.subr.msk.bf16.mxu1 %vm725_vm2, %v998_v48 }
 0x2a1   : > { %v1889_v43 = vpop.permute.xlu1 %1888 }
 0x2a2   : > { %3790 = vmatprep.subr.bf16.mxu0 %v1889_v43 }
 0x2a5   : > { %v1873_v57 = vpop.permute.xlu1 %1872 }
 0x2a6   : > { %3791 = vmatpush3.bf16.msra.mxu0 %v1873_v57 }
 0x2a7   : > { %3749 = vmatpush3.bf16.xpose.msra.mxu1 %v1069_v34  ;;  %3792 = vmatprep.subr.bf16.mxu0 %v1891_v60 }
 0x2a9   : > { %v1875_v11 = vpop.permute.xlu1 %1874 }
 0x2aa   : > { %3793 = vmatpush3.bf16.msra.mxu0 %v1875_v11 }
 0x2ad   : > { %v1893_v22 = vpop.permute.xlu1 %1892 }
 0x2ae   : > { %3751 = vmatmul.mubr.msk.bf16.vlgmr.msra.gmra.mrb[32].mxu1 %vm725_vm2, %v4969_v4  ;;  %3794 = vmatprep.subr.bf16.mxu0 %v1893_v22 }
 0x2af   : > { %3752 = vmatprep.mubr.msk.bf16.mxu1 %vm725_vm2, %v4967_v36 }
 0x2b6   : > { %3753 = vmatmul.mubr.msk.bf16.gmra.mrb[36].mxu1 %vm725_vm2, %v4967_v36 }
 0x2b7   : > { %3754 = vmatprep.mubr.msk.bf16.mxu1 %vm725_vm2, %v4983_v35 }
 0x2be   : > { %3755 = vmatmul.mubr.msk.bf16.gmra.mrb[40].mxu1 %vm725_vm2, %v4983_v35 }
 0x2bf   : > { %3756 = vmatprep.mubr.msk.bf16.mxu1 %vm725_vm2, %v4981_v14 }
 0x2c6   : > { %3757 = vmatmul.mubr.msk.bf16.gmra.mrb[44].mxu1 %vm725_vm2, %v4981_v14 }
 0x2c7   : > { %3758 = vmatprep.mubr.msk.bf16.mxu1 %vm725_vm2, %v4991_v1 }
 0x2ce   : > { %3759 = vmatmul.mubr.msk.bf16.gmra.mrb[48].mxu1 %vm725_vm2, %v4991_v1 }
 0x2cf   : > { %3760 = vmatprep.mubr.msk.bf16.mxu1 %vm725_vm2, %v4989_v9 }
 0x2d6   : > { %3761 = vmatmul.mubr.msk.bf16.gmra.mrb[52].mxu1 %vm725_vm2, %v4989_v9 }
 0x2d7   : > { %3762 = vmatprep.mubr.msk.bf16.mxu1 %vm725_vm2, %v4999_v26 }
 0x2de   : > { %3763 = vmatmul.mubr.msk.bf16.gmra.mrb[56].mxu1 %vm725_vm2, %v4999_v26 }
 0x2df   : > { %3764 = vmatprep.mubr.msk.bf16.mxu1 %vm725_vm2, %v4997_v61 }
 0x2e6   : > { %3765 = vmatmul.mubr.msk.bf16.gmra.mrb[60].mxu1 %vm725_vm2, %v4997_v61 }
 0x2e7   : > { %3766 = vmatprep.mubr.msk.bf16.mxu1 %vm725_vm2, %v5007_v51 }
 0x2ee   : > { %3767 = vmatmul.mubr.msk.bf16.gmra.mrb[64].mxu1 %vm725_vm2, %v5007_v51 }
 0x2ef   : > { %3768 = vmatprep.mubr.msk.bf16.mxu1 %vm725_vm2, %v5005_v59 }
 0x2f6   : > { %3769 = vmatmul.mubr.msk.bf16.gmra.mrb[68].mxu1 %vm725_vm2, %v5005_v59 }
 0x2f7   : > { %3770 = vmatprep.mubr.msk.bf16.mxu1 %vm725_vm2, %v5021_v50 }
 0x2fe   : > { %3771 = vmatmul.mubr.msk.bf16.gmra.mrb[72].mxu1 %vm725_vm2, %v5021_v50 }
 0x2ff   : > { %3772 = vmatprep.mubr.msk.bf16.mxu1 %vm725_vm2, %v5019_v12 }
 0x306   : > { %3773 = vmatmul.mubr.msk.bf16.gmra.mrb[76].mxu1 %vm725_vm2, %v5019_v12 }
 0x307   : > { %3774 = vmatprep.mubr.msk.bf16.mxu1 %vm725_vm2, %v5037_v10 }
 0x30e   : > { %3775 = vmatmul.mubr.msk.bf16.gmra.mrb[80].mxu1 %vm725_vm2, %v5037_v10 }
 0x30f   : > { %3776 = vmatprep.mubr.msk.bf16.mxu1 %vm725_vm2, %v5035_v29 }
 0x316   : > { %3777 = vmatmul.mubr.msk.bf16.gmra.mrb[84].mxu1 %vm725_vm2, %v5035_v29 }
 0x317   : > { %3778 = vmatprep.mubr.msk.bf16.mxu1 %vm725_vm2, %v5053_v24 }
 0x31e   : > { %3779 = vmatmul.mubr.msk.bf16.gmra.mrb[88].mxu1 %vm725_vm2, %v5053_v24 }
 0x31f   : > { %3780 = vmatprep.mubr.msk.bf16.mxu1 %vm725_vm2, %v5051_v62 }
 0x326   : > { %3781 = vmatmul.mubr.msk.bf16.gmra.mrb[92].mxu1 %vm725_vm2, %v5051_v62 }
 0x381   : > { %v1129_v32 = vpop.f32.mrb[32].mxu1 }
 0x382   : > { %v5165_v59 = vmul.f32 0.17677669, %v1129_v32  ;;  %v1131_v9 = vpop.f32.mrb[33].mxu1 }
 0x383   : > { %v5167_v35 = vmul.f32 0.17677669, %v1131_v9  ;;  %v1133_v36 = vpop.f32.mrb[34].mxu1 }
 0x384   : > { %v5169_v4 = vmul.f32 0.17677669, %v1133_v36  ;;  %v1135_v14 = vpop.f32.mrb[35].mxu1 }
 0x385   : > { %v5171_v1 = vmul.f32 0.17677669, %v1135_v14  ;;  %v1352_v51 = vmax.f32 %v5165_v59, %v5167_v35 }
 0x387   : > { %1353 = vmax.xlane.f32.xlu0 %v1352_v51  ;;  %v1355_v12 = vmax.f32 %v5169_v4, %v5171_v1 }
 0x389   : > { %1356 = vmax.xlane.f32.xlu1 %v1355_v12  ;;  %v1139_v50 = vpop.f32.mrb[36].mxu1 }
 0x38a   : > { %v5177_v29 = vmul.f32 0.17677669, %v1139_v50  ;;  %v1141_v10 = vpop.f32.mrb[37].mxu1 }
 0x38b   : > { %v5179_v24 = vmul.f32 0.17677669, %v1141_v10  ;;  %v1143_v0 = vpop.f32.mrb[38].mxu1 }
 0x38c   : > { %v1145_v48 = vpop.f32.mrb[39].mxu1  ;;  %v5181_v54 = vmul.f32 0.17677669, %v1143_v0 }
 0x38d   : > { %v5183_v47 = vmul.f32 0.17677669, %v1145_v48  ;;  %v1358_v37 = vmax.f32 %v5177_v29, %v5179_v24 }
 0x38f   : > { %1359 = vmax.xlane.f32.xlu0 %v1358_v37  ;;  %v1361_v45 = vmax.f32 %v5181_v54, %v5183_v47 }
 0x391   : > { %v1149_v33 = vpop.f32.mrb[40].mxu1 }
 0x392   : > { %v1151_v46 = vpop.f32.mrb[41].mxu1 }
 0x393   : > { %1362 = vmax.xlane.f32.xlu0 %v1361_v45  ;;  %v1153_v31 = vpop.f32.mrb[42].mxu1  ;;  %v5223_v13 = vmul.f32 0.17677669, %v1151_v46 }
 0x394   : > { %v5189_v43 = vmul.f32 0.17677669, %v1153_v31  ;;  %v1155_v57 = vpop.f32.mrb[43].mxu1 }
 0x395   : > { %v5191_v34 = vmul.f32 0.17677669, %v1155_v57 }
 0x397   : > { %v1367_v60 = vmax.f32 %v5189_v43, %v5191_v34 }
 0x399   : > { %1368 = vmax.xlane.f32.xlu0 %v1367_v60  ;;  %v1159_v11 = vpop.f32.mrb[44].mxu1 }
 0x39a   : > { %1876 = vrot.lane.b32.xlu1 %v4999_v26, %s4594_s24  ;;  %v1161_v22 = vpop.f32.mrb[45].mxu1  ;;  %v5225_v15 = vmul.f32 0.17677669, %v1159_v11 }
 0x39b   : > { %v1163_v32 = vpop.f32.mrb[46].mxu1  ;;  %v5227_v21 = vmul.f32 0.17677669, %v1161_v22 }
 0x39c   : > { %v5197_v9 = vmul.f32 0.17677669, %v1163_v32  ;;  %v1165_v36 = vpop.f32.mrb[47].mxu1 }
 0x39d   : > { %v5199_v14 = vmul.f32 0.17677669, %v1165_v36  ;;  %v1370_v11 = vmax.f32 %v5225_v15, %v5227_v21 }
 0x39f   : > { %v1373_v51 = vmax.f32 %v5197_v9, %v5199_v14 }
 0x3a1   : > { %1374 = vmax.xlane.f32.xlu0 %v1373_v51  ;;  %v1169_v12 = vpop.f32.mrb[48].mxu1 }
 0x3a2   : > { %v1171_v50 = vpop.f32.mrb[49].mxu1  ;;  %v5237_v46 = vmul.f32 0.17677669, %v1169_v12 }
 0x3a3   : > { %v1173_v10 = vpop.f32.mrb[50].mxu1 }
 0x3a4   : > { %v5203_v0 = vmul.f32 0.17677669, %v1173_v10  ;;  %v1175_v48 = vpop.f32.mrb[51].mxu1 }
 0x3a5   : > { %v5205_v37 = vmul.f32 0.17677669, %v1175_v48 }
 0x3a7   : > { %v1379_v26 = vmax.f32 %v5203_v0, %v5205_v37 }
 0x3a9   : > { %1380 = vmax.xlane.f32.xlu0 %v1379_v26  ;;  %v1179_v45 = vpop.f32.mrb[52].mxu1 }
 0x3aa   : > { %v1181_v31 = vpop.f32.mrb[53].mxu1  ;;  %v5243_v49 = vmul.f32 0.17677669, %v1179_v45 }
 0x3ab   : > { %v1183_v57 = vpop.f32.mrb[54].mxu1 }
 0x3ac   : > { %v5209_v60 = vmul.f32 0.17677669, %v1183_v57  ;;  %v1185_v32 = vpop.f32.mrb[55].mxu1  ;;  %v5221_v57 = vmul.f32 0.17677669, %v1149_v33 }
 0x3ad   : > { %v5211_v36 = vmul.f32 0.17677669, %v1185_v32 }
 0x3af   : > { %v1385_v51 = vmax.f32 %v5209_v60, %v5211_v36 }
 0x3b1   : > { %1386 = vmax.xlane.f32.xlu0 %v1385_v51  ;;  %v1189_v10 = vpop.f32.mrb[56].mxu1 }
 0x3b2   : > { %v1191_v7 = vpop.f32.mrb[57].mxu1  ;;  %v5255_v23 = vmul.f32 0.17677669, %v1189_v10 }
 0x3b3   : > { %v1193_v48 = vpop.f32.mrb[58].mxu1 }
 0x3b4   : > { %v5215_v2 = vmul.f32 0.17677669, %v1193_v48  ;;  %v1195_v16 = vpop.f32.mrb[59].mxu1 }
 0x3b5   : > { %v5217_v18 = vmul.f32 0.17677669, %v1195_v16  ;;  %v1364_v16 = vmax.f32 %v5221_v57, %v5223_v13 }
 0x3b7   : > { %v1391_v26 = vmax.f32 %v5215_v2, %v5217_v18 }
 0x3b9   : > { %1392 = vmax.xlane.f32.xlu0 %v1391_v26  ;;  %v1199_v32 = vpop.f32.mrb[60].mxu1  ;;  %v5239_v26 = vmul.f32 0.17677669, %v1171_v50 }
 0x3ba   : > { %v1201_v38 = vpop.f32.mrb[61].mxu1  ;;  %v5261_v17 = vmul.f32 0.17677669, %v1199_v32 }
 0x3bb   : > { %v1203_v51 = vpop.f32.mrb[62].mxu1  ;;  %v1376_v12 = vmax.f32 %v5237_v46, %v5239_v26 }
 0x3bc   : > { %v5229_v48 = vmul.f32 0.17677669, %v1203_v51  ;;  %v1205_v40 = vpop.f32.mrb[63].mxu1 }
 0x3bd   : > { %v5233_v63 = vmul.f32 0.17677669, %v1205_v40  ;;  %v5245_v40 = vmul.f32 0.17677669, %v1181_v31 }
 0x3be   : > { %1365 = vmax.xlane.f32.xlu1 %v1364_v16 }
 0x3bf   : > { %v1397_v33 = vmax.f32 %v5229_v48, %v5233_v63  ;;  %v1382_v45 = vmax.f32 %v5243_v49, %v5245_v40 }
 0x3c1   : > { %1398 = vmax.xlane.f32.xlu0 %v1397_v33  ;;  %v1209_v22 = vpop.f32.mrb[64].mxu1 }
 0x3c2   : > { %1371 = vmax.xlane.f32.xlu1 %v1370_v11  ;;  %v1211_v51 = vpop.f32.mrb[65].mxu1  ;;  %v5257_v11 = vmul.f32 0.17677669, %v1191_v7  ;;  %v5273_v8 = vmul.f32 0.17677669, %v1209_v22 }
 0x3c3   : > { %v1213_v52 = vpop.f32.mrb[66].mxu1 }
 0x3c4   : > { %v5247_v16 = vmul.f32 0.17677669, %v1213_v52  ;;  %v1215_v19 = vpop.f32.mrb[67].mxu1  ;;  %v1388_v10 = vmax.f32 %v5255_v23, %v5257_v11 }
 0x3c5   : > { %v5251_v50 = vmul.f32 0.17677669, %v1215_v19  ;;  %v5263_v19 = vmul.f32 0.17677669, %v1201_v38 }
 0x3c6   : > { %1377 = vmax.xlane.f32.xlu1 %v1376_v12 }
 0x3c7   : > { %6465 = vst [vmem:[#allocation37_spill] sm:$0xff] %v5251_v50  ;;  %v1403_v33 = vmax.f32 %v5247_v16, %v5251_v50  ;;  %v1394_v38 = vmax.f32 %v5261_v17, %v5263_v19 }
 0x3c9   : > { %1404 = vmax.xlane.f32.xlu0 %v1403_v33  ;;  %v1219_v52 = vpop.f32.mrb[68].mxu1 }
 0x3ca   : > { %1383 = vmax.xlane.f32.xlu1 %v1382_v45  ;;  %v1221_v31 = vpop.f32.mrb[69].mxu1  ;;  %v5275_v45 = vmul.f32 0.17677669, %v1211_v51  ;;  %v5279_v3 = vmul.f32 0.17677669, %v1219_v52 }
 0x3cb   : > { %v1223_v20 = vpop.f32.mrb[70].mxu1 }
 0x3cc   : > { %v5265_v12 = vmul.f32 0.17677669, %v1223_v20  ;;  %v1225_v5 = vpop.f32.mrb[71].mxu1  ;;  %v1400_v22 = vmax.f32 %v5273_v8, %v5275_v45 }
 0x3cd   : > { %v5269_v7 = vmul.f32 0.17677669, %v1225_v5  ;;  %v5281_v5 = vmul.f32 0.17677669, %v1221_v31 }
 0x3ce   : > { %6466 = vst [vmem:[#allocation38_spill] sm:$0xff] %v5265_v12  ;;  %1389 = vmax.xlane.f32.xlu1 %v1388_v10 }
 0x3cf   : > { %6467 = vst [vmem:[#allocation39_spill] sm:$0xff] %v5269_v7  ;;  %v1409_v33 = vmax.f32 %v5265_v12, %v5269_v7  ;;  %v1406_v52 = vmax.f32 %v5279_v3, %v5281_v5 }
 0x3d1   : > { %1410 = vmax.xlane.f32.xlu0 %v1409_v33  ;;  %v1229_v20 = vpop.f32.mrb[72].mxu1 }
 0x3d2   : > { %1395 = vmax.xlane.f32.xlu1 %v1394_v38  ;;  %v1231_v32 = vpop.f32.mrb[73].mxu1  ;;  %v5291_v58 = vmul.f32 0.17677669, %v1229_v20 }
 0x3d3   : > { %v1233_v6 = vpop.f32.mrb[74].mxu1  ;;  %v5293_v38 = vmul.f32 0.17677669, %v1231_v32 }
 0x3d4   : > { %v5283_v10 = vmul.f32 0.17677669, %v1233_v6  ;;  %v1235_v55 = vpop.f32.mrb[75].mxu1 }
 0x3d5   : > { %v5287_v51 = vmul.f32 0.17677669, %v1235_v55  ;;  %v1412_v41 = vmax.f32 %v5291_v58, %v5293_v38 }
 0x3d6   : > { %6468 = vst [vmem:[#allocation40_spill] sm:$0xff] %v5283_v10  ;;  %1401 = vmax.xlane.f32.xlu1 %v1400_v22 }
 0x3d7   : > { %6469 = vst [vmem:[#allocation41_spill] sm:$0xff] %v5287_v51  ;;  %v1415_v33 = vmax.f32 %v5283_v10, %v5287_v51 }
 0x3d9   : > { %1416 = vmax.xlane.f32.xlu0 %v1415_v33  ;;  %v1239_v6 = vpop.f32.mrb[76].mxu1 }
 0x3da   : > { %v5297_v31 = vmul.f32 0.17677669, %v1239_v6  ;;  %1407 = vmax.xlane.f32.xlu1 %v1406_v52  ;;  %v1241_v53 = vpop.f32.mrb[77].mxu1 }
 0x3db   : > { %v5299_v56 = vmul.f32 0.17677669, %v1241_v53  ;;  %v1243_v55 = vpop.f32.mrb[78].mxu1 }
 0x3dc   : > { %v1245_v22 = vpop.f32.mrb[79].mxu1  ;;  %v5303_v20 = vmul.f32 0.17677669, %v1243_v55 }
 0x3dd   : > { %v5305_v32 = vmul.f32 0.17677669, %v1245_v22  ;;  %v1418_v44 = vmax.f32 %v5297_v31, %v5299_v56 }
 0x3de   : > { %6470 = vst [vmem:[#allocation42_spill] sm:$0xff] %v5303_v20  ;;  %1413 = vmax.xlane.f32.xlu1 %v1412_v41 }
 0x3df   : > { %6471 = vst [vmem:[#allocation43_spill] sm:$0xff] %v5305_v32  ;;  %1419 = vmax.xlane.f32.xlu0 %v1418_v44  ;;  %v1421_v52 = vmax.f32 %v5303_v20, %v5305_v32 }
 0x3e1   : > { %v1249_v33 = vpop.f32.mrb[80].mxu1 }
 0x3e2   : > { %v5311_v53 = vmul.f32 0.17677669, %v1249_v33  ;;  %v1251_v6 = vpop.f32.mrb[81].mxu1 }
 0x3e3   : > { %v5313_v39 = vmul.f32 0.17677669, %v1251_v6  ;;  %1422 = vmax.xlane.f32.xlu0 %v1421_v52  ;;  %v1253_v42 = vpop.f32.mrb[82].mxu1 }
 0x3e4   : > { %v5315_v55 = vmul.f32 0.17677669, %v1253_v42  ;;  %v1255_v22 = vpop.f32.mrb[83].mxu1 }
 0x3e5   : > { %v5317_v27 = vmul.f32 0.17677669, %v1255_v22  ;;  %v1424_v41 = vmax.f32 %v5311_v53, %v5313_v39 }
 0x3e6   : > { %6472 = vst [vmem:[#allocation44_spill] sm:$0xff] %v5315_v55 }
 0x3e7   : > { %6473 = vst [vmem:[#allocation45_spill] sm:$0xff] %v5317_v27  ;;  %1425 = vmax.xlane.f32.xlu1 %v1424_v41  ;;  %v1427_v44 = vmax.f32 %v5315_v55, %v5317_v27 }
 0x3e9   : > { %1428 = vmax.xlane.f32.xlu0 %v1427_v44  ;;  %v1259_v33 = vpop.f32.mrb[84].mxu1 }
 0x3ea   : > { %v5323_v30 = vmul.f32 0.17677669, %v1259_v33  ;;  %v1261_v6 = vpop.f32.mrb[85].mxu1 }
 0x3eb   : > { %v5325_v25 = vmul.f32 0.17677669, %v1261_v6  ;;  %v1263_v52 = vpop.f32.mrb[86].mxu1 }
 0x3ec   : > { %v5327_v42 = vmul.f32 0.17677669, %v1263_v52  ;;  %v1265_v28 = vpop.f32.mrb[87].mxu1 }
 0x3ed   : > { %v5329_v22 = vmul.f32 0.17677669, %v1265_v28  ;;  %v1430_v32 = vmax.f32 %v5323_v30, %v5325_v25 }
 0x3ee   : > { %6474 = vst [vmem:[#allocation46_spill] sm:$0xff] %v5327_v42 }
 0x3ef   : > { %6475 = vst [vmem:[#allocation47_spill] sm:$0xff] %v5329_v22  ;;  %1431 = vmax.xlane.f32.xlu1 %v1430_v32  ;;  %v1433_v41 = vmax.f32 %v5327_v42, %v5329_v22 }
 0x3f1   : > { %1434 = vmax.xlane.f32.xlu0 %v1433_v41  ;;  %v1269_v44 = vpop.f32.mrb[88].mxu1 }
 0x3f2   : > { %v5335_v33 = vmul.f32 0.17677669, %v1269_v44  ;;  %v1271_v27 = vpop.f32.mrb[89].mxu1 }
 0x3f3   : > { %v5337_v6 = vmul.f32 0.17677669, %v1271_v27  ;;  %v1273_v55 = vpop.f32.mrb[90].mxu1 }
 0x3f4   : > { %v5339_v52 = vmul.f32 0.17677669, %v1273_v55  ;;  %v1275_v20 = vpop.f32.mrb[91].mxu1 }
 0x3f5   : > { %v5341_v28 = vmul.f32 0.17677669, %v1275_v20  ;;  %v1436_v51 = vmax.f32 %v5335_v33, %v5337_v6 }
 0x3f6   : > { %6476 = vst [vmem:[#allocation48_spill] sm:$0xff] %v5339_v52 }
 0x3f7   : > { %6477 = vst [vmem:[#allocation49_spill] sm:$0xff] %v5341_v28  ;;  %1437 = vmax.xlane.f32.xlu1 %v1436_v51  ;;  %v1439_v32 = vmax.f32 %v5339_v52, %v5341_v28 }
 0x3f9   : > { %1440 = vmax.xlane.f32.xlu0 %v1439_v32  ;;  %v5347_v41 = vpop.f32.mrb[92].mxu1 }
 0x3fa   : > { %v5349_v44 = vpop.f32.mrb[93].mxu1 }
 0x3fb   : > { %v5351_v27 = vpop.f32.mrb[94].mxu1 }
 0x3fc   : > { %v5353_v22 = vpop.f32.mrb[95].mxu1 }
 0x3fd   : > { %6478 = vst [vmem:[#allocation50_spill] sm:$0xff] %v5353_v22 }
 0x414   : > { %v1354_v55 = vpop.xlane.xlu0 %1353 }
 0x415   : > { %v1448_v20 = vsub.f32 %v5165_v59, %v1354_v55  ;;  %v1449_v42 = vsub.f32 %v5167_v35, %v1354_v55 }
 0x416   : > { %v1357_v10 = vpop.xlane.xlu1 %1356 }
 0x417   : > { %v1512_v7 = vmul.f32 1.442695, %v1448_v20  ;;  %v1514_v51 = vmul.f32 1.442695, %v1449_v42  ;;  %v1450_v12 = vsub.f32 %v5169_v4, %v1357_v10  ;;  %v1451_v32 = vsub.f32 %v5171_v1, %v1357_v10 }
 0x419   : > { %4273 = vpow2.f32 %v1512_v7  ;;  %v1516_v28 = vmul.f32 1.442695, %v1450_v12  ;;  %v1518_v52 = vmul.f32 1.442695, %v1451_v32 }
 0x41a   : > { %4275 = vpow2.f32 %v1514_v51  ;;  %v1877_v50 = vpop.permute.xlu1 %1876 }
 0x41b   : > { %4277 = vpow2.f32 %v1516_v28  ;;  %3795 = vmatpush3.bf16.msra.mxu0 %v1877_v50 }
 0x41c   : > { %4279 = vpow2.f32 %v1518_v52  ;;  %v1360_v22 = vpop.xlane.xlu0 %1359 }
 0x41d   : > { %v1452_v59 = vsub.f32 %v5177_v29, %v1360_v22  ;;  %v1453_v35 = vsub.f32 %v5179_v24, %v1360_v22 }
 0x41f   : > { %v1520_v55 = vmul.f32 1.442695, %v1452_v59  ;;  %v1522_v20 = vmul.f32 1.442695, %v1453_v35 }
 0x420   : > { %v1363_v42 = vpop.xlane.xlu0 %1362 }
 0x421   : > { %4281 = vpow2.f32 %v1520_v55  ;;  %v1454_v4 = vsub.f32 %v5181_v54, %v1363_v42  ;;  %v1455_v1 = vsub.f32 %v5183_v47, %v1363_v42 }
 0x422   : > { %4283 = vpow2.f32 %v1522_v20 }
 0x423   : > { %v5363_v12 = vpop.eup %4273  ;;  %v1524_v7 = vmul.f32 1.442695, %v1454_v4  ;;  %v1526_v10 = vmul.f32 1.442695, %v1455_v1 }
 0x424   : > { %v5365_v50 = vpop.eup %4275 }
 0x425   : > { %v5367_v52 = vpop.eup %4277  ;;  %4285 = vpow2.f32 %v1524_v7  ;;  %v1640_v29 = vadd.f32 %v5365_v50, %v5363_v12 }
 0x426   : > { %v5371_v24 = vpop.eup %4279  ;;  %4287 = vpow2.f32 %v1526_v10  ;;  %v1369_v35 = vpop.xlane.xlu0 %1368 }
 0x427   : > { %1641 = vadd.xlane.f32.xlu1 %v1640_v29  ;;  %v1643_v54 = vadd.f32 %v5371_v24, %v5367_v52  ;;  %v1458_v20 = vsub.f32 %v5189_v43, %v1369_v35  ;;  %v1459_v42 = vsub.f32 %v5191_v34, %v1369_v35 }
 0x429   : > { %1644 = vadd.xlane.f32.xlu0 %v1643_v54  ;;  %v1532_v54 = vmul.f32 1.442695, %v1458_v20 }
 0x42b   : > { %v5375_v47 = vpop.eup %4281 }
 0x42c   : > { %6479 = vst [vmem:[#allocation51_spill] sm:$0xff] %v5375_v47  ;;  %v5377_v22 = vpop.eup %4283 }
 0x42d   : > { %6480 = vst [vmem:[#allocation52_spill] sm:$0xff] %v5377_v22  ;;  %v1646_v28 = vadd.f32 %v5377_v22, %v5375_v47  ;;  %v1534_v47 = vmul.f32 1.442695, %v1459_v42 }
 0x42e   : > { %v1375_v55 = vpop.xlane.xlu0 %1374 }
 0x42f   : > { %v5381_v51 = vpop.eup %4285  ;;  %1647 = vadd.xlane.f32.xlu0 %v1646_v28  ;;  %v1462_v1 = vsub.f32 %v5197_v9, %v1375_v55  ;;  %v1463_v29 = vsub.f32 %v5199_v14, %v1375_v55 }
 0x430   : > { %6481 = vst [vmem:[#allocation53_spill] sm:$0xff] %v5381_v51  ;;  %v5383_v32 = vpop.eup %4287 }
 0x431   : > { %v1649_v59 = vadd.f32 %v5383_v32, %v5381_v51  ;;  %v1540_v22 = vmul.f32 1.442695, %v1462_v1  ;;  %v1542_v35 = vmul.f32 1.442695, %v1463_v29 }
 0x433   : > { %1650 = vadd.xlane.f32.xlu0 %v1649_v59 }
 0x438   : > { %1878 = vrot.lane.b32.xlu1 %v4997_v61, %s4594_s24  ;;  %v1381_v61 = vpop.xlane.xlu0 %1380 }
 0x439   : > { %v1466_v9 = vsub.f32 %v5203_v0, %v1381_v61  ;;  %v1467_v14 = vsub.f32 %v5205_v37, %v1381_v61 }
 0x43b   : > { %v1548_v0 = vmul.f32 1.442695, %v1466_v9 }
 0x43e   : > { %v5399_v20 = vpop.xlane.xlu0 %1386 }
 0x446   : > { %v5409_v1 = vpop.xlane.xlu0 %1392 }
 0x44b   : > { %v1366_v4 = vpop.xlane.xlu1 %1365 }
 0x44c   : > { %v1456_v7 = vsub.f32 %v5221_v57, %v1366_v4  ;;  %v1457_v10 = vsub.f32 %v5223_v13, %v1366_v4  ;;  %v1550_v4 = vmul.f32 1.442695, %v1467_v14 }
 0x44e   : > { %v1528_v28 = vmul.f32 1.442695, %v1456_v7  ;;  %v1530_v59 = vmul.f32 1.442695, %v1457_v10 }
 0x44f   : > { %v1372_v51 = vpop.xlane.xlu1 %1371 }
 0x450   : > { %4289 = vpow2.f32 %v1528_v28  ;;  %v1460_v43 = vsub.f32 %v5225_v15, %v1372_v51  ;;  %v1461_v34 = vsub.f32 %v5227_v21, %v1372_v51  ;;  %v5404_v21 = vmul.f32 0.17677669, %v5347_v41 }
 0x451   : > { %4291 = vpow2.f32 %v1530_v59  ;;  %v5407_v51 = vmul.f32 0.17677669, %v5349_v44  ;;  %v5421_v59 = vpop.xlane.xlu0 %1398 }
 0x452   : > { %4293 = vpow2.f32 %v1532_v54  ;;  %v1536_v13 = vmul.f32 1.442695, %v1460_v43  ;;  %v1538_v57 = vmul.f32 1.442695, %v1461_v34 }
 0x453   : > { %4295 = vpow2.f32 %v1534_v47  ;;  %v1378_v55 = vpop.xlane.xlu1 %1377  ;;  %v1442_v7 = vmax.f32 %v5404_v21, %v5407_v51 }
 0x454   : > { %4297 = vpow2.f32 %v1540_v22  ;;  %v1464_v42 = vsub.f32 %v5237_v46, %v1378_v55  ;;  %v1465_v15 = vsub.f32 %v5239_v26, %v1378_v55 }
 0x455   : > { %4299 = vpow2.f32 %v1542_v35 }
 0x456   : > { %4301 = vpow2.f32 %v1536_v13  ;;  %v1544_v47 = vmul.f32 1.442695, %v1464_v42  ;;  %v1546_v37 = vmul.f32 1.442695, %v1465_v15 }
 0x457   : > { %4303 = vpow2.f32 %v1538_v57  ;;  %v1384_v22 = vpop.xlane.xlu1 %1383 }
 0x458   : > { %4305 = vpow2.f32 %v1544_v47  ;;  %v1468_v46 = vsub.f32 %v5243_v49, %v1384_v22  ;;  %v1469_v26 = vsub.f32 %v5245_v40, %v1384_v22 }
 0x459   : > { %4307 = vpow2.f32 %v1546_v37 }
 0x45a   : > { %v5413_v41 = vpop.eup %4289  ;;  %4309 = vpow2.f32 %v1548_v0  ;;  %v1552_v44 = vmul.f32 1.442695, %v1468_v46  ;;  %v1554_v29 = vmul.f32 1.442695, %v1469_v26 }
 0x45b   : > { %v5417_v10 = vpop.eup %4291  ;;  %4311 = vpow2.f32 %v1550_v4  ;;  %v1390_v54 = vpop.xlane.xlu1 %1389 }
 0x45c   : > { %v5419_v28 = vpop.eup %4293  ;;  %v1472_v49 = vsub.f32 %v5255_v23, %v1390_v54  ;;  %v1473_v40 = vsub.f32 %v5257_v11, %v1390_v54  ;;  %1443 = vmax.xlane.f32.xlu1 %v1442_v7  ;;  %v1652_v61 = vadd.f32 %v5417_v10, %v5413_v41  ;;  %4313 = vpow2.f32 %v1552_v44  ;;  %v5435_v23 = vpop.xlane.xlu0 %1404 }
 0x45d   : > { %v5427_v43 = vpop.eup %4295  ;;  %4315 = vpow2.f32 %v1554_v29 }
 0x45e   : > { %v5429_v34 = vpop.eup %4297  ;;  %v1560_v35 = vmul.f32 1.442695, %v1472_v49  ;;  %1653 = vadd.xlane.f32.xlu0 %v1652_v61  ;;  %v1562_v13 = vmul.f32 1.442695, %v1473_v40  ;;  %v1655_v42 = vadd.f32 %v5427_v43, %v5419_v28 }
 0x45f   : > { %v5431_v9 = vpop.eup %4299  ;;  %v1396_v14 = vpop.xlane.xlu1 %1395 }
 0x460   : > { %v5433_v57 = vpop.eup %4301  ;;  %v1476_v11 = vsub.f32 %v5261_v17, %v1396_v14  ;;  %v1477_v55 = vsub.f32 %v5263_v19, %v1396_v14  ;;  %4317 = vpow2.f32 %v1560_v35  ;;  %v5449_v17 = vpop.xlane.xlu0 %1410 }
 0x461   : > { %v5441_v15 = vpop.eup %4303  ;;  %4319 = vpow2.f32 %v1562_v13  ;;  %v1661_v13 = vadd.f32 %v5431_v9, %v5429_v34 }
 0x462   : > { %v5443_v0 = vpop.eup %4305  ;;  %v1568_v47 = vmul.f32 1.442695, %v1476_v11  ;;  %1656 = vadd.xlane.f32.xlu0 %v1655_v42  ;;  %v1570_v4 = vmul.f32 1.442695, %v1477_v55  ;;  %v1658_v44 = vadd.f32 %v5441_v15, %v5433_v57 }
 0x463   : > { %v5445_v37 = vpop.eup %4307  ;;  %v1402_v22 = vpop.xlane.xlu1 %1401 }
 0x464   : > { %v5447_v46 = vpop.eup %4309  ;;  %v1480_v19 = vsub.f32 %v5273_v8, %v1402_v22  ;;  %v1481_v26 = vsub.f32 %v5275_v45, %v1402_v22  ;;  %v1664_v7 = vadd.f32 %v5445_v37, %v5443_v0  ;;  %4321 = vpow2.f32 %v1568_v47 }
 0x465   : > { %v5457_v29 = vpop.eup %4311  ;;  %4323 = vpow2.f32 %v1570_v4 }
 0x466   : > { %v1576_v54 = vmul.f32 1.442695, %v1480_v19  ;;  %1659 = vadd.xlane.f32.xlu0 %v1658_v44  ;;  %1665 = vadd.xlane.f32.xlu1 %v1664_v7  ;;  %v1578_v49 = vmul.f32 1.442695, %v1481_v26  ;;  %v5459_v61 = vpop.eup %4313  ;;  %v5461_v8 = vpop.xlane.xlu0 %1416  ;;  %v1667_v14 = vadd.f32 %v5457_v29, %v5447_v46 }
 0x467   : > { %v1408_v40 = vpop.xlane.xlu1 %1407  ;;  %v5469_v11 = vpop.eup %4315 }
 0x468   : > { %v1484_v45 = vsub.f32 %v5279_v3, %v1408_v40  ;;  %v1485_v35 = vsub.f32 %v5281_v5, %v1408_v40  ;;  %4325 = vpow2.f32 %v1576_v54  ;;  %v1670_v19 = vadd.f32 %v5469_v11, %v5459_v61 }
 0x469   : > { %4327 = vpow2.f32 %v1578_v49 }
 0x46a   : > { %v1584_v55 = vmul.f32 1.442695, %v1484_v45  ;;  %1662 = vadd.xlane.f32.xlu0 %v1661_v13  ;;  %1668 = vadd.xlane.f32.xlu1 %v1667_v14  ;;  %v1586_v42 = vmul.f32 1.442695, %v1485_v35  ;;  %v5471_v4 = vpop.eup %4317 }
 0x46b   : > { %v1414_v47 = vpop.xlane.xlu1 %1413  ;;  %v5477_v26 = vpop.eup %4319 }
 0x46c   : > { %v1488_v3 = vsub.f32 %v5291_v58, %v1414_v47  ;;  %v1489_v5 = vsub.f32 %v5293_v38, %v1414_v47  ;;  %v1420_v22 = vpop.xlane.xlu0 %1419  ;;  %4329 = vpow2.f32 %v1584_v55  ;;  %v1676_v58 = vadd.f32 %v5477_v26, %v5471_v4 }
 0x46d   : > { %v1492_v7 = vsub.f32 %v5297_v31, %v1420_v22  ;;  %4331 = vpow2.f32 %v1586_v42  ;;  %v1493_v49 = vsub.f32 %v5299_v56, %v1420_v22 }
 0x46e   : > { %v1592_v44 = vmul.f32 1.442695, %v1488_v3  ;;  %1671 = vadd.xlane.f32.xlu1 %v1670_v19  ;;  %v1594_v54 = vmul.f32 1.442695, %v1489_v5  ;;  %v5481_v40 = vpop.eup %4321 }
 0x46f   : > { %v5485_v38 = vpop.eup %4323  ;;  %v1600_v45 = vmul.f32 1.442695, %v1492_v7  ;;  %v1602_v35 = vmul.f32 1.442695, %v1493_v49 }
 0x470   : > { %4333 = vpow2.f32 %v1592_v44  ;;  %v1682_v14 = vadd.f32 %v5485_v38, %v5481_v40 }
 0x471   : > { %4335 = vpow2.f32 %v1594_v54 }
 0x472   : > { %1677 = vadd.xlane.f32.xlu1 %v1676_v58  ;;  %v5487_v13 = vpop.eup %4325  ;;  %4337 = vpow2.f32 %v1600_v45 }
 0x473   : > { %v5491_v55 = vpop.eup %4327  ;;  %4339 = vpow2.f32 %v1602_v35 }
 0x474   : > { %v1426_v31 = vpop.xlane.xlu1 %1425  ;;  %v1688_v22 = vadd.f32 %v5491_v55, %v5487_v13 }
 0x475   : > { %v1496_v56 = vsub.f32 %v5311_v53, %v1426_v31  ;;  %v1497_v42 = vsub.f32 %v5313_v39, %v1426_v31 }
 0x476   : > { %1683 = vadd.xlane.f32.xlu1 %v1682_v14  ;;  %v5495_v5 = vpop.eup %4329 }
 0x477   : > { %v1608_v47 = vmul.f32 1.442695, %v1496_v56  ;;  %v1610_v3 = vmul.f32 1.442695, %v1497_v42  ;;  %v5499_v19 = vpop.eup %4331 }
 0x478   : > { %v1694_v39 = vadd.f32 %v5499_v19, %v5495_v5 }
 0x479   : > { %4341 = vpow2.f32 %v1608_v47 }
 0x47a   : > { %1689 = vadd.xlane.f32.xlu1 %v1688_v22  ;;  %4343 = vpow2.f32 %v1610_v3  ;;  %v5501_v44 = vpop.eup %4333 }
 0x47b   : > { %v5505_v7 = vpop.eup %4335 }
 0x47c   : > { %v1432_v53 = vpop.xlane.xlu1 %1431  ;;  %v5509_v35 = vpop.eup %4337  ;;  %v1700_v31 = vadd.f32 %v5505_v7, %v5501_v44 }
 0x47d   : > { %v1500_v54 = vsub.f32 %v5323_v30, %v1432_v53  ;;  %v1501_v49 = vsub.f32 %v5325_v25, %v1432_v53  ;;  %6482 = vst [vmem:[#allocation54_spill] sm:$0xff] %v5509_v35  ;;  %v5515_v14 = vpop.eup %4339 }
 0x47e   : > { %1695 = vadd.xlane.f32.xlu1 %v1694_v39  ;;  %v1706_v25 = vadd.f32 %v5515_v14, %v5509_v35 }
 0x47f   : > { %v1616_v58 = vmul.f32 1.442695, %v1500_v54  ;;  %v1618_v45 = vmul.f32 1.442695, %v1501_v49  ;;  %v1470_v54 = vsub.f32 %v5209_v60, %v5399_v20 }
 0x480   : > { %1894 = vrot.lane.b32.xlu0 %v5051_v62, %s4594_s24  ;;  %s4533_s24 = sshll.u32 %s4595_s23, 4  ;;  %s4534_s24 = int_to_ptr.vmem [resolvable:$false] %s4533_s24 }
 0x481   : > { %4345 = vpow2.f32 %v1616_v58  ;;  %v1556_v58 = vmul.f32 1.442695, %v1470_v54  ;;  %v6490_v54 = vld [vmem:[#allocation50_spill] sm:$0xff]  ;;  %s4535_s26 = scalar_lea.vmem %s4534_s24, 8192  ;;  %p4536_p0 = scmp.lt.s32.totalorder %s6277_s18, %s4534_s24 }
 0x482   : > { %4347 = vpow2.f32 %v1618_v45  ;;  %1701 = vadd.xlane.f32.xlu1 %v1700_v31  ;;  %v1474_v45 = vsub.f32 %v5215_v2, %v5409_v1  ;;  %p4537_p1 = scmp.lt.s32.totalorder %s4535_s26, %s4529_s22 }
 0x483   : > { %v5517_v56 = vpop.eup %4341 }
 0x484   : > { %6483 = vst [vmem:[#allocation55_spill] sm:$0xff] %v5517_v56  ;;  %v1438_v30 = vpop.xlane.xlu1 %1437  ;;  %v5521_v42 = vpop.eup %4343  ;;  %v1564_v60 = vmul.f32 1.442695, %v1474_v45  ;;  %p4538_p2 = por %p4537_p1, %p4536_p0 }
 0x485   : > { %6484 = vst [vmem:[#allocation56_spill] sm:$0xff] %v5521_v42  ;;  %v1504_v47 = vsub.f32 %v5335_v33, %v1438_v30  ;;  %v1505_v62 = vsub.f32 %v5337_v6, %v1438_v30  ;;  %v1712_v53 = vadd.f32 %v5521_v42, %v5517_v56  ;;  %v1471_v33 = vsub.f32 %v5211_v36, %v5399_v20 }
 0x486   : > { %1707 = vadd.xlane.f32.xlu1 %v1706_v25  ;;  %v1475_v30 = vsub.f32 %v5217_v18, %v5409_v1  ;;  %v1482_v18 = vsub.f32 %v5247_v16, %v5435_v23  ;;  %v6492_v16 = vld [vmem:[#allocation39_spill] sm:$0xff]  ;;  %p4539_p3 = pnand %p4538_p2, %p4532_p13 }
 0x487   : > { %v1624_v3 = vmul.f32 1.442695, %v1504_v47  ;;  %v1626_v22 = vmul.f32 1.442695, %v1505_v62  ;;  %v1558_v31 = vmul.f32 1.442695, %v1471_v33  ;;  %v1478_v47 = vsub.f32 %v5229_v48, %v5421_v59 }
 0x488   : > { %v1566_v20 = vmul.f32 1.442695, %v1475_v30  ;;  %v1479_v62 = vsub.f32 %v5233_v63, %v5421_v59  ;;  %v6489_v48 = vld [vmem:[#allocation37_spill] sm:$0xff]  ;;  %v5559_v33 = vmul.f32 0.17677669, %v6490_v54  ;;  %v6491_v59 = vld [vmem:[#allocation38_spill] sm:$0xff]  ;;  %v1487_v45 = vsub.f32 %v6492_v16, %v5449_v17 }
 0x489   : > { %4349 = vpow2.f32 %v1624_v3  ;;  %v1572_v3 = vmul.f32 1.442695, %v1478_v47  ;;  %v1580_v63 = vmul.f32 1.442695, %v1482_v18 }
 0x48a   : > { %4351 = vpow2.f32 %v1626_v22  ;;  %1713 = vadd.xlane.f32.xlu1 %v1712_v53  ;;  %v1574_v1 = vmul.f32 1.442695, %v1479_v62  ;;  %v1483_v22 = vsub.f32 %v6489_v48, %v5435_v23  ;;  %v5556_v53 = vmul.f32 0.17677669, %v5351_v27 }
 0x48b   : > { %v5527_v39 = vpop.eup %4345  ;;  %4353 = vpow2.f32 %v1556_v58  ;;  %v1590_v62 = vmul.f32 1.442695, %v1487_v45 }
 0x48c   : > { %6485 = vst [vmem:[#allocation57_spill] sm:$0xff] %v5527_v39  ;;  %v5531_v49 = vpop.eup %4347  ;;  %4355 = vpow2.f32 %v1558_v31  ;;  %v1582_v58 = vmul.f32 1.442695, %v1483_v22  ;;  %v1445_v23 = vmax.f32 %v5556_v53, %v5559_v33  ;;  %v6495_v22 = vld [vmem:[#allocation42_spill] sm:$0xff] }
 0x48d   : > { %6486 = vst [vmem:[#allocation58_spill] sm:$0xff] %v5531_v49  ;;  %v1718_v6 = vadd.f32 %v5531_v49, %v5527_v39  ;;  %4357 = vpow2.f32 %v1564_v60  ;;  %v6493_v60 = vld [vmem:[#allocation40_spill] sm:$0xff] }
 0x48e   : > { %4359 = vpow2.f32 %v1566_v20  ;;  %v1490_v47 = vsub.f32 %v6493_v60, %v5461_v8  ;;  %v1423_v20 = vpop.xlane.xlu0 %1422  ;;  %v6497_v60 = vld [vmem:[#allocation44_spill] sm:$0xff] }
 0x48f   : > { %1719 = vadd.xlane.f32.xlu1 %v1718_v6  ;;  %4361 = vpow2.f32 %v1572_v3  ;;  %v1486_v6 = vsub.f32 %v6491_v59, %v5449_v17  ;;  %v1494_v54 = vsub.f32 %v6495_v22, %v1423_v20 }
 0x490   : > { %4363 = vpow2.f32 %v1574_v1  ;;  %v1596_v48 = vmul.f32 1.442695, %v1490_v47 }
 0x491   : > { %4365 = vpow2.f32 %v1580_v63  ;;  %v1588_v30 = vmul.f32 1.442695, %v1486_v6  ;;  %v6496_v6 = vld [vmem:[#allocation43_spill] sm:$0xff] }
 0x492   : > { %4367 = vpow2.f32 %v1582_v58  ;;  %v1429_v63 = vpop.xlane.xlu0 %1428  ;;  %v1495_v58 = vsub.f32 %v6496_v6, %v1423_v20 }
 0x493   : > { %v5541_v25 = vpop.eup %4349  ;;  %4369 = vpow2.f32 %v1588_v30  ;;  %v1498_v30 = vsub.f32 %v6497_v60, %v1429_v63 }
 0x494   : > { %6487 = vst [vmem:[#allocation59_spill] sm:$0xff] %v5541_v25  ;;  %v5545_v36 = vpop.eup %4351  ;;  %4371 = vpow2.f32 %v1590_v62 }
 0x495   : > { %6488 = vst [vmem:[#allocation60_spill] sm:$0xff] %v5545_v36  ;;  %v1724_v2 = vadd.f32 %v5545_v36, %v5541_v25  ;;  %v5565_v31 = vpop.eup %4353  ;;  %4373 = vpow2.f32 %v1596_v48  ;;  %v1612_v6 = vmul.f32 1.442695, %v1498_v30  ;;  %v6499_v25 = vld [vmem:[#allocation46_spill] sm:$0xff]  ;;  %v6501_v36 = vld [vmem:[#allocation48_spill] sm:$0xff]  ;;  %v6502_v30 = vld [vmem:[#allocation49_spill] sm:$0xff] }
 0x496   : > { %v5569_v27 = vpop.eup %4355  ;;  %v1435_v47 = vpop.xlane.xlu0 %1434 }
 0x497   : > { %1725 = vadd.xlane.f32.xlu1 %v1724_v2  ;;  %v6494_v2 = vld [vmem:[#allocation41_spill] sm:$0xff]  ;;  %v5575_v17 = vpop.eup %4357  ;;  %v1673_v18 = vadd.f32 %v5569_v27, %v5565_v31  ;;  %v1502_v48 = vsub.f32 %v6499_v25, %v1435_v47 }
 0x498   : > { %v1491_v3 = vsub.f32 %v6494_v2, %v5461_v8  ;;  %v5579_v1 = vpop.eup %4359  ;;  %v1606_v2 = vmul.f32 1.442695, %v1495_v58 }
 0x499   : > { %v5583_v16 = vpop.eup %4361  ;;  %v1679_v8 = vadd.f32 %v5579_v1, %v5575_v17 }
 0x49a   : > { %v1598_v59 = vmul.f32 1.442695, %v1491_v3  ;;  %v5587_v45 = vpop.eup %4363 }
 0x49b   : > { %v5591_v3 = vpop.eup %4365  ;;  %v1685_v20 = vadd.f32 %v5587_v45, %v5583_v16 }
 0x49c   : > { %4375 = vpow2.f32 %v1598_v59  ;;  %v5595_v22 = vpop.eup %4367 }
 0x49d   : > { %v5599_v58 = vpop.eup %4369 }
 0x49f   : > { %1446 = vmax.xlane.f32.xlu0 %v1445_v23  ;;  %v1604_v23 = vmul.f32 1.442695, %v1494_v54  ;;  %v1441_v54 = vpop.xlane.xlu0 %1440 }
 0x4a0   : > { %v1506_v39 = vsub.f32 %v6501_v36, %v1441_v54 }
 0x4a1   : > { %4377 = vpow2.f32 %v1604_v23  ;;  %v1620_v23 = vmul.f32 1.442695, %v1502_v48 }
 0x4a2   : > { %4379 = vpow2.f32 %v1606_v2 }
 0x4a3   : > { %1674 = vadd.xlane.f32.xlu0 %v1673_v18  ;;  %v6498_v18 = vld [vmem:[#allocation45_spill] sm:$0xff]  ;;  %4381 = vpow2.f32 %v1612_v6 }
 0x4a4   : > { %v1499_v62 = vsub.f32 %v6498_v18, %v1429_v63  ;;  %v1691_v63 = vadd.f32 %v5595_v22, %v5591_v3  ;;  %v5603_v18 = vpop.eup %4371 }
 0x4a5   : > { %v5607_v2 = vpop.eup %4373 }
 0x4a6   : > { %v1614_v60 = vmul.f32 1.442695, %v1499_v62  ;;  %v5611_v62 = vpop.eup %4375 }
 0x4a7   : > { %1680 = vadd.xlane.f32.xlu0 %v1679_v8  ;;  %v6500_v8 = vld [vmem:[#allocation47_spill] sm:$0xff]  ;;  %v1703_v48 = vadd.f32 %v5611_v62, %v5607_v2 }
 0x4a8   : > { %v1503_v59 = vsub.f32 %v6500_v8, %v1435_v47  ;;  %4383 = vpow2.f32 %v1614_v60  ;;  %v1697_v47 = vadd.f32 %v5603_v18, %v5599_v58  ;;  %v1628_v8 = vmul.f32 1.442695, %v1506_v39 }
 0x4a9   : > { %4385 = vpow2.f32 %v1620_v23 }
 0x4aa   : > { %v1622_v25 = vmul.f32 1.442695, %v1503_v59 }
 0x4ab   : > { %1686 = vadd.xlane.f32.xlu0 %v1685_v20  ;;  %v1507_v20 = vsub.f32 %v6502_v30, %v1441_v54  ;;  %v5613_v6 = vpop.eup %4377 }
 0x4ac   : > { %4387 = vpow2.f32 %v1622_v25  ;;  %6503 = vst [vmem:[#allocation37_spill] sm:$0xff] %v5613_v6  ;;  %v5617_v54 = vpop.eup %4379 }
 0x4ad   : > { %v1630_v49 = vmul.f32 1.442695, %v1507_v20  ;;  %v5619_v59 = vpop.eup %4381  ;;  %v1709_v39 = vadd.f32 %v5617_v54, %v5613_v6 }
 0x4ae   : > { %6504 = vst [vmem:[#allocation50_spill] sm:$0xff] %v5619_v59 }
 0x4af   : > { %1692 = vadd.xlane.f32.xlu0 %v1691_v63 }
 0x4b2   : > { %v5623_v63 = vpop.eup %4383 }
 0x4b3   : > { %1698 = vadd.xlane.f32.xlu0 %v1697_v47  ;;  %6505 = vst [vmem:[#allocation38_spill] sm:$0xff] %v5623_v63  ;;  %v5625_v23 = vpop.eup %4385  ;;  %v1715_v25 = vadd.f32 %v5623_v63, %v5619_v59 }
 0x4b4   : > { %v1642_v36 = vpop.xlane.xlu1 %1641  ;;  %6506 = vst [vmem:[#allocation39_spill] sm:$0xff] %v5625_v23 }
 0x4b5   : > { %4389 = vrcp.f32 %v1642_v36 }
 0x4b6   : > { %4391 = vpow2.f32 %v1628_v8  ;;  %v1645_v60 = vpop.xlane.xlu0 %1644  ;;  %v5629_v30 = vpop.eup %4387 }
 0x4b7   : > { %4393 = vrcp.f32 %v1645_v60  ;;  %1704 = vadd.xlane.f32.xlu0 %v1703_v48  ;;  %6507 = vst [vmem:[#allocation40_spill] sm:$0xff] %v5629_v30  ;;  %v1721_v8 = vadd.f32 %v5629_v30, %v5625_v23 }
 0x4b8   : > { %4395 = vpow2.f32 %v1630_v49  ;;  %v1879_v23 = vpop.permute.xlu1 %1878 }
 0x4bb   : > { %1710 = vadd.xlane.f32.xlu0 %v1709_v39 }
 0x4bc   : > { %v1648_v35 = vpop.xlane.xlu0 %1647 }
 0x4bf   : > { %v4390_v20 = vpop.eup %4389  ;;  %1716 = vadd.xlane.f32.xlu0 %v1715_v25 }
 0x4c0   : > { %v5631_v47 = vpop.eup %4391  ;;  %v1768_v48 = vmul.f32 %v4390_v20, %v5363_v12  ;;  %v1769_v39 = vmul.f32 %v4390_v20, %v5365_v50  ;;  %v1651_v30 = vpop.xlane.xlu0 %1650 }
 0x4c1   : > { %v4394_v49 = vpop.eup %4393  ;;  %4397 = vrcp.f32 %v1651_v30 }
 0x4c2   : > { %v5635_v36 = vpop.eup %4395  ;;  %v1770_v60 = vmul.f32 %v4394_v49, %v5367_v52  ;;  %v1771_v56 = vmul.f32 %v4394_v49, %v5371_v24 }
 0x4c3   : > { %1722 = vadd.xlane.f32.xlu0 %v1721_v8  ;;  %v1727_v25 = vadd.f32 %v5635_v36, %v5631_v47 }
 0x4c4   : > { %v1833_v59 = vpack.c.bf16 %v1771_v56, %v1769_v39  ;;  %v1832_v42 = vpack.c.bf16 %v1770_v60, %v1768_v48 }
 0x4c6   : > { %1944 = vmatprep.mubr.bf16.mxu0 %v1833_v59 }
 0x4c7   : > { %1728 = vadd.xlane.f32.xlu0 %v1727_v25 }
 0x4cb   : > { %v4398_v59 = vpop.eup %4397 }
 0x4cc   : > { %v1775_v30 = vmul.f32 %v4398_v59, %v5383_v32 }
 0x4e9   : > { %v1444_v63 = vpop.xlane.xlu1 %1443 }
 0x4ea   : > { %v1508_v12 = vsub.f32 %v5404_v21, %v1444_v63  ;;  %v1509_v52 = vsub.f32 %v5407_v51, %v1444_v63 }
 0x4eb   : > { %v1654_v6 = vpop.xlane.xlu0 %1653 }
 0x4ec   : > { %v1632_v50 = vmul.f32 1.442695, %v1508_v12  ;;  %v1634_v20 = vmul.f32 1.442695, %v1509_v52  ;;  %v6510_v52 = vld [vmem:[#allocation53_spill] sm:$0xff] }
 0x4ee   : > { %4399 = vpow2.f32 %v1632_v50  ;;  %v1774_v50 = vmul.f32 %v4398_v59, %v6510_v52 }
 0x4ef   : > { %4401 = vpow2.f32 %v1634_v20  ;;  %v1657_v24 = vpop.xlane.xlu0 %1656 }
 0x4f0   : > { %4403 = vrcp.f32 %v1648_v35  ;;  %v6509_v35 = vld [vmem:[#allocation52_spill] sm:$0xff] }
 0x4f1   : > { %4405 = vrcp.f32 %v1657_v24 }
 0x4f2   : > { %4407 = vrcp.f32 %v1654_v6 }
 0x4f3   : > { %v1660_v56 = vpop.xlane.xlu0 %1659  ;;  %v1666_v60 = vpop.xlane.xlu1 %1665 }
 0x4f7   : > { %v1663_v49 = vpop.xlane.xlu0 %1662  ;;  %v1669_v20 = vpop.xlane.xlu1 %1668 }
 0x4f8   : > { %v5645_v8 = vpop.eup %4399  ;;  %4409 = vrcp.f32 %v1663_v49 }
 0x4f9   : > { %6508 = vst [vmem:[#allocation41_spill] sm:$0xff] %v5645_v8  ;;  %v5647_v48 = vpop.eup %4401  ;;  %4411 = vrcp.f32 %v1660_v56 }
 0x4fa   : > { %v4404_v21 = vpop.eup %4403  ;;  %v1730_v51 = vadd.f32 %v5647_v48, %v5645_v8  ;;  %v6511_v8 = vld [vmem:[#allocation51_spill] sm:$0xff]  ;;  %4413 = vrcp.f32 %v1669_v20 }
 0x4fb   : > { %v1895_v63 = vpop.permute.xlu0 %1894  ;;  %v1773_v39 = vmul.f32 %v4404_v21, %v6509_v35  ;;  %v4406_v12 = vpop.eup %4405  ;;  %v1772_v32 = vmul.f32 %v4404_v21, %v6511_v8  ;;  %4415 = vrcp.f32 %v1666_v60 }
 0x4fc   : > { %1731 = vadd.xlane.f32.xlu1 %v1730_v51  ;;  %3796 = vmatprep.subr.bf16.mxu0 %v1895_v63  ;;  %v4408_v6 = vpop.eup %4407  ;;  %v1779_v24 = vmul.f32 %v4406_v12, %v5427_v43  ;;  %v1672_v52 = vpop.xlane.xlu1 %1671 }
 0x4fd   : > { %3797 = vmatpush3.bf16.msra.mxu0 %v1879_v23  ;;  %v1835_v25 = vpack.c.bf16 %v1775_v30, %v1773_v39  ;;  %v1777_v51 = vmul.f32 %v4408_v6, %v5417_v10  ;;  %v1834_v23 = vpack.c.bf16 %v1774_v50, %v1772_v32  ;;  %v1776_v59 = vmul.f32 %v4408_v6, %v5413_v41 }
 0x4fe   : > { %4417 = vrcp.f32 %v1672_v52 }
 0x4ff   : > { %v1837_v63 = vpack.c.bf16 %v1779_v24, %v1777_v51 }
 0x500   : > { %1945 = vmatmul.mubr.bf16.vlgmr.msra.gmra.mrb[32].mxu0 %v1832_v42  ;;  %v1778_v42 = vmul.f32 %v4406_v12, %v5419_v28  ;;  %v1678_v20 = vpop.xlane.xlu1 %1677 }
 0x501   : > { %1952 = vmatprep.mubr.bf16.mxu0 %v1835_v25  ;;  %4419 = vrcp.f32 %v1678_v20 }
 0x502   : > { %v4410_v35 = vpop.eup %4409  ;;  %v1836_v30 = vpack.c.bf16 %v1778_v42, %v1776_v59 }
 0x503   : > { %v4412_v56 = vpop.eup %4411  ;;  %v1783_v49 = vmul.f32 %v4410_v35, %v5431_v9  ;;  %v1782_v39 = vmul.f32 %v4410_v35, %v5429_v34 }
 0x504   : > { %v1781_v43 = vmul.f32 %v4412_v56, %v5441_v15  ;;  %v4414_v21 = vpop.eup %4413  ;;  %v1780_v25 = vmul.f32 %v4412_v56, %v5433_v57 }
 0x505   : > { %v4416_v10 = vpop.eup %4415  ;;  %v1787_v60 = vmul.f32 %v4414_v21, %v5457_v29  ;;  %v1786_v41 = vmul.f32 %v4414_v21, %v5447_v46 }
 0x506   : > { %v1839_v8 = vpack.c.bf16 %v1783_v49, %v1781_v43  ;;  %v1785_v28 = vmul.f32 %v4416_v10, %v5445_v37  ;;  %v1838_v12 = vpack.c.bf16 %v1782_v39, %v1780_v25  ;;  %v1784_v15 = vmul.f32 %v4416_v10, %v5443_v0  ;;  %v1684_v0 = vpop.xlane.xlu1 %1683 }
 0x508   : > { %1953 = vmatmul.mubr.bf16.gmra.mrb[36].mxu0 %v1834_v23  ;;  %v1841_v9 = vpack.c.bf16 %v1787_v60, %v1785_v28  ;;  %v1840_v6 = vpack.c.bf16 %v1786_v41, %v1784_v15  ;;  %v4418_v51 = vpop.eup %4417 }
 0x509   : > { %1960 = vmatprep.mubr.bf16.mxu0 %v1837_v63  ;;  %v1789_v42 = vmul.f32 %v4418_v51, %v5469_v11  ;;  %v1788_v59 = vmul.f32 %v4418_v51, %v5459_v61  ;;  %v4263_v51 = vld [vmem:[%s6329_s3] sm:$0xff]  }
 0x50a   : > { %4042 = vmatprep.subr.bf16.mxu1 %v4263_v51 }
 0x50b   : > { %v4420_v23 = vpop.eup %4419  ;;  %4043 = vmatpush3.bf16.msra.mxu1 %v4263_v51  ;;  %v6523_v51 = vld [vmem:[#allocation59_spill] sm:$0xff] }
 0x50c   : > { %v1793_v39 = vmul.f32 %v4420_v23, %v5477_v26 }
 0x510   : > { %1961 = vmatmul.mubr.bf16.gmra.mrb[40].mxu0 %v1836_v30 }
 0x511   : > { %1968 = vmatprep.mubr.bf16.mxu0 %v1839_v8  ;;  %v1690_v8 = vpop.xlane.xlu1 %1689 }
 0x518   : > { %1969 = vmatmul.mubr.bf16.gmra.mrb[44].mxu0 %v1838_v12  ;;  %v1792_v12 = vmul.f32 %v4420_v23, %v5471_v4 }
 0x519   : > { %1976 = vmatprep.mubr.bf16.mxu0 %v1841_v9  ;;  %v1696_v9 = vpop.xlane.xlu1 %1695 }
 0x51d   : > { %v1702_v20 = vpop.xlane.xlu1 %1701 }
 0x520   : > { %1977 = vmatmul.mubr.bf16.gmra.mrb[48].mxu0 %v1840_v6 }
 0x52c   : > { %v1447_v50 = vpop.xlane.xlu0 %1446 }
 0x52d   : > { %v1510_v34 = vsub.f32 %v5556_v53, %v1447_v50  ;;  %v1511_v29 = vsub.f32 %v5559_v33, %v1447_v50 }
 0x52f   : > { %v1636_v57 = vmul.f32 1.442695, %v1510_v34  ;;  %v1638_v37 = vmul.f32 1.442695, %v1511_v29 }
 0x530   : > { %v1675_v24 = vpop.xlane.xlu0 %1674 }
 0x531   : > { %4421 = vpow2.f32 %v1636_v57 }
 0x532   : > { %4423 = vpow2.f32 %v1638_v37 }
 0x533   : > { %4425 = vrcp.f32 %v1675_v24 }
 0x534   : > { %v1681_v46 = vpop.xlane.xlu0 %1680 }
 0x535   : > { %4427 = vrcp.f32 %v1681_v46  ;;  %v1708_v46 = vpop.xlane.xlu1 %1707 }
 0x538   : > { %v1687_v32 = vpop.xlane.xlu0 %1686 }
 0x539   : > { %4429 = vrcp.f32 %v1687_v32 }
 0x53a   : > { %4431 = vrcp.f32 %v1684_v0 }
 0x53b   : > { %v5669_v63 = vpop.eup %4421 }
 0x53c   : > { %v5671_v53 = vpop.eup %4423  ;;  %v1693_v56 = vpop.xlane.xlu0 %1692 }
 0x53d   : > { %v4426_v33 = vpop.eup %4425  ;;  %v1733_v35 = vadd.f32 %v5671_v53, %v5669_v63  ;;  %4433 = vrcp.f32 %v1693_v56 }
 0x53e   : > { %v1791_v49 = vmul.f32 %v4426_v33, %v5569_v27  ;;  %v1790_v43 = vmul.f32 %v4426_v33, %v5565_v31  ;;  %4435 = vrcp.f32 %v1690_v8  ;;  %v4264_v33 = vld [vmem:[%s6329_s3 + $0x8] sm:$0xff]  }
 0x53f   : > { %v4428_v30 = vpop.eup %4427  ;;  %1734 = vadd.xlane.f32.xlu0 %v1733_v35  ;;  %v1714_v35 = vpop.xlane.xlu1 %1713  ;;  %4044 = vmatprep.subr.bf16.mxu1 %v4264_v33 }
 0x540   : > { %v1843_v21 = vpack.c.bf16 %v1791_v49, %v1789_v42  ;;  %v1842_v10 = vpack.c.bf16 %v1790_v43, %v1788_v59  ;;  %v1795_v60 = vmul.f32 %v4428_v30, %v5579_v1  ;;  %v1794_v61 = vmul.f32 %v4428_v30, %v5575_v17  ;;  %v1699_v31 = vpop.xlane.xlu0 %1698  ;;  %4045 = vmatpush3.bf16.msra.mxu1 %v4264_v33 }
 0x541   : > { %4437 = vrcp.f32 %v1699_v31  ;;  %v6514_v31 = vld [vmem:[#allocation54_spill] sm:$0xff] }
 0x542   : > { %1984 = vmatprep.mubr.bf16.mxu0 %v1843_v21  ;;  %v1845_v25 = vpack.c.bf16 %v1795_v60, %v1793_v39  ;;  %v1844_v1 = vpack.c.bf16 %v1794_v61, %v1792_v12  ;;  %4439 = vrcp.f32 %v1696_v9 }
 0x543   : > { %v4430_v28 = vpop.eup %4429  ;;  %1985 = vmatmul.mubr.bf16.gmra.mrb[52].mxu0 %v1842_v10  ;;  %v1720_v8 = vpop.xlane.xlu1 %1719 }
 0x544   : > { %1992 = vmatprep.mubr.bf16.mxu0 %v1845_v25  ;;  %v4432_v11 = vpop.eup %4431  ;;  %v1799_v27 = vmul.f32 %v4430_v28, %v5587_v45  ;;  %v1798_v52 = vmul.f32 %v4430_v28, %v5583_v16  ;;  %v1705_v50 = vpop.xlane.xlu0 %1704  ;;  %v6512_v25 = vld [vmem:[#allocation37_spill] sm:$0xff] }
 0x545   : > { %v1797_v26 = vmul.f32 %v4432_v11, %v5485_v38  ;;  %v1796_v45 = vmul.f32 %v4432_v11, %v5481_v40  ;;  %4441 = vrcp.f32 %v1705_v50  ;;  %v6518_v50 = vld [vmem:[#allocation55_spill] sm:$0xff] }
 0x546   : > { %4443 = vrcp.f32 %v1702_v20 }
 0x547   : > { %v1847_v41 = vpack.c.bf16 %v1799_v27, %v1797_v26  ;;  %v4434_v15 = vpop.eup %4433  ;;  %v1846_v38 = vpack.c.bf16 %v1798_v52, %v1796_v45  ;;  %v1726_v27 = vpop.xlane.xlu1 %1725  ;;  %v6519_v45 = vld [vmem:[#allocation58_spill] sm:$0xff] }
 0x548   : > { %v4436_v6 = vpop.eup %4435  ;;  %v1803_v17 = vmul.f32 %v4434_v15, %v5595_v22  ;;  %v1802_v37 = vmul.f32 %v4434_v15, %v5591_v3  ;;  %v1711_v24 = vpop.xlane.xlu0 %1710 }
 0x549   : > { %v1801_v4 = vmul.f32 %v4436_v6, %v5491_v55  ;;  %v1800_v22 = vmul.f32 %v4436_v6, %v5487_v13  ;;  %4445 = vrcp.f32 %v1711_v24  ;;  %v6517_v6 = vld [vmem:[#allocation40_spill] sm:$0xff] }
 0x54a   : > { %4447 = vrcp.f32 %v1708_v46  ;;  %v6522_v46 = vld [vmem:[#allocation60_spill] sm:$0xff] }
 0x54b   : > { %1993 = vmatmul.mubr.bf16.gmra.mrb[56].mxu0 %v1844_v1  ;;  %v1849_v34 = vpack.c.bf16 %v1803_v17, %v1801_v4  ;;  %v4438_v29 = vpop.eup %4437  ;;  %v1848_v55 = vpack.c.bf16 %v1802_v37, %v1800_v22 }
 0x54c   : > { %2000 = vmatprep.mubr.bf16.mxu0 %v1847_v41  ;;  %v4440_v57 = vpop.eup %4439  ;;  %v1807_v16 = vmul.f32 %v4438_v29, %v5603_v18  ;;  %v1806_v23 = vmul.f32 %v4438_v29, %v5599_v58  ;;  %v1717_v18 = vpop.xlane.xlu0 %1716  ;;  %v6516_v41 = vld [vmem:[#allocation50_spill] sm:$0xff] }
 0x54d   : > { %v1805_v40 = vmul.f32 %v4440_v57, %v5499_v19  ;;  %v1804_v19 = vmul.f32 %v4440_v57, %v5495_v5  ;;  %4449 = vrcp.f32 %v1717_v18  ;;  %v6520_v57 = vld [vmem:[#allocation39_spill] sm:$0xff] }
 0x54e   : > { %4451 = vrcp.f32 %v1714_v35 }
 0x54f   : > { %v1851_v0 = vpack.c.bf16 %v1807_v16, %v1805_v40  ;;  %v4442_v32 = vpop.eup %4441  ;;  %v1850_v42 = vpack.c.bf16 %v1806_v23, %v1804_v19  ;;  %v6521_v16 = vld [vmem:[#allocation57_spill] sm:$0xff] }
 0x550   : > { %v4444_v3 = vpop.eup %4443  ;;  %v1811_v13 = vmul.f32 %v4442_v32, %v5611_v62  ;;  %v1810_v59 = vmul.f32 %v4442_v32, %v5607_v2  ;;  %v1723_v5 = vpop.xlane.xlu0 %1722  ;;  %v6513_v2 = vld [vmem:[#allocation38_spill] sm:$0xff] }
 0x551   : > { %v1809_v56 = vmul.f32 %v4444_v3, %v5505_v7  ;;  %v1808_v30 = vmul.f32 %v4444_v3, %v5501_v44  ;;  %4453 = vrcp.f32 %v1723_v5  ;;  %v6515_v44 = vld [vmem:[#allocation56_spill] sm:$0xff] }
 0x552   : > { %4455 = vrcp.f32 %v1720_v8 }
 0x553   : > { %2001 = vmatmul.mubr.bf16.gmra.mrb[60].mxu0 %v1846_v38  ;;  %v1853_v49 = vpack.c.bf16 %v1811_v13, %v1809_v56  ;;  %v4446_v58 = vpop.eup %4445  ;;  %v1852_v21 = vpack.c.bf16 %v1810_v59, %v1808_v30  ;;  %v6524_v59 = vld [vmem:[#allocation41_spill] sm:$0xff] }
 0x554   : > { %2008 = vmatprep.mubr.bf16.mxu0 %v1849_v34  ;;  %v4448_v62 = vpop.eup %4447  ;;  %v1815_v43 = vmul.f32 %v4446_v58, %v5617_v54  ;;  %v1814_v28 = vmul.f32 %v4446_v58, %v6512_v25  ;;  %v1729_v11 = vpop.xlane.xlu0 %1728 }
 0x555   : > { %v1813_v7 = vmul.f32 %v4448_v62, %v5515_v14  ;;  %v1812_v54 = vmul.f32 %v4448_v62, %v6514_v31  ;;  %4457 = vrcp.f32 %v1729_v11 }
 0x556   : > { %4459 = vrcp.f32 %v1726_v27 }
 0x557   : > { %v1855_v10 = vpack.c.bf16 %v1815_v43, %v1813_v7  ;;  %v4450_v39 = vpop.eup %4449  ;;  %v1854_v14 = vpack.c.bf16 %v1814_v28, %v1812_v54 }
 0x558   : > { %v4452_v60 = vpop.eup %4451  ;;  %v1819_v61 = vmul.f32 %v4450_v39, %v6513_v2  ;;  %v1818_v15 = vmul.f32 %v4450_v39, %v6516_v41 }
 0x559   : > { %v1817_v12 = vmul.f32 %v4452_v60, %v6515_v44  ;;  %v1816_v17 = vmul.f32 %v4452_v60, %v6518_v50 }
 0x55b   : > { %2009 = vmatmul.mubr.bf16.gmra.mrb[64].mxu0 %v1848_v55  ;;  %v1857_v9 = vpack.c.bf16 %v1819_v61, %v1817_v12  ;;  %v4454_v26 = vpop.eup %4453  ;;  %v1856_v4 = vpack.c.bf16 %v1818_v15, %v1816_v17 }
 0x55c   : > { %2016 = vmatprep.mubr.bf16.mxu0 %v1851_v0  ;;  %v4456_v1 = vpop.eup %4455  ;;  %v1823_v52 = vmul.f32 %v4454_v26, %v6517_v6  ;;  %v1822_v37 = vmul.f32 %v4454_v26, %v6520_v57 }
 0x55d   : > { %v1821_v20 = vmul.f32 %v4456_v1, %v6519_v45  ;;  %v1820_v22 = vmul.f32 %v4456_v1, %v6521_v16 }
 0x55f   : > { %v1859_v38 = vpack.c.bf16 %v1823_v52, %v1821_v20  ;;  %v4458_v34 = vpop.eup %4457  ;;  %v1858_v55 = vpack.c.bf16 %v1822_v37, %v1820_v22 }
 0x560   : > { %v4460_v29 = vpop.eup %4459  ;;  %v1827_v24 = vmul.f32 %v4458_v34, %v5635_v36  ;;  %v1826_v32 = vmul.f32 %v4458_v34, %v5631_v47 }
 0x561   : > { %v1825_v40 = vmul.f32 %v4460_v29, %v6522_v46  ;;  %v1824_v3 = vmul.f32 %v4460_v29, %v6523_v51 }
 0x563   : > { %2017 = vmatmul.mubr.bf16.gmra.mrb[68].mxu0 %v1850_v42  ;;  %v1861_v0 = vpack.c.bf16 %v1827_v24, %v1825_v40  ;;  %v1860_v23 = vpack.c.bf16 %v1826_v32, %v1824_v3 }
 0x564   : > { %2024 = vmatprep.mubr.bf16.mxu0 %v1853_v49 }
 0x56b   : > { %2025 = vmatmul.mubr.bf16.gmra.mrb[72].mxu0 %v1852_v21 }
 0x56c   : > { %2032 = vmatprep.mubr.bf16.mxu0 %v1855_v10 }
 0x573   : > { %2033 = vmatmul.mubr.bf16.gmra.mrb[76].mxu0 %v1854_v14 }
 0x574   : > { %2040 = vmatprep.mubr.bf16.mxu0 %v1857_v9 }
 0x57b   : > { %2041 = vmatmul.mubr.bf16.gmra.mrb[80].mxu0 %v1856_v4 }
 0x57c   : > { %2048 = vmatprep.mubr.bf16.mxu0 %v1859_v38 }
 0x583   : > { %2049 = vmatmul.mubr.bf16.gmra.mrb[84].mxu0 %v1858_v55 }
 0x584   : > { %2056 = vmatprep.mubr.bf16.mxu0 %v1861_v0 }
 0x589   : > { %v1732_v18 = vpop.xlane.xlu1 %1731 }
 0x58a   : > { %4461 = vrcp.f32 %v1732_v18 }
 0x58b   : > { %2057 = vmatmul.mubr.bf16.gmra.mrb[88].mxu0 %v1860_v23 }
 0x594   : > { %v4462_v33 = vpop.eup %4461 }
 0x595   : > { %v1829_v62 = vmul.f32 %v4462_v33, %v5647_v48  ;;  %v1828_v5 = vmul.f32 %v4462_v33, %v6524_v59 }
 0x5cc   : > { %v1735_v13 = vpop.xlane.xlu0 %1734 }
 0x5cd   : > { %4463 = vrcp.f32 %v1735_v13 }
 0x5d3   : > { %v3798_v19 = vpop.f32.mrb[32].mxu0 }
 0x5d4   : > { %v3799_v36 = vpop.f32.mrb[33].mxu0 }
 0x5d5   : > { %v3800_v35 = vadd.f32 %v3799_v36, %v3798_v19  ;;  %v3801_v56 = vpop.f32.mrb[34].mxu0 }
 0x5d6   : > { %v3802_v42 = vpop.f32.mrb[35].mxu0 }
 0x5d7   : > { %v4464_v49 = vpop.eup %4463  ;;  %v3803_v58 = vadd.f32 %v3802_v42, %v3801_v56 }
 0x5d8   : > { %v1831_v47 = vmul.f32 %v4464_v49, %v5671_v53  ;;  %v1830_v43 = vmul.f32 %v4464_v49, %v5669_v63 }
 0x5d9   : > { %v2074_v30 = vpack.c.bf16 %v3803_v58, %v3800_v35 }
 0x5da   : > { %v1863_v8 = vpack.c.bf16 %v1831_v47, %v1829_v62  ;;  %v1862_v7 = vpack.c.bf16 %v1830_v43, %v1828_v5 }
 0x5db   : > { %v3804_v21 = vpop.f32.mrb[36].mxu0  ;;  %4046 = vmatprep.mubr.msk.bf16.mxu1 %vm725_vm2, %v2074_v30  ;;  %v4265_v30 = vld [vmem:[%s6330_s4] sm:$0xff]  }
 0x5dc   : > { %2064 = vmatprep.mubr.bf16.mxu0 %v1863_v8  ;;  %v3805_v10 = vpop.f32.mrb[37].mxu0  ;;  %4078 = vmatprep.subr.bf16.mxu0 %v4265_v30 }
 0x5dd   : > { %v3806_v39 = vadd.f32 %v3805_v10, %v3804_v21  ;;  %2065 = vmatmul.mubr.bf16.gmra.mrb[92].mxu0 %v1862_v7  ;;  %v3807_v60 = vpop.f32.mrb[38].mxu0  ;;  %v4266_v21 = vld [vmem:[%s6330_s4 + $0x8] sm:$0xff]  }
 0x5de   : > { %v3808_v25 = vpop.f32.mrb[39].mxu0  ;;  %4079 = vmatpush3.bf16.msra.mxu0 %v4265_v30  ;;  %v6531_v30 = vld [vmem:[#allocation6_spill] sm:$0xff] }
 0x5df   : > { %v3809_v28 = vadd.f32 %v3808_v25, %v3807_v60  ;;  %4080 = vmatprep.subr.bf16.mxu0 %v4266_v21 }
 0x5e1   : > { %v2075_v48 = vpack.c.bf16 %v3809_v28, %v3806_v39 }
 0x5e2   : > { %4081 = vmatpush3.bf16.msra.mxu0 %v4266_v21 }
 0x5e3   : > { %v3810_v11 = vpop.f32.mrb[40].mxu0  ;;  %4047 = vmatmul.mubr.msk.bf16.vlgmr.msra.gmra.mrb[96].mxu1 %vm725_vm2, %v2075_v48 }
 0x5e4   : > { %v3811_v53 = vpop.f32.mrb[41].mxu0 }
 0x5e5   : > { %v3812_v2 = vadd.f32 %v3811_v53, %v3810_v11  ;;  %v3813_v63 = vpop.f32.mrb[42].mxu0 }
 0x5e6   : > { %v3814_v61 = vpop.f32.mrb[43].mxu0 }
 0x5e7   : > { %v3815_v31 = vadd.f32 %v3814_v61, %v3813_v63 }
 0x5e9   : > { %v2076_v54 = vpack.c.bf16 %v3815_v31, %v3812_v2 }
 0x5eb   : > { %v3816_v27 = vpop.f32.mrb[44].mxu0  ;;  %4050 = vmatprep.mubr.msk.bf16.mxu1 %vm725_vm2, %v2076_v54 }
 0x5ec   : > { %v3817_v44 = vpop.f32.mrb[45].mxu0 }
 0x5ed   : > { %v3818_v12 = vadd.f32 %v3817_v44, %v3816_v27  ;;  %v3819_v14 = vpop.f32.mrb[46].mxu0 }
 0x5ee   : > { %v3820_v9 = vpop.f32.mrb[47].mxu0 }
 0x5ef   : > { %v3821_v26 = vadd.f32 %v3820_v9, %v3819_v14 }
 0x5f1   : > { %v2077_v1 = vpack.c.bf16 %v3821_v26, %v3818_v12 }
 0x5f3   : > { %v3822_v41 = vpop.f32.mrb[48].mxu0  ;;  %4051 = vmatmul.mubr.msk.bf16.gmra.mrb[100].mxu1 %vm725_vm2, %v2077_v1 }
 0x5f4   : > { %v3823_v15 = vpop.f32.mrb[49].mxu0 }
 0x5f5   : > { %v3824_v6 = vadd.f32 %v3823_v15, %v3822_v41  ;;  %v3825_v52 = vpop.f32.mrb[50].mxu0 }
 0x5f6   : > { %v3826_v50 = vpop.f32.mrb[51].mxu0 }
 0x5f7   : > { %v3827_v17 = vadd.f32 %v3826_v50, %v3825_v52 }
 0x5f9   : > { %v2078_v45 = vpack.c.bf16 %v3827_v17, %v3824_v6 }
 0x5fb   : > { %4054 = vmatprep.mubr.msk.bf16.mxu1 %vm725_vm2, %v2078_v45 }
 0x616   : > { %v3828_v20 = vpop.f32.mrb[52].mxu0 }
 0x617   : > { %v3829_v4 = vpop.f32.mrb[53].mxu0 }
 0x618   : > { %v3830_v38 = vadd.f32 %v3829_v4, %v3828_v20  ;;  %v3831_v34 = vpop.f32.mrb[54].mxu0 }
 0x619   : > { %v3832_v29 = vpop.f32.mrb[55].mxu0 }
 0x61a   : > { %v3833_v57 = vadd.f32 %v3832_v29, %v3831_v34 }
 0x61c   : > { %v2079_v37 = vpack.c.bf16 %v3833_v57, %v3830_v38 }
 0x61e   : > { %v3834_v24 = vpop.f32.mrb[56].mxu0  ;;  %4055 = vmatmul.mubr.msk.bf16.gmra.mrb[104].mxu1 %vm725_vm2, %v2079_v37 }
 0x61f   : > { %v3835_v16 = vpop.f32.mrb[57].mxu0 }
 0x620   : > { %v3836_v22 = vadd.f32 %v3835_v16, %v3834_v24  ;;  %v3837_v46 = vpop.f32.mrb[58].mxu0 }
 0x621   : > { %v3838_v40 = vpop.f32.mrb[59].mxu0 }
 0x622   : > { %v3839_v55 = vadd.f32 %v3838_v40, %v3837_v46 }
 0x624   : > { %v2080_v0 = vpack.c.bf16 %v3839_v55, %v3836_v22 }
 0x626   : > { %v3840_v32 = vpop.f32.mrb[60].mxu0  ;;  %4058 = vmatprep.mubr.msk.bf16.mxu1 %vm725_vm2, %v2080_v0 }
 0x627   : > { %v3841_v51 = vpop.f32.mrb[61].mxu0 }
 0x628   : > { %v3842_v3 = vadd.f32 %v3841_v51, %v3840_v32  ;;  %v3843_v23 = vpop.f32.mrb[62].mxu0  ;;  %v5749_v32 = vld [vmem:[%s6333_s7 + $0x2] ss:$0 sm:$0xff] }
 0x629   : > { %v3844_v18 = vpop.f32.mrb[63].mxu0 }
 0x62a   : > { %v3845_v13 = vadd.f32 %v3844_v18, %v3843_v23 }
 0x62c   : > { %v2081_v19 = vpack.c.bf16 %v3845_v13, %v3842_v3 }
 0x62e   : > { %v3846_v36 = vpop.f32.mrb[64].mxu0  ;;  %4059 = vmatmul.mubr.msk.bf16.gmra.mrb[108].mxu1 %vm725_vm2, %v2081_v19 }
 0x62f   : > { %v3847_v33 = vpop.f32.mrb[65].mxu0 }
 0x630   : > { %v3848_v35 = vadd.f32 %v3847_v33, %v3846_v36  ;;  %v3849_v56 = vpop.f32.mrb[66].mxu0 }
 0x631   : > { %v3850_v42 = vpop.f32.mrb[67].mxu0 }
 0x632   : > { %v3851_v49 = vadd.f32 %v3850_v42, %v3849_v56  ;;  %v6525_v56 = vld [vmem:[#allocation7_spill] sm:$0xff] }
 0x633   : > { %v6526_v42 = vmax.f32 %v6525_v56, 0.0 }
 0x634   : > { %v2082_v58 = vpack.c.bf16 %v3851_v49, %v3848_v35 }
 0x636   : > { %v3852_v62 = vpop.f32.mrb[68].mxu0  ;;  %4062 = vmatprep.mubr.msk.bf16.mxu1 %vm725_vm2, %v2082_v58  ;;  %v6527_v58 = vld [vmem:[#allocation5_spill] sm:$0xff] }
 0x637   : > { %v3853_v47 = vpop.f32.mrb[69].mxu0 }
 0x638   : > { %v3854_v59 = vadd.f32 %v3853_v47, %v3852_v62  ;;  %v3855_v5 = vpop.f32.mrb[70].mxu0  ;;  %v6528_v62 = vmax.f32 %v6527_v58, 0.0 }
 0x639   : > { %v3856_v43 = vpop.f32.mrb[71].mxu0 }
 0x63a   : > { %v3857_v8 = vadd.f32 %v3856_v43, %v3855_v5 }
 0x63c   : > { %v2083_v7 = vpack.c.bf16 %v3857_v8, %v3854_v59  ;;  %v6529_v59 = vld [vmem:[#allocation8_spill] sm:$0xff]  ;;  %v6532_v8 = vmax.f32 %v6531_v30, 0.0  ;;  %v6551_v30 = vld [vmem:[#allocation17_spill] sm:$0xff] }
 0x63d   : > { %v6530_v5 = vmax.f32 %v6529_v59, 0.0 }
 0x63e   : > { %v3858_v10 = vpop.f32.mrb[72].mxu0  ;;  %4063 = vmatmul.mubr.msk.bf16.gmra.mrb[112].mxu1 %vm725_vm2, %v2083_v7 }
 0x63f   : > { %v3859_v39 = vpop.f32.mrb[73].mxu0 }
 0x640   : > { %v3860_v60 = vadd.f32 %v3859_v39, %v3858_v10  ;;  %v3861_v25 = vpop.f32.mrb[74].mxu0 }
 0x641   : > { %v3862_v28 = vpop.f32.mrb[75].mxu0 }
 0x642   : > { %v3863_v48 = vadd.f32 %v3862_v28, %v3861_v25 }
 0x644   : > { %v2084_v11 = vpack.c.bf16 %v3863_v48, %v3860_v60 }
 0x646   : > { %v3864_v53 = vpop.f32.mrb[76].mxu0  ;;  %4066 = vmatprep.mubr.msk.bf16.mxu1 %vm725_vm2, %v2084_v11 }
 0x647   : > { %v3865_v2 = vpop.f32.mrb[77].mxu0 }
 0x648   : > { %v3866_v63 = vadd.f32 %v3865_v2, %v3864_v53  ;;  %v3867_v61 = vpop.f32.mrb[78].mxu0 }
 0x649   : > { %v3868_v31 = vpop.f32.mrb[79].mxu0 }
 0x64a   : > { %v3869_v54 = vadd.f32 %v3868_v31, %v3867_v61 }
 0x64c   : > { %v2085_v27 = vpack.c.bf16 %v3869_v54, %v3866_v63  ;;  %v6533_v63 = vld [vmem:[#allocation11_spill] sm:$0xff]  ;;  %v6535_v54 = vld [vmem:[#allocation9_spill] sm:$0xff] }
 0x64d   : > { %v6534_v61 = vmax.f32 %v6533_v63, 0.0 }
 0x64e   : > { %v3870_v44 = vpop.f32.mrb[80].mxu0  ;;  %4067 = vmatmul.mubr.msk.bf16.gmra.mrb[116].mxu1 %vm725_vm2, %v2085_v27  ;;  %v6536_v27 = vmax.f32 %v6535_v54, 0.0 }
 0x64f   : > { %v3871_v12 = vpop.f32.mrb[81].mxu0 }
 0x650   : > { %v3872_v14 = vadd.f32 %v3871_v12, %v3870_v44  ;;  %v3873_v9 = vpop.f32.mrb[82].mxu0  ;;  %v6537_v12 = vld [vmem:[#allocation12_spill] sm:$0xff] }
 0x651   : > { %v3874_v26 = vpop.f32.mrb[83].mxu0 }
 0x652   : > { %v3875_v1 = vadd.f32 %v3874_v26, %v3873_v9  ;;  %v6539_v26 = vld [vmem:[#allocation10_spill] sm:$0xff] }
 0x654   : > { %v2086_v41 = vpack.c.bf16 %v3875_v1, %v3872_v14  ;;  %v6538_v14 = vmax.f32 %v6537_v12, 0.0  ;;  %v6540_v1 = vmax.f32 %v6539_v26, 0.0 }
 0x656   : > { %v3876_v15 = vpop.f32.mrb[84].mxu0  ;;  %4070 = vmatprep.mubr.msk.bf16.mxu1 %vm725_vm2, %v2086_v41 }
 0x657   : > { %v3877_v6 = vpop.f32.mrb[85].mxu0 }
 0x658   : > { %v3878_v52 = vadd.f32 %v3877_v6, %v3876_v15  ;;  %v3879_v50 = vpop.f32.mrb[86].mxu0 }
 0x659   : > { %v3880_v17 = vpop.f32.mrb[87].mxu0 }
 0x65a   : > { %v3881_v45 = vadd.f32 %v3880_v17, %v3879_v50 }
 0x65c   : > { %v2087_v20 = vpack.c.bf16 %v3881_v45, %v3878_v52 }
 0x65e   : > { %v3882_v4 = vpop.f32.mrb[88].mxu0  ;;  %4071 = vmatmul.mubr.msk.bf16.gmra.mrb[120].mxu1 %vm725_vm2, %v2087_v20 }
 0x65f   : > { %v3883_v38 = vpop.f32.mrb[89].mxu0 }
 0x660   : > { %v3884_v34 = vadd.f32 %v3883_v38, %v3882_v4  ;;  %v3885_v29 = vpop.f32.mrb[90].mxu0 }
 0x661   : > { %v3886_v57 = vpop.f32.mrb[91].mxu0 }
 0x662   : > { %v3887_v37 = vadd.f32 %v3886_v57, %v3885_v29  ;;  %v6541_v29 = vld [vmem:[#allocation15_spill] sm:$0xff] }
 0x663   : > { %v6542_v57 = vmax.f32 %v6541_v29, 0.0 }
 0x664   : > { %v2088_v24 = vpack.c.bf16 %v3887_v37, %v3884_v34 }
 0x666   : > { %4074 = vmatprep.mubr.msk.bf16.mxu1 %vm725_vm2, %v2088_v24  ;;  %v6543_v24 = vld [vmem:[#allocation13_spill] sm:$0xff] }
 0x6b0   : > { %v3888_v16 = vpop.f32.mrb[92].mxu0 }
 0x6b1   : > { %v3889_v22 = vpop.f32.mrb[93].mxu0 }
 0x6b2   : > { %v3890_v46 = vadd.f32 %v3889_v22, %v3888_v16  ;;  %v3891_v40 = vpop.f32.mrb[94].mxu0  ;;  %v6544_v16 = vmax.f32 %v6543_v24, 0.0 }
 0x6b3   : > { %v3892_v55 = vpop.f32.mrb[95].mxu0 }
 0x6b4   : > { %v3893_v0 = vadd.f32 %v3892_v55, %v3891_v40 }
 0x6b6   : > { %v2089_v51 = vpack.c.bf16 %v3893_v0, %v3890_v46  ;;  %v4048_v3 = vpop.f32.mrb[96].mxu1  ;;  %v6545_v46 = vld [vmem:[#allocation16_spill] sm:$0xff]  ;;  %v6547_v0 = vld [vmem:[#allocation14_spill] sm:$0xff] }
 0x6b7   : > { %v2192_v23 = vpop.f32.mrb[97].mxu1  ;;  %v2201_v19 = vadd.f32 %v4048_v3, %v5749_v32  ;;  %v6546_v40 = vmax.f32 %v6545_v46, 0.0 }
 0x6b8   : > { %v2193_v18 = vadd.f32 %v5749_v32, %v2192_v23  ;;  %4075 = vmatmul.mubr.msk.bf16.gmra.mrb[124].mxu1 %vm725_vm2, %v2089_v51  ;;  %v4049_v13 = vpop.f32.mrb[98].mxu1  ;;  %v6548_v51 = vmax.f32 %v6547_v0, 0.0 }
 0x6b9   : > { %v2204_v36 = vadd.f32 %v4049_v13, %v5749_v32  ;;  %v2195_v33 = vpop.f32.mrb[99].mxu1  ;;  %v5770_v7 = vadd.f32 %v2201_v19, %v6532_v8  ;;  %v6552_v8 = vmax.f32 %v6551_v30, 0.0 }
 0x6ba   : > { %v2196_v35 = vadd.f32 %v5749_v32, %v2195_v33  ;;  %v5762_v47 = vadd.f32 %v2193_v18, %v6528_v62  ;;  %v6549_v62 = vld [vmem:[#allocation19_spill] sm:$0xff] }
 0x6bb   : > { %v5758_v49 = vadd.f32 %v2204_v36, %v6526_v42  ;;  %v6550_v59 = vmax.f32 %v6549_v62, 0.0  ;;  %v6569_v62 = vld [vmem:[#allocation28_spill] sm:$0xff] }
 0x6bc   : > { %v5766_v43 = vadd.f32 %v2196_v35, %v6530_v5 }
 0x6bd   : > { %v2354_v10 = vpack.c.bf16 %v5758_v49, %v5770_v7 }
 0x6be   : > { %v2353_v21 = vpack.c.bf16 %v5766_v43, %v5762_v47 }
 0x6c0   : > { %4082 = vmatprep.mubr.msk.bf16.mxu0 %vm725_vm2, %v2353_v21 }
 0x6c1   : > { %4083 = vmatmul.mubr.msk.bf16.vlgmr.msra.gmra.mrb[96].mxu0 %vm725_vm2, %v2354_v10  ;;  %v6553_v10 = vld [vmem:[#allocation20_spill] sm:$0xff] }
 0x6c6   : > { %v4052_v39 = vpop.f32.mrb[100].mxu1 }
 0x6c7   : > { %v2208_v60 = vpop.f32.mrb[101].mxu1  ;;  %v2217_v48 = vadd.f32 %v4052_v39, %v5749_v32  ;;  %v6554_v39 = vmax.f32 %v6553_v10, 0.0 }
 0x6c8   : > { %v2209_v25 = vadd.f32 %v5749_v32, %v2208_v60  ;;  %v4053_v28 = vpop.f32.mrb[102].mxu1 }
 0x6c9   : > { %v2220_v11 = vadd.f32 %v4053_v28, %v5749_v32  ;;  %v2211_v53 = vpop.f32.mrb[103].mxu1  ;;  %v5796_v41 = vadd.f32 %v2217_v48, %v6540_v1  ;;  %v6557_v1 = vld [vmem:[#allocation23_spill] sm:$0xff] }
 0x6ca   : > { %v2212_v2 = vadd.f32 %v5749_v32, %v2211_v53  ;;  %v5788_v44 = vadd.f32 %v2209_v25, %v6536_v27  ;;  %v6555_v25 = vld [vmem:[#allocation18_spill] sm:$0xff] }
 0x6cb   : > { %v5784_v31 = vadd.f32 %v2220_v11, %v6534_v61  ;;  %v6556_v28 = vmax.f32 %v6555_v25, 0.0 }
 0x6cc   : > { %v5792_v9 = vadd.f32 %v2212_v2, %v6538_v14 }
 0x6cd   : > { %v2356_v6 = vpack.c.bf16 %v5784_v31, %v5796_v41 }
 0x6ce   : > { %v2355_v15 = vpack.c.bf16 %v5792_v9, %v5788_v44 }
 0x6d0   : > { %4086 = vmatprep.mubr.msk.bf16.mxu0 %vm725_vm2, %v2355_v15  ;;  %v6558_v15 = vmax.f32 %v6557_v1, 0.0 }
 0x6d1   : > { %4087 = vmatmul.mubr.msk.bf16.gmra.mrb[100].mxu0 %vm725_vm2, %v2356_v6 }
 0x6f1   : > { %v4056_v52 = vpop.f32.mrb[104].mxu1 }
 0x6f2   : > { %v2224_v50 = vpop.f32.mrb[105].mxu1  ;;  %v2233_v20 = vadd.f32 %v4056_v52, %v5749_v32  ;;  %v6559_v52 = vld [vmem:[#allocation21_spill] sm:$0xff] }
 0x6f3   : > { %v2225_v17 = vadd.f32 %v5749_v32, %v2224_v50  ;;  %v4057_v45 = vpop.f32.mrb[106].mxu1  ;;  %v6560_v50 = vmax.f32 %v6559_v52, 0.0 }
 0x6f4   : > { %v2236_v4 = vadd.f32 %v4057_v45, %v5749_v32  ;;  %v2227_v38 = vpop.f32.mrb[107].mxu1  ;;  %v5822_v3 = vadd.f32 %v2233_v20, %v6548_v51  ;;  %v6561_v45 = vld [vmem:[#allocation24_spill] sm:$0xff] }
 0x6f5   : > { %v2228_v34 = vadd.f32 %v5749_v32, %v2227_v38  ;;  %v5814_v22 = vadd.f32 %v2225_v17, %v6544_v16  ;;  %v6562_v20 = vmax.f32 %v6561_v45, 0.0  ;;  %v6563_v38 = vld [vmem:[#allocation22_spill] sm:$0xff] }
 0x6f6   : > { %v5810_v37 = vadd.f32 %v2236_v4, %v6542_v57  ;;  %v6575_v45 = vld [vmem:[#allocation30_spill] sm:$0xff] }
 0x6f7   : > { %v5818_v55 = vadd.f32 %v2228_v34, %v6546_v40  ;;  %v6564_v34 = vmax.f32 %v6563_v38, 0.0 }
 0x6f8   : > { %v2358_v18 = vpack.c.bf16 %v5810_v37, %v5822_v3 }
 0x6f9   : > { %v2357_v23 = vpack.c.bf16 %v5818_v55, %v5814_v22 }
 0x6fb   : > { %4090 = vmatprep.mubr.msk.bf16.mxu0 %vm725_vm2, %v2357_v23 }
 0x6fc   : > { %4091 = vmatmul.mubr.msk.bf16.gmra.mrb[104].mxu0 %vm725_vm2, %v2358_v18 }
 0x701   : > { %v4060_v13 = vpop.f32.mrb[108].mxu1 }
 0x702   : > { %v2240_v19 = vpop.f32.mrb[109].mxu1  ;;  %v2249_v35 = vadd.f32 %v4060_v13, %v5749_v32 }
 0x703   : > { %v2241_v36 = vadd.f32 %v5749_v32, %v2240_v19  ;;  %v4061_v33 = vpop.f32.mrb[110].mxu1  ;;  %v6565_v19 = vld [vmem:[#allocation27_spill] sm:$0xff] }
 0x704   : > { %v2252_v56 = vadd.f32 %v4061_v33, %v5749_v32  ;;  %v2243_v42 = vpop.f32.mrb[111].mxu1  ;;  %v5848_v48 = vadd.f32 %v2249_v35, %v6556_v28  ;;  %v4267_v35 = vld [vmem:[%s6331_s5] sm:$0xff]  }
 0x705   : > { %v2244_v58 = vadd.f32 %v5749_v32, %v2243_v42  ;;  %v5840_v21 = vadd.f32 %v2241_v36, %v6552_v8  ;;  %v6566_v36 = vmax.f32 %v6565_v19, 0.0  ;;  %v6571_v8 = vld [vmem:[#allocation25_spill] sm:$0xff]  ;;  %4114 = vmatprep.subr.bf16.mxu1 %v4267_v35 }
 0x706   : > { %v5836_v5 = vadd.f32 %v2252_v56, %v6550_v59  ;;  %v6567_v56 = vld [vmem:[#allocation26_spill] sm:$0xff]  ;;  %v6570_v59 = vmax.f32 %v6569_v62, 0.0  ;;  %v6572_v10 = vmax.f32 %v6571_v8, 0.0  ;;  %4115 = vmatpush3.bf16.msra.mxu1 %v4267_v35  ;;  %v6581_v62 = vld [vmem:[#allocation35_spill] sm:$0xff] }
 0x707   : > { %v5844_v60 = vadd.f32 %v2244_v58, %v6554_v39  ;;  %v6568_v42 = vmax.f32 %v6567_v56, 0.0 }
 0x708   : > { %v2360_v53 = vpack.c.bf16 %v5836_v5, %v5848_v48 }
 0x709   : > { %v2359_v11 = vpack.c.bf16 %v5844_v60, %v5840_v21 }
 0x70b   : > { %4094 = vmatprep.mubr.msk.bf16.mxu0 %vm725_vm2, %v2359_v11  ;;  %v4268_v11 = vld [vmem:[%s6331_s5 + $0x8] sm:$0xff]  }
 0x70c   : > { %4095 = vmatmul.mubr.msk.bf16.gmra.mrb[108].mxu0 %vm725_vm2, %v2360_v53  ;;  %4116 = vmatprep.subr.bf16.mxu1 %v4268_v11  ;;  %v4269_v53 = vld [vmem:[%s6331_s5 + $0x10] sm:$0xff]  }
 0x70d   : > { %4117 = vmatpush3.bf16.msra.mxu1 %v4268_v11  ;;  %v6587_v11 = vld [vmem:[#allocation36_spill] sm:$0xff] }
 0x70e   : > { %4118 = vmatprep.subr.bf16.mxu1 %v4269_v53 }
 0x711   : > { %v4064_v2 = vpop.f32.mrb[112].mxu1  ;;  %4119 = vmatpush3.bf16.msra.mxu1 %v4269_v53  ;;  %v6588_v53 = vmax.f32 %v6587_v11, 0.0 }
 0x712   : > { %v2256_v63 = vpop.f32.mrb[113].mxu1  ;;  %v2265_v27 = vadd.f32 %v4064_v2, %v5749_v32 }
 0x713   : > { %v2257_v61 = vadd.f32 %v5749_v32, %v2256_v63  ;;  %v4065_v54 = vpop.f32.mrb[114].mxu1 }
 0x714   : > { %v2268_v12 = vadd.f32 %v4065_v54, %v5749_v32  ;;  %v2259_v14 = vpop.f32.mrb[115].mxu1  ;;  %v5874_v29 = vadd.f32 %v2265_v27, %v6564_v34  ;;  %v6577_v34 = vld [vmem:[#allocation32_spill] sm:$0xff] }
 0x715   : > { %v2260_v26 = vadd.f32 %v5749_v32, %v2259_v14  ;;  %v5866_v17 = vadd.f32 %v2257_v61, %v6560_v50  ;;  %v4270_v61 = vld [vmem:[%s6331_s5 + $0x18] sm:$0xff]  }
 0x716   : > { %v5862_v6 = vadd.f32 %v2268_v12, %v6558_v15  ;;  %4120 = vmatprep.subr.bf16.mxu1 %v4270_v61  ;;  %v6573_v15 = vld [vmem:[#allocation31_spill] sm:$0xff] }
 0x717   : > { %v5870_v4 = vadd.f32 %v2260_v26, %v6562_v20  ;;  %4121 = vmatpush3.bf16.msra.mxu1 %v4270_v61  ;;  %v6574_v52 = vmax.f32 %v6573_v15, 0.0  ;;  %v6576_v20 = vmax.f32 %v6575_v45, 0.0 }
 0x718   : > { %v2362_v24 = vpack.c.bf16 %v5862_v6, %v5874_v29 }
 0x719   : > { %v2361_v57 = vpack.c.bf16 %v5870_v4, %v5866_v17 }
 0x71b   : > { %4098 = vmatprep.mubr.msk.bf16.mxu0 %vm725_vm2, %v2361_v57  ;;  %v6578_v57 = vmax.f32 %v6577_v34, 0.0 }
 0x71c   : > { %4099 = vmatmul.mubr.msk.bf16.gmra.mrb[112].mxu0 %vm725_vm2, %v2362_v24 }
 0x721   : > { %v4068_v16 = vpop.f32.mrb[116].mxu1 }
 0x722   : > { %v2272_v46 = vpop.f32.mrb[117].mxu1  ;;  %v2281_v51 = vadd.f32 %v4068_v16, %v5749_v32  ;;  %v6579_v16 = vld [vmem:[#allocation29_spill] sm:$0xff] }
 0x723   : > { %v2273_v40 = vadd.f32 %v5749_v32, %v2272_v46  ;;  %v4069_v0 = vpop.f32.mrb[118].mxu1  ;;  %v6580_v46 = vmax.f32 %v6579_v16, 0.0 }
 0x724   : > { %v2284_v23 = vadd.f32 %v4069_v0, %v5749_v32  ;;  %v2275_v18 = vpop.f32.mrb[119].mxu1  ;;  %v5903_v39 = vadd.f32 %v2281_v51, %v6572_v10  ;;  %v6584_v10 = vld [vmem:[#allocation34_spill] sm:$0xff] }
 0x725   : > { %v2276_v13 = vadd.f32 %v5749_v32, %v2275_v18  ;;  %v5895_v58 = vadd.f32 %v2273_v40, %v6568_v42 }
 0x726   : > { %v5888_v33 = vadd.f32 %v2284_v23, %v6566_v36 }
 0x727   : > { %v5899_v30 = vadd.f32 %v2276_v13, %v6570_v59  ;;  %v6582_v59 = vmax.f32 %v6581_v62, 0.0 }
 0x728   : > { %v2364_v28 = vpack.c.bf16 %v5888_v33, %v5903_v39 }
 0x729   : > { %v2363_v25 = vpack.c.bf16 %v5899_v30, %v5895_v58 }
 0x72b   : > { %4102 = vmatprep.mubr.msk.bf16.mxu0 %vm725_vm2, %v2363_v25  ;;  %v6585_v25 = vmax.f32 %v6584_v10, 0.0 }
 0x72c   : > { %4103 = vmatmul.mubr.msk.bf16.gmra.mrb[116].mxu0 %vm725_vm2, %v2364_v28 }
 0x731   : > { %v4072_v2 = vpop.f32.mrb[120].mxu1 }
 0x732   : > { %v2288_v63 = vpop.f32.mrb[121].mxu1  ;;  %v2297_v12 = vadd.f32 %v4072_v2, %v5749_v32 }
 0x733   : > { %v2289_v54 = vadd.f32 %v5749_v32, %v2288_v63  ;;  %v4073_v27 = vpop.f32.mrb[122].mxu1  ;;  %v6590_v63 = vld [vmem:[#allocation33_spill] sm:$0xff] }
 0x734   : > { %v2300_v14 = vadd.f32 %v4073_v27, %v5749_v32  ;;  %v2291_v26 = vpop.f32.mrb[123].mxu1  ;;  %v5938_v40 = vadd.f32 %v2297_v12, %v6580_v46  ;;  %v6591_v61 = vmax.f32 %v6590_v63, 0.0 }
 0x735   : > { %v2292_v1 = vadd.f32 %v5749_v32, %v2291_v26  ;;  %v5930_v38 = vadd.f32 %v2289_v54, %v6576_v20 }
 0x736   : > { %v5926_v50 = vadd.f32 %v2300_v14, %v6574_v52 }
 0x737   : > { %v5934_v24 = vadd.f32 %v2292_v1, %v6578_v57 }
 0x738   : > { %v2366_v51 = vpack.c.bf16 %v5926_v50, %v5938_v40 }
 0x739   : > { %v2365_v0 = vpack.c.bf16 %v5934_v24, %v5930_v38 }
 0x73b   : > { %4106 = vmatprep.mubr.msk.bf16.mxu0 %vm725_vm2, %v2365_v0 }
 0x73c   : > { %4107 = vmatmul.mubr.msk.bf16.gmra.mrb[120].mxu0 %vm725_vm2, %v2366_v51 }
 0x78b   : > { %v4076_v23 = vpop.f32.mrb[124].mxu1 }
 0x78c   : > { %v2304_v18 = vpop.f32.mrb[125].mxu1  ;;  %v2313_v36 = vadd.f32 %v4076_v23, %v5749_v32 }
 0x78d   : > { %v2305_v13 = vadd.f32 %v5749_v32, %v2304_v18  ;;  %v4077_v19 = vpop.f32.mrb[126].mxu1 }
 0x78e   : > { %v2316_v35 = vadd.f32 %v4077_v19, %v5749_v32  ;;  %v2307_v56 = vpop.f32.mrb[127].mxu1  ;;  %v5964_v54 = vadd.f32 %v2313_v36, %v6591_v61 }
 0x78f   : > { %v2308_v42 = vadd.f32 %v5749_v32, %v2307_v56  ;;  %v5956_v28 = vadd.f32 %v2305_v13, %v6585_v25  ;;  %v5969_v32 = vld [vmem:[%s6333_s7 + $0x3] ss:$0 sm:$0xff] }
 0x790   : > { %v5952_v8 = vadd.f32 %v2316_v35, %v6582_v59 }
 0x791   : > { %6586 = vst [vmem:[#allocation43_spill] sm:$0xff] %v5956_v28  ;;  %v5960_v2 = vadd.f32 %v2308_v42, %v6588_v53 }
 0x792   : > { %6583 = vst [vmem:[#allocation42_spill] sm:$0xff] %v5952_v8  ;;  %v2368_v12 = vpack.c.bf16 %v5952_v8, %v5964_v54 }
 0x793   : > { %6589 = vst [vmem:[#allocation44_spill] sm:$0xff] %v5960_v2  ;;  %v2367_v27 = vpack.c.bf16 %v5960_v2, %v5956_v28 }
 0x794   : > { %v4084_v14 = vpop.f32.mrb[96].mxu0 }
 0x795   : > { %v2480_v26 = vadd.f32 %v4084_v14, %v5969_v32  ;;  %4110 = vmatprep.mubr.msk.bf16.mxu0 %vm725_vm2, %v2367_v27  ;;  %v2471_v1 = vpop.f32.mrb[97].mxu0 }
 0x796   : > { %v2472_v15 = vadd.f32 %v5969_v32, %v2471_v1  ;;  %4111 = vmatmul.mubr.msk.bf16.gmra.mrb[124].mxu0 %vm725_vm2, %v2368_v12  ;;  %v4085_v52 = vpop.f32.mrb[98].mxu0 }
 0x797   : > { %v2632_v45 = vmul.f32 0.044715, %v2480_v26  ;;  %v2483_v20 = vadd.f32 %v4085_v52, %v5969_v32  ;;  %v2474_v34 = vpop.f32.mrb[99].mxu0 }
 0x798   : > { %v2630_v57 = vmul.f32 0.044715, %v2472_v15  ;;  %v2475_v16 = vadd.f32 %v5969_v32, %v2474_v34 }
 0x799   : > { %v2664_v46 = vmul.f32 %v2632_v45, %v2480_v26  ;;  %v2633_v0 = vmul.f32 0.044715, %v2483_v20 }
 0x79a   : > { %v2662_v51 = vmul.f32 %v2630_v57, %v2472_v15  ;;  %v2631_v23 = vmul.f32 0.044715, %v2475_v16  ;;  %v2599_v28 = vmul.f32 0.5, %v2475_v16 }
 0x79b   : > { %v2696_v18 = vmul.f32 %v2664_v46, %v2480_v26  ;;  %v2665_v13 = vmul.f32 %v2633_v0, %v2483_v20 }
 0x79c   : > { %v2694_v19 = vmul.f32 %v2662_v51, %v2472_v15  ;;  %v2663_v36 = vmul.f32 %v2631_v23, %v2475_v16 }
 0x79d   : > { %v2728_v35 = vadd.f32 %v2696_v18, %v2480_v26  ;;  %v2697_v56 = vmul.f32 %v2665_v13, %v2483_v20 }
 0x79e   : > { %v2726_v42 = vadd.f32 %v2694_v19, %v2472_v15  ;;  %v2695_v62 = vmul.f32 %v2663_v36, %v2475_v16 }
 0x79f   : > { %v2760_v59 = vmul.f32 0.7978846, %v2728_v35  ;;  %v2729_v10 = vadd.f32 %v2697_v56, %v2483_v20  ;;  %v2600_v56 = vmul.f32 0.5, %v2480_v26 }
 0x7a0   : > { %v2758_v25 = vmul.f32 0.7978846, %v2726_v42  ;;  %v2727_v11 = vadd.f32 %v2695_v62, %v2475_v16 }
 0x7a1   : > { %4465 = vtanh.f32 %v2760_v59  ;;  %v2761_v53 = vmul.f32 0.7978846, %v2729_v10 }
 0x7a2   : > { %4467 = vtanh.f32 %v2758_v25  ;;  %v2759_v63 = vmul.f32 0.7978846, %v2727_v11 }
 0x7a3   : > { %4469 = vtanh.f32 %v2761_v53  ;;  %v2598_v53 = vmul.f32 0.5, %v2472_v15 }
 0x7a4   : > { %4471 = vtanh.f32 %v2759_v63  ;;  %v4088_v61 = vpop.f32.mrb[100].mxu0 }
 0x7a5   : > { %v2496_v27 = vadd.f32 %v4088_v61, %v5969_v32  ;;  %v2487_v12 = vpop.f32.mrb[101].mxu0 }
 0x7a6   : > { %v2488_v14 = vadd.f32 %v5969_v32, %v2487_v12  ;;  %v4089_v1 = vpop.f32.mrb[102].mxu0  ;;  %v2601_v12 = vmul.f32 0.5, %v2483_v20 }
 0x7a7   : > { %v2636_v52 = vmul.f32 0.044715, %v2496_v27  ;;  %v2499_v45 = vadd.f32 %v4089_v1, %v5969_v32  ;;  %v2490_v34 = vpop.f32.mrb[103].mxu0 }
 0x7a8   : > { %v2634_v57 = vmul.f32 0.044715, %v2488_v14  ;;  %v2491_v46 = vadd.f32 %v5969_v32, %v2490_v34 }
 0x7a9   : > { %v2668_v0 = vmul.f32 %v2636_v52, %v2496_v27  ;;  %v2637_v51 = vmul.f32 0.044715, %v2499_v45 }
 0x7aa   : > { %v2666_v23 = vmul.f32 %v2634_v57, %v2488_v14  ;;  %v2635_v18 = vmul.f32 0.044715, %v2491_v46 }
 0x7ab   : > { %v4466_v13 = vpop.eup %4465  ;;  %v2700_v19 = vmul.f32 %v2668_v0, %v2496_v27  ;;  %v2669_v36 = vmul.f32 %v2637_v51, %v2499_v45 }
 0x7ac   : > { %v4468_v35 = vpop.eup %4467  ;;  %v2824_v42 = vadd.f32 1.0, %v4466_v13  ;;  %v2698_v62 = vmul.f32 %v2666_v23, %v2488_v14  ;;  %v2667_v59 = vmul.f32 %v2635_v18, %v2491_v46 }
 0x7ad   : > { %v4470_v10 = vpop.eup %4469  ;;  %v2732_v25 = vadd.f32 %v2700_v19, %v2496_v27  ;;  %v2701_v11 = vmul.f32 %v2669_v36, %v2499_v45  ;;  %v2822_v63 = vadd.f32 1.0, %v4468_v35 }
 0x7ae   : > { %v4472_v61 = vpop.eup %4471  ;;  %v2825_v1 = vadd.f32 1.0, %v4470_v10  ;;  %v2730_v52 = vadd.f32 %v2698_v62, %v2488_v14  ;;  %v2699_v34 = vmul.f32 %v2667_v59, %v2491_v46  ;;  %v2856_v51 = vmul.f32 %v2824_v42, %v2600_v56 }
 0x7af   : > { %v2764_v57 = vmul.f32 0.7978846, %v2732_v25  ;;  %v2733_v2 = vadd.f32 %v2701_v11, %v2499_v45  ;;  %v2823_v0 = vadd.f32 1.0, %v4472_v61  ;;  %v2854_v18 = vmul.f32 %v2822_v63, %v2598_v53 }
 0x7b0   : > { %v2857_v8 = vmul.f32 %v2825_v1, %v2601_v12  ;;  %v2762_v26 = vmul.f32 0.7978846, %v2730_v52  ;;  %v2731_v13 = vadd.f32 %v2699_v34, %v2491_v46  ;;  %v2605_v10 = vmul.f32 0.5, %v2499_v45 }
 0x7b1   : > { %4473 = vtanh.f32 %v2764_v57  ;;  %v2765_v23 = vmul.f32 0.7978846, %v2733_v2  ;;  %v2855_v19 = vmul.f32 %v2823_v0, %v2599_v28  ;;  %v2604_v2 = vmul.f32 0.5, %v2496_v27 }
 0x7b2   : > { %v2887_v36 = vpack.c.bf16 %v2857_v8, %v2856_v51  ;;  %4475 = vtanh.f32 %v2762_v26  ;;  %v2763_v15 = vmul.f32 0.7978846, %v2731_v13  ;;  %v2602_v8 = vmul.f32 0.5, %v2488_v14 }
 0x7b3   : > { %4477 = vtanh.f32 %v2765_v23  ;;  %v2886_v20 = vpack.c.bf16 %v2855_v19, %v2854_v18  ;;  %v2603_v25 = vmul.f32 0.5, %v2491_v46 }
 0x7b4   : > { %4479 = vtanh.f32 %v2763_v15 }
 0x7b5   : > { %4122 = vmatprep.mubr.msk.bf16.mxu1 %vm2938_vm3, %v2886_v20 }
 0x7b6   : > { %4123 = vmatmul.mubr.msk.bf16.vlgmr.msra.gmra.mrb[128].mxu1 %vm2938_vm3, %v2887_v36 }
 0x7bb   : > { %v4474_v16 = vpop.eup %4473 }
 0x7bc   : > { %v4476_v35 = vpop.eup %4475  ;;  %v2828_v56 = vadd.f32 1.0, %v4474_v16 }
 0x7bd   : > { %v4478_v42 = vpop.eup %4477  ;;  %v2826_v62 = vadd.f32 1.0, %v4476_v35 }
 0x7be   : > { %v4480_v59 = vpop.eup %4479  ;;  %v2829_v28 = vadd.f32 1.0, %v4478_v42  ;;  %v2860_v53 = vmul.f32 %v2828_v56, %v2604_v2 }
 0x7bf   : > { %v2827_v11 = vadd.f32 1.0, %v4480_v59  ;;  %v2858_v61 = vmul.f32 %v2826_v62, %v2602_v8 }
 0x7c0   : > { %v2861_v63 = vmul.f32 %v2829_v28, %v2605_v10 }
 0x7c1   : > { %v2859_v12 = vmul.f32 %v2827_v11, %v2603_v25 }
 0x7c2   : > { %v2889_v1 = vpack.c.bf16 %v2861_v63, %v2860_v53 }
 0x7c3   : > { %v2888_v52 = vpack.c.bf16 %v2859_v12, %v2858_v61 }
 0x7c5   : > { %4126 = vmatprep.mubr.msk.bf16.mxu1 %vm2938_vm3, %v2888_v52 }
 0x7c6   : > { %4127 = vmatmul.mubr.msk.bf16.gmra.mrb[132].mxu1 %vm2938_vm3, %v2889_v1 }
 0x7cf   : > { %v4092_v34 = vpop.f32.mrb[104].mxu0 }
 0x7d0   : > { %v2512_v57 = vadd.f32 %v4092_v34, %v5969_v32  ;;  %v2503_v0 = vpop.f32.mrb[105].mxu0 }
 0x7d1   : > { %v2504_v27 = vadd.f32 %v5969_v32, %v2503_v0  ;;  %v4093_v45 = vpop.f32.mrb[106].mxu0 }
 0x7d2   : > { %v2640_v14 = vmul.f32 0.044715, %v2512_v57  ;;  %v2515_v46 = vadd.f32 %v4093_v45, %v5969_v32  ;;  %v2506_v51 = vpop.f32.mrb[107].mxu0 }
 0x7d3   : > { %v2638_v26 = vmul.f32 0.044715, %v2504_v27  ;;  %v2507_v13 = vadd.f32 %v5969_v32, %v2506_v51 }
 0x7d4   : > { %v2672_v23 = vmul.f32 %v2640_v14, %v2512_v57  ;;  %v2641_v18 = vmul.f32 0.044715, %v2515_v46 }
 0x7d5   : > { %v2670_v19 = vmul.f32 %v2638_v26, %v2504_v27  ;;  %v2639_v36 = vmul.f32 0.044715, %v2507_v13 }
 0x7d6   : > { %v2704_v15 = vmul.f32 %v2672_v23, %v2512_v57  ;;  %v2673_v20 = vmul.f32 %v2641_v18, %v2515_v46 }
 0x7d7   : > { %v2702_v16 = vmul.f32 %v2670_v19, %v2504_v27  ;;  %v2671_v35 = vmul.f32 %v2639_v36, %v2507_v13 }
 0x7d8   : > { %v2736_v56 = vadd.f32 %v2704_v15, %v2512_v57  ;;  %v2705_v42 = vmul.f32 %v2673_v20, %v2515_v46 }
 0x7d9   : > { %v2734_v62 = vadd.f32 %v2702_v16, %v2504_v27  ;;  %v2703_v59 = vmul.f32 %v2671_v35, %v2507_v13 }
 0x7da   : > { %v2768_v2 = vmul.f32 0.7978846, %v2736_v56  ;;  %v2737_v10 = vadd.f32 %v2705_v42, %v2515_v46  ;;  %v2608_v56 = vmul.f32 0.5, %v2512_v57 }
 0x7db   : > { %v2766_v28 = vmul.f32 0.7978846, %v2734_v62  ;;  %v2735_v8 = vadd.f32 %v2703_v59, %v2507_v13 }
 0x7dc   : > { %4481 = vtanh.f32 %v2768_v2  ;;  %v2769_v25 = vmul.f32 0.7978846, %v2737_v10  ;;  %v2606_v10 = vmul.f32 0.5, %v2504_v27 }
 0x7dd   : > { %4483 = vtanh.f32 %v2766_v28  ;;  %v2767_v11 = vmul.f32 0.7978846, %v2735_v8 }
 0x7de   : > { %4485 = vtanh.f32 %v2769_v25 }
 0x7df   : > { %4487 = vtanh.f32 %v2767_v11  ;;  %v4096_v53 = vpop.f32.mrb[108].mxu0 }
 0x7e0   : > { %v5994_v63 = vadd.f32 %v4096_v53, %v5969_v32  ;;  %v2519_v61 = vpop.f32.mrb[109].mxu0  ;;  %v2609_v53 = vmul.f32 0.5, %v2515_v46 }
 0x7e1   : > { %v5997_v12 = vadd.f32 %v5969_v32, %v2519_v61  ;;  %v4097_v1 = vpop.f32.mrb[110].mxu0 }
 0x7e2   : > { %v2644_v52 = vmul.f32 0.044715, %v5994_v63  ;;  %v6001_v34 = vadd.f32 %v4097_v1, %v5969_v32  ;;  %v2522_v0 = vpop.f32.mrb[111].mxu0 }
 0x7e3   : > { %v2642_v45 = vmul.f32 0.044715, %v5997_v12  ;;  %v6005_v14 = vadd.f32 %v5969_v32, %v2522_v0  ;;  %v2607_v0 = vmul.f32 0.5, %v2507_v13 }
 0x7e4   : > { %v2676_v51 = vmul.f32 %v2644_v52, %v5994_v63  ;;  %v2645_v26 = vmul.f32 0.044715, %v6001_v34 }
 0x7e5   : > { %v2674_v23 = vmul.f32 %v2642_v45, %v5997_v12  ;;  %v2643_v18 = vmul.f32 0.044715, %v6005_v14 }
 0x7e6   : > { %v4482_v19 = vpop.eup %4481  ;;  %v2708_v36 = vmul.f32 %v2676_v51, %v5994_v63  ;;  %v2677_v15 = vmul.f32 %v2645_v26, %v6001_v34 }
 0x7e7   : > { %v4484_v20 = vpop.eup %4483  ;;  %v2706_v16 = vmul.f32 %v2674_v23, %v5997_v12  ;;  %v2675_v35 = vmul.f32 %v2643_v18, %v6005_v14  ;;  %v2832_v42 = vadd.f32 1.0, %v4482_v19 }
 0x7e8   : > { %v4486_v62 = vpop.eup %4485  ;;  %v2740_v59 = vadd.f32 %v2708_v36, %v5994_v63  ;;  %v2709_v2 = vmul.f32 %v2677_v15, %v6001_v34  ;;  %v2830_v28 = vadd.f32 1.0, %v4484_v20 }
 0x7e9   : > { %v4488_v8 = vpop.eup %4487  ;;  %v2738_v25 = vadd.f32 %v2706_v16, %v5997_v12  ;;  %v2707_v11 = vmul.f32 %v2675_v35, %v6005_v14  ;;  %v2833_v61 = vadd.f32 1.0, %v4486_v62  ;;  %v2864_v26 = vmul.f32 %v2832_v42, %v2608_v56 }
 0x7ea   : > { %v2772_v1 = vmul.f32 0.7978846, %v2740_v59  ;;  %v2741_v52 = vadd.f32 %v2709_v2, %v6001_v34  ;;  %v2831_v57 = vadd.f32 1.0, %v4488_v8  ;;  %v2862_v18 = vmul.f32 %v2830_v28, %v2606_v10 }
 0x7eb   : > { %v2770_v45 = vmul.f32 0.7978846, %v2738_v25  ;;  %v2739_v51 = vadd.f32 %v2707_v11, %v6005_v14  ;;  %v2865_v23 = vmul.f32 %v2833_v61, %v2609_v53 }
 0x7ec   : > { %4489 = vtanh.f32 %v2772_v1  ;;  %v2773_v27 = vmul.f32 0.7978846, %v2741_v52  ;;  %v2863_v19 = vmul.f32 %v2831_v57, %v2607_v0 }
 0x7ed   : > { %4491 = vtanh.f32 %v2770_v45  ;;  %v2771_v36 = vmul.f32 0.7978846, %v2739_v51  ;;  %v2891_v15 = vpack.c.bf16 %v2865_v23, %v2864_v26  ;;  %v2612_v45 = vmul.f32 0.5, %v5994_v63 }
 0x7ee   : > { %4493 = vtanh.f32 %v2773_v27  ;;  %v2890_v46 = vpack.c.bf16 %v2863_v19, %v2862_v18  ;;  %v2610_v18 = vmul.f32 0.5, %v5997_v12 }
 0x7ef   : > { %4495 = vtanh.f32 %v2771_v36  ;;  %v4100_v20 = vpop.f32.mrb[112].mxu0 }
 0x7f0   : > { %v6022_v16 = vadd.f32 %v4100_v20, %v5969_v32  ;;  %v2535_v13 = vpop.f32.mrb[113].mxu0  ;;  %4130 = vmatprep.mubr.msk.bf16.mxu1 %vm2938_vm3, %v2890_v46  ;;  %v2613_v20 = vmul.f32 0.5, %v6001_v34 }
 0x7f1   : > { %v6026_v35 = vadd.f32 %v5969_v32, %v2535_v13  ;;  %v4101_v56 = vpop.f32.mrb[114].mxu0  ;;  %4131 = vmatmul.mubr.msk.bf16.gmra.mrb[136].mxu1 %vm2938_vm3, %v2891_v15 }
 0x7f2   : > { %v2648_v42 = vmul.f32 0.044715, %v6022_v16  ;;  %v6031_v62 = vadd.f32 %v4101_v56, %v5969_v32  ;;  %v2538_v59 = vpop.f32.mrb[115].mxu0 }
 0x7f3   : > { %v2646_v2 = vmul.f32 0.044715, %v6026_v35  ;;  %v6035_v10 = vadd.f32 %v5969_v32, %v2538_v59 }
 0x7f4   : > { %v2680_v28 = vmul.f32 %v2648_v42, %v6022_v16  ;;  %v2649_v8 = vmul.f32 0.044715, %v6031_v62  ;;  %v2611_v42 = vmul.f32 0.5, %v6005_v14 }
 0x7f5   : > { %v2678_v25 = vmul.f32 %v2646_v2, %v6026_v35  ;;  %v2647_v11 = vmul.f32 0.044715, %v6035_v10 }
 0x7f6   : > { %v4490_v53 = vpop.eup %4489  ;;  %v2712_v61 = vmul.f32 %v2680_v28, %v6022_v16  ;;  %v2681_v1 = vmul.f32 %v2649_v8, %v6031_v62 }
 0x7f7   : > { %v4492_v52 = vpop.eup %4491  ;;  %v2710_v0 = vmul.f32 %v2678_v25, %v6026_v35  ;;  %v2679_v57 = vmul.f32 %v2647_v11, %v6035_v10  ;;  %v2836_v51 = vadd.f32 1.0, %v4490_v53 }
 0x7f8   : > { %v4494_v26 = vpop.eup %4493  ;;  %v2744_v23 = vadd.f32 %v2712_v61, %v6022_v16  ;;  %v2713_v27 = vmul.f32 %v2681_v1, %v6031_v62  ;;  %v2834_v19 = vadd.f32 1.0, %v4492_v52 }
 0x7f9   : > { %v4496_v36 = vpop.eup %4495  ;;  %v2742_v15 = vadd.f32 %v2710_v0, %v6026_v35  ;;  %v2711_v46 = vmul.f32 %v2679_v57, %v6035_v10  ;;  %v2837_v13 = vadd.f32 1.0, %v4494_v26  ;;  %v2868_v8 = vmul.f32 %v2836_v51, %v2612_v45 }
 0x7fa   : > { %v2776_v56 = vmul.f32 0.7978846, %v2744_v23  ;;  %v2745_v63 = vadd.f32 %v2713_v27, %v6031_v62  ;;  %v2835_v59 = vadd.f32 1.0, %v4496_v36  ;;  %v2866_v11 = vmul.f32 %v2834_v19, %v2610_v18 }
 0x7fb   : > { %v2774_v2 = vmul.f32 0.7978846, %v2742_v15  ;;  %v2743_v28 = vadd.f32 %v2711_v46, %v6035_v10  ;;  %v2869_v12 = vmul.f32 %v2837_v13, %v2613_v20 }
 0x7fc   : > { %4497 = vtanh.f32 %v2776_v56  ;;  %v2777_v25 = vmul.f32 0.7978846, %v2745_v63  ;;  %v2867_v53 = vmul.f32 %v2835_v59, %v2611_v42 }
 0x7fd   : > { %4499 = vtanh.f32 %v2774_v2  ;;  %v2775_v61 = vmul.f32 0.7978846, %v2743_v28  ;;  %v2893_v1 = vpack.c.bf16 %v2869_v12, %v2868_v8  ;;  %v2616_v2 = vmul.f32 0.5, %v6022_v16 }
 0x7fe   : > { %4501 = vtanh.f32 %v2777_v25  ;;  %v2892_v34 = vpack.c.bf16 %v2867_v53, %v2866_v11  ;;  %v2614_v11 = vmul.f32 0.5, %v6026_v35 }
 0x7ff   : > { %4503 = vtanh.f32 %v2775_v61  ;;  %v4104_v52 = vpop.f32.mrb[116].mxu0 }
 0x800   : > { %v6056_v0 = vadd.f32 %v4104_v52, %v5969_v32  ;;  %v2551_v14 = vpop.f32.mrb[117].mxu0  ;;  %4134 = vmatprep.mubr.msk.bf16.mxu1 %vm2938_vm3, %v2892_v34  ;;  %v2617_v52 = vmul.f32 0.5, %v6031_v62  ;;  %v4271_v62 = vld [vmem:[%s6332_s6] sm:$0xff]  }
 0x801   : > { %v6060_v57 = vadd.f32 %v5969_v32, %v2551_v14  ;;  %v4105_v45 = vpop.f32.mrb[118].mxu0  ;;  %4135 = vmatmul.mubr.msk.bf16.gmra.mrb[140].mxu1 %vm2938_vm3, %v2893_v1  ;;  %4154 = vmatprep.subr.bf16.mxu0 %v4271_v62 }
 0x802   : > { %v2652_v51 = vmul.f32 0.044715, %v6056_v0  ;;  %v6065_v26 = vadd.f32 %v4105_v45, %v5969_v32  ;;  %v2554_v23 = vpop.f32.mrb[119].mxu0  ;;  %4155 = vmatpush3.bf16.msra.mxu0 %v4271_v62 }
 0x803   : > { %v2650_v27 = vmul.f32 0.044715, %v6060_v57  ;;  %v6069_v18 = vadd.f32 %v5969_v32, %v2554_v23  ;;  %v2618_v62 = vmul.f32 0.5, %v6060_v57 }
 0x804   : > { %v2684_v19 = vmul.f32 %v2652_v51, %v6056_v0  ;;  %v2653_v36 = vmul.f32 0.044715, %v6065_v26  ;;  %v2615_v51 = vmul.f32 0.5, %v6035_v10 }
 0x805   : > { %v2682_v15 = vmul.f32 %v2650_v27, %v6060_v57  ;;  %v2651_v46 = vmul.f32 0.044715, %v6069_v18 }
 0x806   : > { %v4498_v20 = vpop.eup %4497  ;;  %v2716_v13 = vmul.f32 %v2684_v19, %v6056_v0  ;;  %v2685_v56 = vmul.f32 %v2653_v36, %v6065_v26 }
 0x807   : > { %v4500_v63 = vpop.eup %4499  ;;  %v2714_v42 = vmul.f32 %v2682_v15, %v6060_v57  ;;  %v2683_v59 = vmul.f32 %v2651_v46, %v6069_v18  ;;  %v2840_v28 = vadd.f32 1.0, %v4498_v20 }
 0x808   : > { %v4502_v8 = vpop.eup %4501  ;;  %v2748_v12 = vadd.f32 %v2716_v13, %v6056_v0  ;;  %v2717_v25 = vmul.f32 %v2685_v56, %v6065_v26  ;;  %v2838_v53 = vadd.f32 1.0, %v4500_v63 }
 0x809   : > { %v4504_v61 = vpop.eup %4503  ;;  %v2746_v1 = vadd.f32 %v2714_v42, %v6060_v57  ;;  %v2715_v34 = vmul.f32 %v2683_v59, %v6069_v18  ;;  %v2841_v14 = vadd.f32 1.0, %v4502_v8  ;;  %v2872_v36 = vmul.f32 %v2840_v28, %v2616_v2  ;;  %v4272_v2 = vld [vmem:[%s6332_s6 + $0x8] sm:$0xff]  }
 0x80a   : > { %v2780_v45 = vmul.f32 0.7978846, %v2748_v12  ;;  %v2749_v16 = vadd.f32 %v2717_v25, %v6065_v26  ;;  %v2839_v23 = vadd.f32 1.0, %v4504_v61  ;;  %v2870_v46 = vmul.f32 %v2838_v53, %v2614_v11  ;;  %4156 = vmatprep.subr.bf16.mxu0 %v4272_v2 }
 0x80b   : > { %v2778_v27 = vmul.f32 0.7978846, %v2746_v1  ;;  %v2747_v19 = vadd.f32 %v2715_v34, %v6069_v18  ;;  %v2873_v35 = vmul.f32 %v2841_v14, %v2617_v52  ;;  %4157 = vmatpush3.bf16.msra.mxu0 %v4272_v2 }
 0x80c   : > { %4505 = vtanh.f32 %v2780_v45  ;;  %v2781_v15 = vmul.f32 0.7978846, %v2749_v16  ;;  %v2871_v20 = vmul.f32 %v2839_v23, %v2615_v51 }
 0x80d   : > { %4507 = vtanh.f32 %v2778_v27  ;;  %v2779_v13 = vmul.f32 0.7978846, %v2747_v19  ;;  %v2895_v56 = vpack.c.bf16 %v2873_v35, %v2872_v36  ;;  %v2620_v36 = vmul.f32 0.5, %v6056_v0 }
 0x80e   : > { %4509 = vtanh.f32 %v2781_v15  ;;  %v2894_v63 = vpack.c.bf16 %v2871_v20, %v2870_v46 }
 0x80f   : > { %4511 = vtanh.f32 %v2779_v13  ;;  %v4108_v10 = vpop.f32.mrb[120].mxu0 }
 0x810   : > { %v2576_v42 = vadd.f32 %v4108_v10, %v5969_v32  ;;  %v2567_v59 = vpop.f32.mrb[121].mxu0  ;;  %4138 = vmatprep.mubr.msk.bf16.mxu1 %vm2938_vm3, %v2894_v63 }
 0x811   : > { %v2568_v28 = vadd.f32 %v5969_v32, %v2567_v59  ;;  %v4109_v8 = vpop.f32.mrb[122].mxu0  ;;  %4139 = vmatmul.mubr.msk.bf16.gmra.mrb[144].mxu1 %vm2938_vm3, %v2895_v56  ;;  %v2621_v59 = vmul.f32 0.5, %v6065_v26 }
 0x812   : > { %v2656_v12 = vmul.f32 0.044715, %v2576_v42  ;;  %v2579_v25 = vadd.f32 %v4109_v8, %v5969_v32  ;;  %v2570_v11 = vpop.f32.mrb[123].mxu0 }
 0x813   : > { %v2654_v53 = vmul.f32 0.044715, %v2568_v28  ;;  %v2571_v61 = vadd.f32 %v5969_v32, %v2570_v11  ;;  %v2619_v11 = vmul.f32 0.5, %v6069_v18 }
 0x814   : > { %v2688_v1 = vmul.f32 %v2656_v12, %v2576_v42  ;;  %v2657_v34 = vmul.f32 0.044715, %v2579_v25 }
 0x815   : > { %v2686_v52 = vmul.f32 %v2654_v53, %v2568_v28  ;;  %v2655_v14 = vmul.f32 0.044715, %v2571_v61 }
 0x816   : > { %v4506_v45 = vpop.eup %4505  ;;  %v2720_v16 = vmul.f32 %v2688_v1, %v2576_v42  ;;  %v2689_v51 = vmul.f32 %v2657_v34, %v2579_v25 }
 0x817   : > { %v4508_v23 = vpop.eup %4507  ;;  %v2718_v27 = vmul.f32 %v2686_v52, %v2568_v28  ;;  %v2687_v19 = vmul.f32 %v2655_v14, %v2571_v61  ;;  %v2844_v35 = vadd.f32 1.0, %v4506_v45 }
 0x818   : > { %v4510_v15 = vpop.eup %4509  ;;  %v2752_v46 = vadd.f32 %v2720_v16, %v2576_v42  ;;  %v2721_v20 = vmul.f32 %v2689_v51, %v2579_v25  ;;  %v2842_v13 = vadd.f32 1.0, %v4508_v23 }
 0x819   : > { %v4512_v56 = vpop.eup %4511  ;;  %v2750_v63 = vadd.f32 %v2718_v27, %v2568_v28  ;;  %v2719_v10 = vmul.f32 %v2687_v19, %v2571_v61  ;;  %v2845_v2 = vadd.f32 1.0, %v4510_v15  ;;  %v2876_v34 = vmul.f32 %v2844_v35, %v2620_v36 }
 0x81a   : > { %v2784_v8 = vmul.f32 0.7978846, %v2752_v46  ;;  %v2753_v12 = vadd.f32 %v2721_v20, %v2579_v25  ;;  %v2843_v53 = vadd.f32 1.0, %v4512_v56  ;;  %v2874_v45 = vmul.f32 %v2842_v13, %v2618_v62 }
 0x81b   : > { %v2782_v1 = vmul.f32 0.7978846, %v2750_v63  ;;  %v2751_v0 = vadd.f32 %v2719_v10, %v2571_v61  ;;  %v2877_v52 = vmul.f32 %v2845_v2, %v2621_v59  ;;  %v2624_v15 = vmul.f32 0.5, %v2576_v42 }
 0x81c   : > { %4513 = vtanh.f32 %v2784_v8  ;;  %v2785_v14 = vmul.f32 0.7978846, %v2753_v12  ;;  %v2875_v57 = vmul.f32 %v2843_v53, %v2619_v11  ;;  %v2625_v46 = vmul.f32 0.5, %v2579_v25 }
 0x81d   : > { %4515 = vtanh.f32 %v2782_v1  ;;  %v2783_v16 = vmul.f32 0.7978846, %v2751_v0  ;;  %v2897_v51 = vpack.c.bf16 %v2877_v52, %v2876_v34  ;;  %v2622_v62 = vmul.f32 0.5, %v2568_v28 }
 0x81e   : > { %4517 = vtanh.f32 %v2785_v14  ;;  %v2896_v23 = vpack.c.bf16 %v2875_v57, %v2874_v45  ;;  %v2623_v13 = vmul.f32 0.5, %v2571_v61 }
 0x81f   : > { %4519 = vtanh.f32 %v2783_v16 }
 0x820   : > { %4142 = vmatprep.mubr.msk.bf16.mxu1 %vm2938_vm3, %v2896_v23 }
 0x821   : > { %4143 = vmatmul.mubr.msk.bf16.gmra.mrb[148].mxu1 %vm2938_vm3, %v2897_v51 }
 0x826   : > { %v4514_v26 = vpop.eup %4513 }
 0x827   : > { %v4516_v18 = vpop.eup %4515  ;;  %v2848_v27 = vadd.f32 1.0, %v4514_v26 }
 0x828   : > { %v4518_v19 = vpop.eup %4517  ;;  %v2846_v36 = vadd.f32 1.0, %v4516_v18 }
 0x829   : > { %v4520_v35 = vpop.eup %4519  ;;  %v2849_v20 = vadd.f32 1.0, %v4518_v19  ;;  %v2880_v63 = vmul.f32 %v2848_v27, %v2624_v15 }
 0x82a   : > { %v2847_v56 = vadd.f32 1.0, %v4520_v35  ;;  %v2878_v59 = vmul.f32 %v2846_v36, %v2622_v62 }
 0x82b   : > { %v2881_v10 = vmul.f32 %v2849_v20, %v2625_v46 }
 0x82c   : > { %v2879_v2 = vmul.f32 %v2847_v56, %v2623_v13 }
 0x82d   : > { %v2899_v8 = vpack.c.bf16 %v2881_v10, %v2880_v63 }
 0x82e   : > { %v2898_v12 = vpack.c.bf16 %v2879_v2, %v2878_v59 }
 0x830   : > { %4146 = vmatprep.mubr.msk.bf16.mxu1 %vm2938_vm3, %v2898_v12 }
 0x831   : > { %4147 = vmatmul.mubr.msk.bf16.gmra.mrb[152].mxu1 %vm2938_vm3, %v2899_v8 }
 0x869   : > { %v4112_v11 = vpop.f32.mrb[124].mxu0 }
 0x86a   : > { %v2592_v53 = vadd.f32 %v4112_v11, %v5969_v32  ;;  %v2583_v1 = vpop.f32.mrb[125].mxu0 }
 0x86b   : > { %v2584_v42 = vadd.f32 %v5969_v32, %v2583_v1  ;;  %v4113_v25 = vpop.f32.mrb[126].mxu0 }
 0x86c   : > { %v2660_v28 = vmul.f32 0.044715, %v2592_v53  ;;  %v2595_v61 = vadd.f32 %v4113_v25, %v5969_v32  ;;  %v2586_v0 = vpop.f32.mrb[127].mxu0  ;;  %v2628_v12 = vmul.f32 0.5, %v2592_v53 }
 0x86d   : > { %v2658_v34 = vmul.f32 0.044715, %v2584_v42  ;;  %v2587_v52 = vadd.f32 %v5969_v32, %v2586_v0  ;;  %v2626_v25 = vmul.f32 0.5, %v2584_v42 }
 0x86e   : > { %v2692_v14 = vmul.f32 %v2660_v28, %v2592_v53  ;;  %v2661_v45 = vmul.f32 0.044715, %v2595_v61  ;;  %v2629_v11 = vmul.f32 0.5, %v2595_v61 }
 0x86f   : > { %v2690_v57 = vmul.f32 %v2658_v34, %v2584_v42  ;;  %v2659_v16 = vmul.f32 0.044715, %v2587_v52  ;;  %v2627_v28 = vmul.f32 0.5, %v2587_v52 }
 0x870   : > { %v2724_v51 = vmul.f32 %v2692_v14, %v2592_v53  ;;  %v2693_v23 = vmul.f32 %v2661_v45, %v2595_v61 }
 0x871   : > { %v2722_v26 = vmul.f32 %v2690_v57, %v2584_v42  ;;  %v2691_v18 = vmul.f32 %v2659_v16, %v2587_v52  ;;  %v6116_v16 = vld [vmem:[%s6333_s7 + $0x4] ss:$0 sm:$0xff] }
 0x872   : > { %v2756_v27 = vadd.f32 %v2724_v51, %v2592_v53  ;;  %v2725_v19 = vmul.f32 %v2693_v23, %v2595_v61 }
 0x873   : > { %v2754_v36 = vadd.f32 %v2722_v26, %v2584_v42  ;;  %v2723_v35 = vmul.f32 %v2691_v18, %v2587_v52 }
 0x874   : > { %v2788_v15 = vmul.f32 0.7978846, %v2756_v27  ;;  %v2757_v46 = vadd.f32 %v2725_v19, %v2595_v61 }
 0x875   : > { %v2786_v20 = vmul.f32 0.7978846, %v2754_v36  ;;  %v2755_v62 = vadd.f32 %v2723_v35, %v2587_v52 }
 0x876   : > { %4521 = vtanh.f32 %v2788_v15  ;;  %v2789_v13 = vmul.f32 0.7978846, %v2757_v46 }
 0x877   : > { %4523 = vtanh.f32 %v2786_v20  ;;  %v2787_v32 = vmul.f32 0.7978846, %v2755_v62 }
 0x878   : > { %4525 = vtanh.f32 %v2789_v13 }
 0x879   : > { %4527 = vtanh.f32 %v2787_v32 }
 0x880   : > { %v4522_v56 = vpop.eup %4521 }
 0x881   : > { %v4524_v63 = vpop.eup %4523  ;;  %v2852_v10 = vadd.f32 1.0, %v4522_v56 }
 0x882   : > { %v4526_v59 = vpop.eup %4525  ;;  %v2850_v2 = vadd.f32 1.0, %v4524_v63 }
 0x883   : > { %v4528_v8 = vpop.eup %4527  ;;  %v2853_v1 = vadd.f32 1.0, %v4526_v59  ;;  %v2884_v34 = vmul.f32 %v2852_v10, %v2628_v12 }
 0x884   : > { %v2851_v0 = vadd.f32 1.0, %v4528_v8  ;;  %v2882_v45 = vmul.f32 %v2850_v2, %v2626_v25 }
 0x885   : > { %v2885_v14 = vmul.f32 %v2853_v1, %v2629_v11 }
 0x886   : > { %v2883_v57 = vmul.f32 %v2851_v0, %v2627_v28 }
 0x887   : > { %v2901_v51 = vpack.c.bf16 %v2885_v14, %v2884_v34 }
 0x888   : > { %v2900_v23 = vpack.c.bf16 %v2883_v57, %v2882_v45 }
 0x889   : > { %v4124_v26 = vpop.f32.mrb[128].mxu1 }
 0x88a   : > { %v3030_v18 = vadd.f32 %v4124_v26, %v6116_v16  ;;  %4150 = vmatprep.mubr.msk.bf16.mxu1 %vm2938_vm3, %v2900_v23  ;;  %v3021_v53 = vpop.f32.mrb[129].mxu1 }
 0x88b   : > { %v3022_v42 = vadd.f32 %v6116_v16, %v3021_v53  ;;  %4151 = vmatmul.mubr.msk.bf16.gmra.mrb[156].mxu1 %vm2938_vm3, %v2901_v51  ;;  %v4125_v61 = vpop.f32.mrb[130].mxu1 }
 0x88c   : > { %v3033_v52 = vadd.f32 %v4125_v61, %v6116_v16  ;;  %v3024_v27 = vpop.f32.mrb[131].mxu1  ;;  %v3150_v36 = vadd.f32 %v3030_v18, %v5770_v7 }
 0x88d   : > { %v3025_v19 = vadd.f32 %v6116_v16, %v3024_v27  ;;  %v3148_v15 = vadd.f32 %v3022_v42, %v5762_v47 }
 0x88e   : > { %v3151_v35 = vadd.f32 %v3033_v52, %v5758_v49 }
 0x88f   : > { %v3149_v46 = vadd.f32 %v3025_v19, %v5766_v43 }
 0x890   : > { %v3182_v20 = vpack.c.bf16 %v3151_v35, %v3150_v36 }
 0x891   : > { %v3181_v62 = vpack.c.bf16 %v3149_v46, %v3148_v15 }
 0x893   : > { %4158 = vmatprep.mubr.msk.bf16.mxu0 %vm725_vm2, %v3181_v62 }
 0x894   : > { %4159 = vmatmul.mubr.msk.bf16.vlgmr.msra.gmra.mrb[128].mxu0 %vm725_vm2, %v3182_v20 }
 0x899   : > { %v4128_v13 = vpop.f32.mrb[132].mxu1 }
 0x89a   : > { %v3046_v32 = vadd.f32 %v4128_v13, %v6116_v16  ;;  %v3037_v56 = vpop.f32.mrb[133].mxu1 }
 0x89b   : > { %v3038_v63 = vadd.f32 %v6116_v16, %v3037_v56  ;;  %v4129_v10 = vpop.f32.mrb[134].mxu1 }
 0x89c   : > { %v3049_v7 = vadd.f32 %v4129_v10, %v6116_v16  ;;  %v3040_v49 = vpop.f32.mrb[135].mxu1  ;;  %v3154_v43 = vadd.f32 %v3046_v32, %v5796_v41 }
 0x89d   : > { %v3041_v47 = vadd.f32 %v6116_v16, %v3040_v49  ;;  %v3152_v2 = vadd.f32 %v3038_v63, %v5788_v44 }
 0x89e   : > { %v3155_v59 = vadd.f32 %v3049_v7, %v5784_v31 }
 0x89f   : > { %v3153_v8 = vadd.f32 %v3041_v47, %v5792_v9 }
 0x8a0   : > { %v3184_v12 = vpack.c.bf16 %v3155_v59, %v3154_v43 }
 0x8a1   : > { %v3183_v11 = vpack.c.bf16 %v3153_v8, %v3152_v2 }
 0x8a3   : > { %4162 = vmatprep.mubr.msk.bf16.mxu0 %vm725_vm2, %v3183_v11 }
 0x8a4   : > { %4163 = vmatmul.mubr.msk.bf16.gmra.mrb[132].mxu0 %vm725_vm2, %v3184_v12 }
 0x8c4   : > { %v4132_v1 = vpop.f32.mrb[136].mxu1 }
 0x8c5   : > { %v3062_v25 = vadd.f32 %v4132_v1, %v6116_v16  ;;  %v3053_v28 = vpop.f32.mrb[137].mxu1 }
 0x8c6   : > { %v3054_v0 = vadd.f32 %v6116_v16, %v3053_v28  ;;  %v4133_v34 = vpop.f32.mrb[138].mxu1 }
 0x8c7   : > { %v3065_v41 = vadd.f32 %v4133_v34, %v6116_v16  ;;  %v3056_v31 = vpop.f32.mrb[139].mxu1  ;;  %v3158_v9 = vadd.f32 %v3062_v25, %v5822_v3 }
 0x8c8   : > { %v3057_v44 = vadd.f32 %v6116_v16, %v3056_v31  ;;  %v3156_v45 = vadd.f32 %v3054_v0, %v5814_v22 }
 0x8c9   : > { %v3159_v14 = vadd.f32 %v3065_v41, %v5810_v37 }
 0x8ca   : > { %v3157_v57 = vadd.f32 %v3057_v44, %v5818_v55 }
 0x8cb   : > { %v3186_v51 = vpack.c.bf16 %v3159_v14, %v3158_v9 }
 0x8cc   : > { %v3185_v23 = vpack.c.bf16 %v3157_v57, %v3156_v45 }
 0x8ce   : > { %4166 = vmatprep.mubr.msk.bf16.mxu0 %vm725_vm2, %v3185_v23 }
 0x8cf   : > { %4167 = vmatmul.mubr.msk.bf16.gmra.mrb[136].mxu0 %vm725_vm2, %v3186_v51 }
 0x8d4   : > { %v4136_v26 = vpop.f32.mrb[140].mxu1 }
 0x8d5   : > { %v3078_v18 = vadd.f32 %v4136_v26, %v6116_v16  ;;  %v3069_v53 = vpop.f32.mrb[141].mxu1 }
 0x8d6   : > { %v3070_v42 = vadd.f32 %v6116_v16, %v3069_v53  ;;  %v4137_v61 = vpop.f32.mrb[142].mxu1 }
 0x8d7   : > { %v3081_v3 = vadd.f32 %v4137_v61, %v6116_v16  ;;  %v3072_v37 = vpop.f32.mrb[143].mxu1  ;;  %v3162_v55 = vadd.f32 %v3078_v18, %v5848_v48 }
 0x8d8   : > { %v3073_v22 = vadd.f32 %v6116_v16, %v3072_v37  ;;  %v3160_v27 = vadd.f32 %v3070_v42, %v5840_v21  ;;  %v6592_v42 = vld [vmem:[#allocation42_spill] sm:$0xff] }
 0x8d9   : > { %v3163_v52 = vadd.f32 %v3081_v3, %v5836_v5  ;;  %v6593_v3 = vld [vmem:[#allocation43_spill] sm:$0xff] }
 0x8da   : > { %v3161_v19 = vadd.f32 %v3073_v22, %v5844_v60  ;;  %v6594_v22 = vld [vmem:[#allocation44_spill] sm:$0xff] }
 0x8db   : > { %v3188_v36 = vpack.c.bf16 %v3163_v52, %v3162_v55 }
 0x8dc   : > { %v3187_v35 = vpack.c.bf16 %v3161_v19, %v3160_v27  ;;  %v6204_v27 = vld [vmem:[%s6333_s7 + $0x5] ss:$0 sm:$0xff] }
 0x8de   : > { %4170 = vmatprep.mubr.msk.bf16.mxu0 %vm725_vm2, %v3187_v35 }
 0x8df   : > { %4171 = vmatmul.mubr.msk.bf16.gmra.mrb[140].mxu0 %vm725_vm2, %v3188_v36 }
 0x8e4   : > { %v4140_v15 = vpop.f32.mrb[144].mxu1 }
 0x8e5   : > { %v3094_v46 = vadd.f32 %v4140_v15, %v6116_v16  ;;  %v3085_v20 = vpop.f32.mrb[145].mxu1 }
 0x8e6   : > { %v3086_v62 = vadd.f32 %v6116_v16, %v3085_v20  ;;  %v4141_v13 = vpop.f32.mrb[146].mxu1 }
 0x8e7   : > { %v3097_v48 = vadd.f32 %v4141_v13, %v6116_v16  ;;  %v3088_v5 = vpop.f32.mrb[147].mxu1  ;;  %v3166_v60 = vadd.f32 %v3094_v46, %v5874_v29 }
 0x8e8   : > { %v3089_v21 = vadd.f32 %v6116_v16, %v3088_v5  ;;  %v3164_v56 = vadd.f32 %v3086_v62, %v5866_v17 }
 0x8e9   : > { %v3167_v32 = vadd.f32 %v3097_v48, %v5862_v6 }
 0x8ea   : > { %v3165_v63 = vadd.f32 %v3089_v21, %v5870_v4 }
 0x8eb   : > { %v3190_v10 = vpack.c.bf16 %v3167_v32, %v3166_v60 }
 0x8ec   : > { %v3189_v7 = vpack.c.bf16 %v3165_v63, %v3164_v56 }
 0x8ee   : > { %4174 = vmatprep.mubr.msk.bf16.mxu0 %vm725_vm2, %v3189_v7 }
 0x8ef   : > { %4175 = vmatmul.mubr.msk.bf16.gmra.mrb[144].mxu0 %vm725_vm2, %v3190_v10 }
 0x8f4   : > { %v4144_v49 = vpop.f32.mrb[148].mxu1 }
 0x8f5   : > { %v3110_v47 = vadd.f32 %v4144_v49, %v6116_v16  ;;  %v3101_v43 = vpop.f32.mrb[149].mxu1 }
 0x8f6   : > { %v3102_v59 = vadd.f32 %v6116_v16, %v3101_v43  ;;  %v4145_v2 = vpop.f32.mrb[150].mxu1 }
 0x8f7   : > { %v3113_v29 = vadd.f32 %v4145_v2, %v6116_v16  ;;  %v3104_v6 = vpop.f32.mrb[151].mxu1  ;;  %v3170_v4 = vadd.f32 %v3110_v47, %v5903_v39 }
 0x8f8   : > { %v3105_v17 = vadd.f32 %v6116_v16, %v3104_v6  ;;  %v3168_v12 = vadd.f32 %v3102_v59, %v5895_v58 }
 0x8f9   : > { %v3171_v8 = vadd.f32 %v3113_v29, %v5888_v33 }
 0x8fa   : > { %v3169_v11 = vadd.f32 %v3105_v17, %v5899_v30 }
 0x8fb   : > { %v3192_v1 = vpack.c.bf16 %v3171_v8, %v3170_v4 }
 0x8fc   : > { %v3191_v25 = vpack.c.bf16 %v3169_v11, %v3168_v12 }
 0x8fe   : > { %4178 = vmatprep.mubr.msk.bf16.mxu0 %vm725_vm2, %v3191_v25 }
 0x8ff   : > { %4179 = vmatmul.mubr.msk.bf16.gmra.mrb[148].mxu0 %vm725_vm2, %v3192_v1 }
 0x904   : > { %v4148_v28 = vpop.f32.mrb[152].mxu1 }
 0x905   : > { %v3126_v0 = vadd.f32 %v4148_v28, %v6116_v16  ;;  %v3117_v34 = vpop.f32.mrb[153].mxu1 }
 0x906   : > { %v3118_v41 = vadd.f32 %v6116_v16, %v3117_v34  ;;  %v4149_v31 = vpop.f32.mrb[154].mxu1 }
 0x907   : > { %v3129_v39 = vadd.f32 %v4149_v31, %v6116_v16  ;;  %v3120_v33 = vpop.f32.mrb[155].mxu1  ;;  %v3174_v30 = vadd.f32 %v3126_v0, %v5938_v40 }
 0x908   : > { %v3121_v58 = vadd.f32 %v6116_v16, %v3120_v33  ;;  %v3172_v9 = vadd.f32 %v3118_v41, %v5930_v38 }
 0x909   : > { %v3175_v44 = vadd.f32 %v3129_v39, %v5926_v50 }
 0x90a   : > { %v3173_v14 = vadd.f32 %v3121_v58, %v5934_v24 }
 0x90b   : > { %v3194_v45 = vpack.c.bf16 %v3175_v44, %v3174_v30 }
 0x90c   : > { %v3193_v57 = vpack.c.bf16 %v3173_v14, %v3172_v9 }
 0x90e   : > { %4182 = vmatprep.mubr.msk.bf16.mxu0 %vm725_vm2, %v3193_v57 }
 0x90f   : > { %4183 = vmatmul.mubr.msk.bf16.gmra.mrb[152].mxu0 %vm725_vm2, %v3194_v45 }
 0x95e   : > { %v4152_v51 = vpop.f32.mrb[156].mxu1 }
 0x95f   : > { %v3142_v23 = vadd.f32 %v4152_v51, %v6116_v16  ;;  %v3133_v26 = vpop.f32.mrb[157].mxu1 }
 0x960   : > { %v3134_v18 = vadd.f32 %v6116_v16, %v3133_v26  ;;  %v4153_v40 = vpop.f32.mrb[158].mxu1 }
 0x961   : > { %v3145_v50 = vadd.f32 %v4153_v40, %v6116_v16  ;;  %v3136_v53 = vpop.f32.mrb[159].mxu1  ;;  %v3178_v24 = vadd.f32 %v3142_v23, %v5964_v54 }
 0x962   : > { %v3137_v38 = vadd.f32 %v6116_v16, %v3136_v53  ;;  %v3176_v37 = vadd.f32 %v3134_v18, %v6593_v3 }
 0x963   : > { %v3179_v61 = vadd.f32 %v3145_v50, %v6592_v42 }
 0x964   : > { %v3177_v55 = vadd.f32 %v3137_v38, %v6594_v22 }
 0x965   : > { %v3196_v52 = vpack.c.bf16 %v3179_v61, %v3178_v24 }
 0x966   : > { %v3195_v19 = vpack.c.bf16 %v3177_v55, %v3176_v37 }
 0x967   : > { %v4160_v36 = vpop.f32.mrb[128].mxu0 }
 0x968   : > { %v3308_v16 = vadd.f32 %v4160_v36, %v6204_v27  ;;  %4186 = vmatprep.mubr.msk.bf16.mxu0 %vm725_vm2, %v3195_v19  ;;  %v3299_v54 = vpop.f32.mrb[129].mxu0 }
 0x969   : > { %v3300_v35 = vadd.f32 %v6204_v27, %v3299_v54  ;;  %4187 = vmatmul.mubr.msk.bf16.gmra.mrb[156].mxu0 %vm725_vm2, %v3196_v52  ;;  %v4161_v15 = vpop.f32.mrb[130].mxu0 }
 0x96a   : > { %3428 = vst [vmem:[%s6210_s13 + $0x10] sm:$0xff] %v3308_v16  ;;  %v3311_v46 = vadd.f32 %v4161_v15, %v6204_v27  ;;  %v3302_v20 = vpop.f32.mrb[131].mxu0 }
 0x96b   : > { %3426 = vst [vmem:[%s6210_s13] sm:$0xff] %v3300_v35  ;;  %v3303_v62 = vadd.f32 %v6204_v27, %v3302_v20 }
 0x96c   : > { %3429 = vst [vmem:[%s6210_s13 + $0x18] sm:$0xff] %v3311_v46 }
 0x96d   : > { %3427 = vst [vmem:[%s6210_s13 + $0x8] sm:$0xff] %v3303_v62 }
 0x977   : > { %v4164_v13 = vpop.f32.mrb[132].mxu0 }
 0x978   : > { %v3324_v48 = vadd.f32 %v4164_v13, %v6204_v27  ;;  %v3315_v5 = vpop.f32.mrb[133].mxu0 }
 0x979   : > { %v3316_v21 = vadd.f32 %v6204_v27, %v3315_v5  ;;  %v4165_v60 = vpop.f32.mrb[134].mxu0 }
 0x97a   : > { %3432 = vst [vmem:[%s6210_s13 + $0x30] sm:$0xff] %v3324_v48  ;;  %v3327_v32 = vadd.f32 %v4165_v60, %v6204_v27  ;;  %v3318_v56 = vpop.f32.mrb[135].mxu0 }
 0x97b   : > { %3430 = vst [vmem:[%s6210_s13 + $0x20] sm:$0xff] %v3316_v21  ;;  %v3319_v63 = vadd.f32 %v6204_v27, %v3318_v56 }
 0x97c   : > { %3433 = vst [vmem:[%s6210_s13 + $0x38] sm:$0xff] %v3327_v32 }
 0x97d   : > { %3431 = vst [vmem:[%s6210_s13 + $0x28] sm:$0xff] %v3319_v63 }
 0x9a2   : > { %v4168_v10 = vpop.f32.mrb[136].mxu0 }
 0x9a3   : > { %v3340_v7 = vadd.f32 %v4168_v10, %v6204_v27  ;;  %v3331_v49 = vpop.f32.mrb[137].mxu0 }
 0x9a4   : > { %v3332_v47 = vadd.f32 %v6204_v27, %v3331_v49  ;;  %v4169_v43 = vpop.f32.mrb[138].mxu0 }
 0x9a5   : > { %3436 = vst [vmem:[%s6210_s13 + $0x50] sm:$0xff] %v3340_v7  ;;  %v3343_v59 = vadd.f32 %v4169_v43, %v6204_v27  ;;  %v3334_v2 = vpop.f32.mrb[139].mxu0 }
 0x9a6   : > { %3434 = vst [vmem:[%s6210_s13 + $0x40] sm:$0xff] %v3332_v47  ;;  %v3335_v29 = vadd.f32 %v6204_v27, %v3334_v2 }
 0x9a7   : > { %3437 = vst [vmem:[%s6210_s13 + $0x58] sm:$0xff] %v3343_v59 }
 0x9a8   : > { %3435 = vst [vmem:[%s6210_s13 + $0x48] sm:$0xff] %v3335_v29 }
 0x9b2   : > { %v4172_v6 = vpop.f32.mrb[140].mxu0 }
 0x9b3   : > { %v3356_v17 = vadd.f32 %v4172_v6, %v6204_v27  ;;  %v3347_v4 = vpop.f32.mrb[141].mxu0 }
 0x9b4   : > { %v3348_v8 = vadd.f32 %v6204_v27, %v3347_v4  ;;  %v4173_v12 = vpop.f32.mrb[142].mxu0 }
 0x9b5   : > { %3440 = vst [vmem:[%s6210_s13 + $0x70] sm:$0xff] %v3356_v17  ;;  %v3359_v11 = vadd.f32 %v4173_v12, %v6204_v27  ;;  %v3350_v1 = vpop.f32.mrb[143].mxu0 }
 0x9b6   : > { %3438 = vst [vmem:[%s6210_s13 + $0x60] sm:$0xff] %v3348_v8  ;;  %v3351_v25 = vadd.f32 %v6204_v27, %v3350_v1 }
 0x9b7   : > { %3441 = vst [vmem:[%s6210_s13 + $0x78] sm:$0xff] %v3359_v11 }
 0x9b8   : > { %3439 = vst [vmem:[%s6210_s13 + $0x68] sm:$0xff] %v3351_v25 }
 0x9c2   : > { %v4176_v28 = vpop.f32.mrb[144].mxu0 }
 0x9c3   : > { %v3372_v0 = vadd.f32 %v4176_v28, %v6204_v27  ;;  %v3363_v34 = vpop.f32.mrb[145].mxu0 }
 0x9c4   : > { %v3364_v41 = vadd.f32 %v6204_v27, %v3363_v34  ;;  %v4177_v31 = vpop.f32.mrb[146].mxu0 }
 0x9c5   : > { %3444 = vst [vmem:[%s6210_s13 + $0x90] sm:$0xff] %v3372_v0  ;;  %v3375_v39 = vadd.f32 %v4177_v31, %v6204_v27  ;;  %v3366_v33 = vpop.f32.mrb[147].mxu0 }
 0x9c6   : > { %3442 = vst [vmem:[%s6210_s13 + $0x80] sm:$0xff] %v3364_v41  ;;  %v3367_v58 = vadd.f32 %v6204_v27, %v3366_v33 }
 0x9c7   : > { %3445 = vst [vmem:[%s6210_s13 + $0x98] sm:$0xff] %v3375_v39 }
 0x9c8   : > { %3443 = vst [vmem:[%s6210_s13 + $0x88] sm:$0xff] %v3367_v58 }
 0x9d2   : > { %v4180_v30 = vpop.f32.mrb[148].mxu0 }
 0x9d3   : > { %v3388_v44 = vadd.f32 %v4180_v30, %v6204_v27  ;;  %v3379_v9 = vpop.f32.mrb[149].mxu0 }
 0x9d4   : > { %v3380_v14 = vadd.f32 %v6204_v27, %v3379_v9  ;;  %v4181_v45 = vpop.f32.mrb[150].mxu0 }
 0x9d5   : > { %3448 = vst [vmem:[%s6210_s13 + $0xb0] sm:$0xff] %v3388_v44  ;;  %v3391_v57 = vadd.f32 %v4181_v45, %v6204_v27  ;;  %v3382_v51 = vpop.f32.mrb[151].mxu0 }
 0x9d6   : > { %3446 = vst [vmem:[%s6210_s13 + $0xa0] sm:$0xff] %v3380_v14  ;;  %v3383_v23 = vadd.f32 %v6204_v27, %v3382_v51 }
 0x9d7   : > { %3449 = vst [vmem:[%s6210_s13 + $0xb8] sm:$0xff] %v3391_v57 }
 0x9d8   : > { %3447 = vst [vmem:[%s6210_s13 + $0xa8] sm:$0xff] %v3383_v23 }
 0x9e2   : > { %v4184_v26 = vpop.f32.mrb[152].mxu0 }
 0x9e3   : > { %v3404_v18 = vadd.f32 %v4184_v26, %v6204_v27  ;;  %v3395_v40 = vpop.f32.mrb[153].mxu0 }
 0x9e4   : > { %v3396_v50 = vadd.f32 %v6204_v27, %v3395_v40  ;;  %v4185_v53 = vpop.f32.mrb[154].mxu0 }
 0x9e5   : > { %3452 = vst [vmem:[%s6210_s13 + $0xd0] sm:$0xff] %v3404_v18  ;;  %v3407_v38 = vadd.f32 %v4185_v53, %v6204_v27  ;;  %v3398_v24 = vpop.f32.mrb[155].mxu0 }
 0x9e6   : > { %3450 = vst [vmem:[%s6210_s13 + $0xc0] sm:$0xff] %v3396_v50  ;;  %v3399_v42 = vadd.f32 %v6204_v27, %v3398_v24 }
 0x9e7   : > { %3453 = vst [vmem:[%s6210_s13 + $0xd8] sm:$0xff] %v3407_v38 }
 0x9e8   : > { %3451 = vst [vmem:[%s6210_s13 + $0xc8] sm:$0xff] %v3399_v42 }
 0xa3c   : > { %v4188_v61 = vpop.f32.mrb[156].mxu0 }
 0xa3d   : > { %v3420_v3 = vadd.f32 %v4188_v61, %v6204_v27  ;;  %v3411_v37 = vpop.f32.mrb[157].mxu0 }
 0xa3e   : > { %v3412_v22 = vadd.f32 %v6204_v27, %v3411_v37  ;;  %v4189_v55 = vpop.f32.mrb[158].mxu0 }
 0xa3f   : > { %3456 = vst [vmem:[%s6210_s13 + $0xf0] sm:$0xff] %v3420_v3  ;;  %v3423_v52 = vadd.f32 %v4189_v55, %v6204_v27  ;;  %v3414_v19 = vpop.f32.mrb[159].mxu0 }
 0xa40   : > { %3454 = vst [vmem:[%s6210_s13 + $0xe0] sm:$0xff] %v3412_v22  ;;  %v3415_v36 = vadd.f32 %v6204_v27, %v3414_v19 }
 0xa41   : > { %3457 = vst [vmem:[%s6210_s13 + $0xf8] sm:$0xff] %v3423_v52 }
 0xa42   : > { %3455 = vst [vmem:[%s6210_s13 + $0xe8] sm:$0xff] %v3415_v36 }
 0xa43   : > { %4542 = shalt.err (!%p4539_p3)
}
 0xa44   : > { %s4543_s25 = scalar_lea.hbm %s6275_s21, 4096  ;;  %s4547_s13 = scalar_lea.hbm %s6334_s8, 8192 }
 0xa45   : > { %p4544_p4 = scmp.ne.s32.totalorder %s6275_s21, %s4543_s25  ;;  %p4548_p9 = scmp.lt.u32.totalorder %s6275_s21, %s6334_s8 }
 0xa46   : > { %p4549_p10 = scmp.lt.u32.totalorder %s4547_s13, %s4543_s25  ;;  %p4551_p12 = scmp.lt.u32.totalorder %s4543_s25, %s6275_s21 }
 0xa47   : > { %p4545_p7 = pnand %p4544_p4, %p4681_p5 }
 0xa48   : > { %p4550_p11 = por %p4549_p10, %p4548_p9 }
 0xa49   : > { %p4546_p8 = pneg %p4545_p7 }
 0xa4a   : > { %p4552_p13 = por %p4551_p12, %p4550_p11 }
 0xa4c   : > { %p4553_p0 = pnand %p4552_p13, %p4546_p8 }
 0xa4e   : > { %4556 = shalt.err (!%p4553_p0)
}
 0xa4f   : > { %s4596_s20 = smov 128   ;;  %s4597_s22 = smov 8  }
 0xa50   : > { %4199 = dma.vmem_to_hbm [thread:$0]  (%p4681_p5), %s6277_s18, 4096, %s6275_s21, %s6285_s9, %s4596_s20, %s4596_s20, %s4597_s22  }
 0xa51 PF: > { %p4205_p1 = scmp.ge.s32.totalorder %s4591_s30, 2  ;;  %s3487_s23 = sand.u32 1, %s4579_s27  }
 0xa52   : > { %s3488_s24 = scalar_lea.sflag [#allocation3], %s3487_s23 }
 0xa53   : > { %p4202_p2 = pnand %p4205_p1, %p4685_p6 }
 0xa55   : > { %4574 = dma.done.wait (!%p4202_p2), %s3488_s24, 4096  }
 0xa56   : > { %4576 = vsyncadd (!%p4202_p2), %s3488_s24, 4294963200  ;;  %p18_p3 = scmp.ge.s32.totalorder %s4668_s11, 4   ;;  %s6595_s27 = smov %s4583_s28 }
 0xa57   : > { %s6596_s28 = smov %s4587_s29  ;;  %s6597_s29 = smov %s4679_s14 }
 0xa58   : > { %s6598_s30 = smov %s4668_s11  ;;  %20 = sbr.rel (!%p18_p3) target bundleno = 3 (0x3), region = 87 }
 0xa5f   :  { %3493 = vsyncpa [#allocation3], 1 }
 0xa60   :  { %3495 = vsyncpa [#allocation3 + $0x1], 1 }

</bundles_post_ra>
